<compile_context>
chip_gen: v5e
topology: v5e:2x2
jax: 0.10.0
libtpu: 0.0.40
codegen_flags: <defaults>
</compile_context>

<pallas_src>
import functools

import numpy as np
import jax
import jax.numpy as jnp
from jax.experimental import pallas as pl
from jax.experimental.pallas import tpu as pltpu


# ----------------------------------------------------------------------------
# Pallas kernel: one bidirectional GRU layer (both directions, full sequence)
# ----------------------------------------------------------------------------
def _bigru_layer_kernel(mask_ref, gi_f_ref, gi_b_ref,
                        whh_f_ref, whh_b_ref, bhh_f_ref, bhh_b_ref,
                        *rest, hidden_dim, fuse_fc):
    """Refs:
      mask_ref : [T, B, 1]  f32   1.0 where t < len[b] else 0.0
      gi_*_ref : [T, B, 3H] f32   precomputed x @ W_ih.T + b_ih (gate order r,z,n)
      whh_*_ref: [H, 3H]    f32   W_hh.T (fused gates)
      bhh_*_ref: [1, 3H]    f32
      if fuse_fc: fcw_f [H,D], fcw_b [H,D], fcb [1,D]
      outputs  : out [T, B, 2H]  (+ hid [B, D] if fuse_fc)
    """
    H = hidden_dim
    if fuse_fc:
        fcwf_ref, fcwb_ref, fcb_ref, out_ref, hid_ref = rest
    else:
        (out_ref,) = rest

    T = gi_f_ref.shape[0]
    B = gi_f_ref.shape[1]

    def gru_step(gi, h, whh_ref, bhh_ref):
        # One fused hidden matmul per step: [B,H] x [H,3H] -> [B,3H]
        gh = jnp.dot(h, whh_ref[...], preferred_element_type=jnp.float32) + bhh_ref[...]
        r = jax.nn.sigmoid(gi[:, 0:H] + gh[:, 0:H])
        z = jax.nn.sigmoid(gi[:, H:2 * H] + gh[:, H:2 * H])
        n = jnp.tanh(gi[:, 2 * H:3 * H] + r * gh[:, 2 * H:3 * H])
        return (1.0 - z) * n + z * h

    def make_body(gi_ref, whh_ref, bhh_ref, reverse, lane_off):
        def body(i, h):
            t = (T - 1 - i) if reverse else i
            gi = gi_ref[t]                    # [B, 3H]
            m = mask_ref[t]                   # [B, 1]
            h_new = gru_step(gi, h, whh_ref, bhh_ref)
            h_next = m * h_new + (1.0 - m) * h            # freeze h at padded steps
            # write this direction's half of the concatenated layer output
            out_ref[pl.ds(t, 1), :, pl.ds(lane_off, H)] = (m * h_new)[None]
            return h_next
        return body

    h0 = jnp.zeros((B, H), jnp.float32)
    h_f = jax.lax.fori_loop(0, T, make_body(gi_f_ref, whh_f_ref, bhh_f_ref, False, 0),
                            h0, unroll=True)
    h_b = jax.lax.fori_loop(0, T, make_body(gi_b_ref, whh_b_ref, bhh_b_ref, True, H),
                            h0, unroll=True)

    if fuse_fc:
        # hidden = tanh([h_f | h_b] @ fc_w.T + fc_b), split to avoid an in-kernel concat
        hid = (jnp.dot(h_f, fcwf_ref[...], preferred_element_type=jnp.float32)
               + jnp.dot(h_b, fcwb_ref[...], preferred_element_type=jnp.float32)
               + fcb_ref[...])
        hid_ref[...] = jnp.tanh(hid)


# ----------------------------------------------------------------------------
# Wrappers
# ----------------------------------------------------------------------------
def _input_gates(x, w_ih, b_ih):
    """Hoisted input-gate GEMM for all timesteps: [T,B,In] -> [T,B,3H] (XLA, MXU-friendly)."""
    T, B, In = x.shape
    return (x.reshape(T * B, In) @ w_ih.T + b_ih).reshape(T, B, -1)


def bigru_layer(x, mask, w_ih_f, w_hh_f, b_ih_f, b_hh_f,
                w_ih_b, w_hh_b, b_ih_b, b_hh_b, fc_w=None, fc_b=None):
    """One bidirectional GRU layer. Returns [T,B,2H] (and [B,D] if fc_w given)."""
    T, B, In = x.shape
    H = w_hh_f.shape[1]
    fuse_fc = fc_w is not None

    gi_f = _input_gates(x, w_ih_f, b_ih_f)          # [T, B, 3H]
    gi_b = _input_gates(x, w_ih_b, b_ih_b)          # [T, B, 3H]

    whh_f_t = w_hh_f.T                              # [H, 3H]
    whh_b_t = w_hh_b.T
    bhh_f2 = b_hh_f.reshape(1, 3 * H)
    bhh_b2 = b_hh_b.reshape(1, 3 * H)

    def full(shape):
        return pl.BlockSpec(shape, lambda i, _s=shape: (0,) * len(_s))

    in_specs = [full((T, B, 1)),
                full((T, B, 3 * H)), full((T, B, 3 * H)),
                full((H, 3 * H)), full((H, 3 * H)),
                full((1, 3 * H)), full((1, 3 * H))]
    args = [mask, gi_f, gi_b, whh_f_t, whh_b_t, bhh_f2, bhh_b2]

    if fuse_fc:
        D = fc_w.shape[0]
        fcw_f = fc_w[:, :H].T                       # [H, D]
        fcw_b = fc_w[:, H:].T                       # [H, D]
        fcb2 = fc_b.reshape(1, D)
        in_specs += [full((H, D)), full((H, D)), full((1, D))]
        args += [fcw_f, fcw_b, fcb2]
        out_specs = [full((T, B, 2 * H)), full((B, D))]
        out_shape = [jax.ShapeDtypeStruct((T, B, 2 * H), jnp.float32),
                     jax.ShapeDtypeStruct((B, D), jnp.float32)]
    else:
        out_specs = full((T, B, 2 * H))
        out_shape = jax.ShapeDtypeStruct((T, B, 2 * H), jnp.float32)

    kern = functools.partial(_bigru_layer_kernel, hidden_dim=H, fuse_fc=fuse_fc)
    return pl.pallas_call(
        kern,
        grid=(1,),
        in_specs=in_specs,
        out_specs=out_specs,
        out_shape=out_shape,
        compiler_params=pltpu.CompilerParams(dimension_semantics=("arbitrary",)),
    )(*args)


# ----------------------------------------------------------------------------
# Encoder forward (Pallas recurrent hot path, XLA glue for gathers / big GEMMs)
# ----------------------------------------------------------------------------
@functools.partial(jax.jit, static_argnames=("n_layers",))
def encoder_forward(params, src, src_len, *, n_layers):
    T, B = src.shape
    E = params["emb_w"].shape[1]
    scale = jnp.sqrt(jnp.float32(E))

    tok = params["emb_w"][src]                               # [T, B, E]  embedding gather
    pos = params["pos_w"][jnp.arange(T)][:, None, :]         # [T, 1, E]
    embedded = tok * scale + pos                             # [T, B, E]
    # TODO(synk): nn.Dropout treated as identity (inference mode); no RNG dropout.

    # packed-sequence validity mask, shared by both directions
    mask = (jnp.arange(T)[:, None] < src_len[None, :]).astype(jnp.float32)[:, :, None]

    layer_in = embedded
    hidden = None
    for l in range(n_layers):
        last = (l == n_layers - 1)
        res = bigru_layer(
            layer_in, mask,
            params[f"w_ih_l{l}"], params[f"w_hh_l{l}"],
            params[f"b_ih_l{l}"], params[f"b_hh_l{l}"],
            params[f"w_ih_l{l}_rev"], params[f"w_hh_l{l}_rev"],
            params[f"b_ih_l{l}_rev"], params[f"b_hh_l{l}_rev"],
            fc_w=params["fc_w"] if last else None,
            fc_b=params["fc_b"] if last else None)
        if last:
            layer_in, hidden = res
        else:
            layer_in = res

    return layer_in, hidden                                  # [T,B,2H], [B,D]


# ----------------------------------------------------------------------------
# Pure-JAX reference (same packed-sequence masking semantics)
# ----------------------------------------------------------------------------
def _ref_gru_direction(x, lens, w_ih, w_hh, b_ih, b_hh, *, reverse):
    T, B, _ = x.shape
    H = w_hh.shape[1]

    def step(h, t):
        tt = (T - 1 - t) if reverse else t
        xt = x[tt]
        gi = xt @ w_ih.T + b_ih
        gh = h @ w_hh.T + b_hh
        r = jax.nn.sigmoid(gi[:, :H] + gh[:, :H])
        z = jax.nn.sigmoid(gi[:, H:2 * H] + gh[:, H:2 * H])
        n = jnp.tanh(gi[:, 2 * H:] + r * gh[:, 2 * H:])
        h_new = (1.0 - z) * n + z * h
        valid = (tt < lens)[:, None]
        h_upd = jnp.where(valid, h_new, h)
        return h_upd, jnp.where(valid, h_new, 0.0)

    h_fin, outs = jax.lax.scan(step, jnp.zeros((B, H), jnp.float32), jnp.arange(T))
    out = outs[::-1] if reverse else outs
    return out, h_fin


def ref_encoder_forward(params, src, src_len, *, n_layers):
    T, _ = src.shape
    E = params["emb_w"].shape[1]
    embedded = params["emb_w"][src] * jnp.sqrt(jnp.float32(E)) \
        + params["pos_w"][jnp.arange(T)][:, None, :]
    layer_in = embedded
    h_f = h_b = None
    for l in range(n_layers):
        out_f, h_f = _ref_gru_direction(layer_in, src_len,
                                        params[f"w_ih_l{l}"], params[f"w_hh_l{l}"],
                                        params[f"b_ih_l{l}"], params[f"b_hh_l{l}"],
                                        reverse=False)
        out_b, h_b = _ref_gru_direction(layer_in, src_len,
                                        params[f"w_ih_l{l}_rev"], params[f"w_hh_l{l}_rev"],
                                        params[f"b_ih_l{l}_rev"], params[f"b_hh_l{l}_rev"],
                                        reverse=True)
        layer_in = jnp.concatenate([out_f, out_b], axis=-1)
    hidden = jnp.tanh(jnp.concatenate([h_f, h_b], axis=-1) @ params["fc_w"].T
                      + params["fc_b"])
    return layer_in, hidden


# ----------------------------------------------------------------------------
# Deterministic parameter init (PyTorch-style shapes)
# ----------------------------------------------------------------------------
def init_params(key, vocab, emb_dim, enc_hid, dec_hid, n_layers, max_length):
    keys = iter(jax.random.split(key, 64))
    p = {}
    p["emb_w"] = jax.random.normal(next(keys), (vocab, emb_dim), jnp.float32)
    p["pos_w"] = jax.random.normal(next(keys), (max_length, emb_dim), jnp.float32)
    k = 1.0 / np.sqrt(enc_hid)
    for l in range(n_layers):
        in_dim = emb_dim if l == 0 else 2 * enc_hid
        for suf in ("", "_rev"):
            p[f"w_ih_l{l}{suf}"] = jax.random.uniform(
                next(keys), (3 * enc_hid, in_dim), jnp.float32, -k, k)
            p[f"w_hh_l{l}{suf}"] = jax.random.uniform(
                next(keys), (3 * enc_hid, enc_hid), jnp.float32, -k, k)
            p[f"b_ih_l{l}{suf}"] = jax.random.uniform(
                next(keys), (3 * enc_hid,), jnp.float32, -k, k)
            p[f"b_hh_l{l}{suf}"] = jax.random.uniform(
                next(keys), (3 * enc_hid,), jnp.float32, -k, k)
    kf = 1.0 / np.sqrt(2 * enc_hid)
    p["fc_w"] = jax.random.uniform(next(keys), (dec_hid, 2 * enc_hid), jnp.float32, -kf, kf)
    p["fc_b"] = jax.random.uniform(next(keys), (dec_hid,), jnp.float32, -kf, kf)
    return p


if __name__ == "__main__":
    T, B = 8, 4
    vocab, emb_dim, enc_hid, dec_hid, n_layers, max_length = 50, 32, 32, 32, 2, 100

    key = jax.random.PRNGKey(0)
    kp, ks = jax.random.split(key)
    params = init_params(kp, vocab, emb_dim, enc_hid, dec_hid, n_layers, max_length)

    src = jax.random.randint(ks, (T, B), 0, vocab, dtype=jnp.int32)      # [T, B] seq-first
    src_len = jnp.array([T, 6, 5, 3], dtype=jnp.int32)                   # [B]

    outputs, hidden = encoder_forward(params, src, src_len, n_layers=n_layers)
    jax.block_until_ready((outputs, hidden))

    assert outputs.shape == (T, B, 2 * enc_hid)
    assert hidden.shape == (B, dec_hid)

    ref_outputs, ref_hidden = ref_encoder_forward(params, src, src_len, n_layers=n_layers)
    # Loose tolerance: MXU f32 matmul path vs XLA default matmul precision.
    np.testing.assert_allclose(np.asarray(outputs), np.asarray(ref_outputs),
                               atol=2e-2, rtol=2e-2)
    np.testing.assert_allclose(np.asarray(hidden), np.asarray(ref_hidden),
                               atol=2e-2, rtol=2e-2)

    print("KERNEL_OK")
</pallas_src>

<mosaic_0001>
module attributes {stable_mosaic.version = 11 : i64} {
  func.func @_bigru_layer_kernel(%arg0: i32, %arg1: memref<8x4x1xf32, #tpu.memory_space<vmem>>, %arg2: memref<8x4x96xf32, #tpu.memory_space<vmem>>, %arg3: memref<8x4x96xf32, #tpu.memory_space<vmem>>, %arg4: memref<32x96xf32, #tpu.memory_space<vmem>>, %arg5: memref<32x96xf32, #tpu.memory_space<vmem>>, %arg6: memref<1x96xf32, #tpu.memory_space<vmem>>, %arg7: memref<1x96xf32, #tpu.memory_space<vmem>>, %arg8: memref<8x4x64xf32, #tpu.memory_space<vmem>>) attributes {dimension_semantics = [#tpu.dimension_semantics<arbitrary>], iteration_bounds = array<i64: 1>, scalar_prefetch = 0 : i64, scratch_operands = 0 : i64, tpu.core_type = #tpu.core_type<tc>, window_params = [{pipeline_mode = #tpu.pipeline_mode<synchronous>, transform_indices = @transform_0, window_bounds = array<i64: 8, 4, 1>}, {pipeline_mode = #tpu.pipeline_mode<synchronous>, transform_indices = @transform_1, window_bounds = array<i64: 8, 4, 96>}, {pipeline_mode = #tpu.pipeline_mode<synchronous>, transform_indices = @transform_2, window_bounds = array<i64: 8, 4, 96>}, {pipeline_mode = #tpu.pipeline_mode<synchronous>, transform_indices = @transform_3, window_bounds = array<i64: 32, 96>}, {pipeline_mode = #tpu.pipeline_mode<synchronous>, transform_indices = @transform_4, window_bounds = array<i64: 32, 96>}, {pipeline_mode = #tpu.pipeline_mode<synchronous>, transform_indices = @transform_5, window_bounds = array<i64: 1, 96>}, {pipeline_mode = #tpu.pipeline_mode<synchronous>, transform_indices = @transform_6, window_bounds = array<i64: 1, 96>}, {pipeline_mode = #tpu.pipeline_mode<synchronous>, transform_indices = @transform_7, window_bounds = array<i64: 8, 4, 64>}]} {
    %cst = arith.constant 0.000000e+00 : f32
    %0 = vector.broadcast %cst : f32 to vector<4x32xf32>
    %c0_i32 = arith.constant 0 : i32
    %1 = arith.index_cast %c0_i32 : i32 to index
    %c0 = arith.constant 0 : index
    %c0_0 = arith.constant 0 : index
    %2 = vector.load %arg2[%1, %c0, %c0_0] : memref<8x4x96xf32, #tpu.memory_space<vmem>>, vector<1x4x96xf32>
    %3 = vector.shape_cast %2 : vector<1x4x96xf32> to vector<4x96xf32>
    %4 = arith.index_cast %c0_i32 : i32 to index
    %c0_1 = arith.constant 0 : index
    %c0_2 = arith.constant 0 : index
    %5 = vector.load %arg1[%4, %c0_1, %c0_2] : memref<8x4x1xf32, #tpu.memory_space<vmem>>, vector<1x4x1xf32>
    %6 = vector.shape_cast %5 : vector<1x4x1xf32> to vector<4x1xf32>
    %c0_3 = arith.constant 0 : index
    %c0_4 = arith.constant 0 : index
    %7 = vector.load %arg4[%c0_3, %c0_4] : memref<32x96xf32, #tpu.memory_space<vmem>>, vector<32x96xf32>
    %cst_5 = arith.constant dense<0.000000e+00> : vector<4x96xf32>
    %8 = tpu.matmul %0, %7, %cst_5 {dimension_numbers = #tpu.dot_dimension_numbers<[1], [0], [0], [1], [0, 0, 1, 1], [], []>} : vector<4x32xf32>, vector<32x96xf32>, vector<4x96xf32> -> vector<4x96xf32>
    %c0_6 = arith.constant 0 : index
    %c0_7 = arith.constant 0 : index
    %9 = vector.load %arg6[%c0_6, %c0_7] : memref<1x96xf32, #tpu.memory_space<vmem>>, vector<1x96xf32>
    %10 = vector.broadcast %9 : vector<1x96xf32> to vector<4x96xf32>
    %11 = arith.addf %8, %10 : vector<4x96xf32>
    %12 = vector.extract_strided_slice %3 {offsets = [0, 0], sizes = [4, 32], strides = [1, 1]} : vector<4x96xf32> to vector<4x32xf32>
    %13 = vector.extract_strided_slice %11 {offsets = [0, 0], sizes = [4, 32], strides = [1, 1]} : vector<4x96xf32> to vector<4x32xf32>
    %14 = arith.addf %12, %13 : vector<4x32xf32>
    %15 = arith.negf %14 : vector<4x32xf32>
    %16 = math.exp %15 : vector<4x32xf32>
    %cst_8 = arith.constant 1.000000e+00 : f32
    %17 = vector.broadcast %cst_8 : f32 to vector<4x32xf32>
    %18 = arith.addf %17, %16 : vector<4x32xf32>
    %19 = arith.divf %17, %18 : vector<4x32xf32>
    %20 = vector.extract_strided_slice %3 {offsets = [0, 32], sizes = [4, 32], strides = [1, 1]} : vector<4x96xf32> to vector<4x32xf32>
    %21 = vector.extract_strided_slice %11 {offsets = [0, 32], sizes = [4, 32], strides = [1, 1]} : vector<4x96xf32> to vector<4x32xf32>
    %22 = arith.addf %20, %21 : vector<4x32xf32>
    %23 = arith.negf %22 : vector<4x32xf32>
    %24 = math.exp %23 : vector<4x32xf32>
    %cst_9 = arith.constant 1.000000e+00 : f32
    %25 = vector.broadcast %cst_9 : f32 to vector<4x32xf32>
    %26 = arith.addf %25, %24 : vector<4x32xf32>
    %27 = arith.divf %25, %26 : vector<4x32xf32>
    %28 = vector.extract_strided_slice %3 {offsets = [0, 64], sizes = [4, 32], strides = [1, 1]} : vector<4x96xf32> to vector<4x32xf32>
    %29 = vector.extract_strided_slice %11 {offsets = [0, 64], sizes = [4, 32], strides = [1, 1]} : vector<4x96xf32> to vector<4x32xf32>
    %30 = arith.mulf %19, %29 : vector<4x32xf32>
    %31 = arith.addf %28, %30 : vector<4x32xf32>
    %32 = math.tanh %31 : vector<4x32xf32>
    %cst_10 = arith.constant 1.000000e+00 : f32
    %33 = vector.broadcast %cst_10 : f32 to vector<4x32xf32>
    %34 = arith.subf %33, %27 : vector<4x32xf32>
    %35 = arith.mulf %34, %32 : vector<4x32xf32>
    %36 = arith.mulf %27, %0 : vector<4x32xf32>
    %37 = arith.addf %35, %36 : vector<4x32xf32>
    %38 = vector.broadcast %6 : vector<4x1xf32> to vector<4x32xf32>
    %39 = arith.mulf %38, %37 : vector<4x32xf32>
    %cst_11 = arith.constant 1.000000e+00 : f32
    %40 = vector.broadcast %cst_11 : f32 to vector<4x1xf32>
    %41 = arith.subf %40, %6 : vector<4x1xf32>
    %42 = vector.broadcast %41 : vector<4x1xf32> to vector<4x32xf32>
    %43 = arith.mulf %42, %0 : vector<4x32xf32>
    %44 = arith.addf %39, %43 : vector<4x32xf32>
    %45 = vector.broadcast %6 : vector<4x1xf32> to vector<4x32xf32>
    %46 = arith.mulf %45, %37 : vector<4x32xf32>
    %47 = vector.shape_cast %46 : vector<4x32xf32> to vector<1x4x32xf32>
    %48 = arith.index_cast %c0_i32 : i32 to index
    %c0_12 = arith.constant 0 : index
    %c0_13 = arith.constant 0 : index
    %49 = vector.load %arg8[%48, %c0_12, %c0_13] : memref<8x4x64xf32, #tpu.memory_space<vmem>>, vector<1x4x32xf32>
    tpu.vector_store %arg8[%48, %c0_12, %c0_13], %47 {strides = array<i32>} : memref<8x4x64xf32, #tpu.memory_space<vmem>>, vector<1x4x32xf32>,
    %c1_i32 = arith.constant 1 : i32
    %50 = arith.index_cast %c1_i32 : i32 to index
    %c0_14 = arith.constant 0 : index
    %c0_15 = arith.constant 0 : index
    %51 = vector.load %arg2[%50, %c0_14, %c0_15] : memref<8x4x96xf32, #tpu.memory_space<vmem>>, vector<1x4x96xf32>
    %52 = vector.shape_cast %51 : vector<1x4x96xf32> to vector<4x96xf32>
    %53 = arith.index_cast %c1_i32 : i32 to index
    %c0_16 = arith.constant 0 : index
    %c0_17 = arith.constant 0 : index
    %54 = vector.load %arg1[%53, %c0_16, %c0_17] : memref<8x4x1xf32, #tpu.memory_space<vmem>>, vector<1x4x1xf32>
    %55 = vector.shape_cast %54 : vector<1x4x1xf32> to vector<4x1xf32>
    %c0_18 = arith.constant 0 : index
    %c0_19 = arith.constant 0 : index
    %56 = vector.load %arg4[%c0_18, %c0_19] : memref<32x96xf32, #tpu.memory_space<vmem>>, vector<32x96xf32>
    %cst_20 = arith.constant dense<0.000000e+00> : vector<4x96xf32>
    %57 = tpu.matmul %44, %56, %cst_20 {dimension_numbers = #tpu.dot_dimension_numbers<[1], [0], [0], [1], [0, 0, 1, 1], [], []>} : vector<4x32xf32>, vector<32x96xf32>, vector<4x96xf32> -> vector<4x96xf32>
    %c0_21 = arith.constant 0 : index
    %c0_22 = arith.constant 0 : index
    %58 = vector.load %arg6[%c0_21, %c0_22] : memref<1x96xf32, #tpu.memory_space<vmem>>, vector<1x96xf32>
    %59 = vector.broadcast %58 : vector<1x96xf32> to vector<4x96xf32>
    %60 = arith.addf %57, %59 : vector<4x96xf32>
    %61 = vector.extract_strided_slice %52 {offsets = [0, 0], sizes = [4, 32], strides = [1, 1]} : vector<4x96xf32> to vector<4x32xf32>
    %62 = vector.extract_strided_slice %60 {offsets = [0, 0], sizes = [4, 32], strides = [1, 1]} : vector<4x96xf32> to vector<4x32xf32>
    %63 = arith.addf %61, %62 : vector<4x32xf32>
    %64 = arith.negf %63 : vector<4x32xf32>
    %65 = math.exp %64 : vector<4x32xf32>
    %cst_23 = arith.constant 1.000000e+00 : f32
    %66 = vector.broadcast %cst_23 : f32 to vector<4x32xf32>
    %67 = arith.addf %66, %65 : vector<4x32xf32>
    %68 = arith.divf %66, %67 : vector<4x32xf32>
    %69 = vector.extract_strided_slice %52 {offsets = [0, 32], sizes = [4, 32], strides = [1, 1]} : vector<4x96xf32> to vector<4x32xf32>
    %70 = vector.extract_strided_slice %60 {offsets = [0, 32], sizes = [4, 32], strides = [1, 1]} : vector<4x96xf32> to vector<4x32xf32>
    %71 = arith.addf %69, %70 : vector<4x32xf32>
    %72 = arith.negf %71 : vector<4x32xf32>
    %73 = math.exp %72 : vector<4x32xf32>
    %cst_24 = arith.constant 1.000000e+00 : f32
    %74 = vector.broadcast %cst_24 : f32 to vector<4x32xf32>
    %75 = arith.addf %74, %73 : vector<4x32xf32>
    %76 = arith.divf %74, %75 : vector<4x32xf32>
    %77 = vector.extract_strided_slice %52 {offsets = [0, 64], sizes = [4, 32], strides = [1, 1]} : vector<4x96xf32> to vector<4x32xf32>
    %78 = vector.extract_strided_slice %60 {offsets = [0, 64], sizes = [4, 32], strides = [1, 1]} : vector<4x96xf32> to vector<4x32xf32>
    %79 = arith.mulf %68, %78 : vector<4x32xf32>
    %80 = arith.addf %77, %79 : vector<4x32xf32>
    %81 = math.tanh %80 : vector<4x32xf32>
    %cst_25 = arith.constant 1.000000e+00 : f32
    %82 = vector.broadcast %cst_25 : f32 to vector<4x32xf32>
    %83 = arith.subf %82, %76 : vector<4x32xf32>
    %84 = arith.mulf %83, %81 : vector<4x32xf32>
    %85 = arith.mulf %76, %44 : vector<4x32xf32>
    %86 = arith.addf %84, %85 : vector<4x32xf32>
    %87 = vector.broadcast %55 : vector<4x1xf32> to vector<4x32xf32>
    %88 = arith.mulf %87, %86 : vector<4x32xf32>
    %cst_26 = arith.constant 1.000000e+00 : f32
    %89 = vector.broadcast %cst_26 : f32 to vector<4x1xf32>
    %90 = arith.subf %89, %55 : vector<4x1xf32>
    %91 = vector.broadcast %90 : vector<4x1xf32> to vector<4x32xf32>
    %92 = arith.mulf %91, %44 : vector<4x32xf32>
    %93 = arith.addf %88, %92 : vector<4x32xf32>
    %94 = vector.broadcast %55 : vector<4x1xf32> to vector<4x32xf32>
    %95 = arith.mulf %94, %86 : vector<4x32xf32>
    %96 = vector.shape_cast %95 : vector<4x32xf32> to vector<1x4x32xf32>
    %97 = arith.index_cast %c1_i32 : i32 to index
    %c0_27 = arith.constant 0 : index
    %c0_28 = arith.constant 0 : index
    %98 = vector.load %arg8[%97, %c0_27, %c0_28] : memref<8x4x64xf32, #tpu.memory_space<vmem>>, vector<1x4x32xf32>
    tpu.vector_store %arg8[%97, %c0_27, %c0_28], %96 {strides = array<i32>} : memref<8x4x64xf32, #tpu.memory_space<vmem>>, vector<1x4x32xf32>,
    %c2_i32 = arith.constant 2 : i32
    %99 = arith.index_cast %c2_i32 : i32 to index
    %c0_29 = arith.constant 0 : index
    %c0_30 = arith.constant 0 : index
    %100 = vector.load %arg2[%99, %c0_29, %c0_30] : memref<8x4x96xf32, #tpu.memory_space<vmem>>, vector<1x4x96xf32>
    %101 = vector.shape_cast %100 : vector<1x4x96xf32> to vector<4x96xf32>
    %102 = arith.index_cast %c2_i32 : i32 to index
    %c0_31 = arith.constant 0 : index
    %c0_32 = arith.constant 0 : index
    %103 = vector.load %arg1[%102, %c0_31, %c0_32] : memref<8x4x1xf32, #tpu.memory_space<vmem>>, vector<1x4x1xf32>
    %104 = vector.shape_cast %103 : vector<1x4x1xf32> to vector<4x1xf32>
    %c0_33 = arith.constant 0 : index
    %c0_34 = arith.constant 0 : index
    %105 = vector.load %arg4[%c0_33, %c0_34] : memref<32x96xf32, #tpu.memory_space<vmem>>, vector<32x96xf32>
    %cst_35 = arith.constant dense<0.000000e+00> : vector<4x96xf32>
    %106 = tpu.matmul %93, %105, %cst_35 {dimension_numbers = #tpu.dot_dimension_numbers<[1], [0], [0], [1], [0, 0, 1, 1], [], []>} : vector<4x32xf32>, vector<32x96xf32>, vector<4x96xf32> -> vector<4x96xf32>
    %c0_36 = arith.constant 0 : index
    %c0_37 = arith.constant 0 : index
    %107 = vector.load %arg6[%c0_36, %c0_37] : memref<1x96xf32, #tpu.memory_space<vmem>>, vector<1x96xf32>
    %108 = vector.broadcast %107 : vector<1x96xf32> to vector<4x96xf32>
    %109 = arith.addf %106, %108 : vector<4x96xf32>
    %110 = vector.extract_strided_slice %101 {offsets = [0, 0], sizes = [4, 32], strides = [1, 1]} : vector<4x96xf32> to vector<4x32xf32>
    %111 = vector.extract_strided_slice %109 {offsets = [0, 0], sizes = [4, 32], strides = [1, 1]} : vector<4x96xf32> to vector<4x32xf32>
    %112 = arith.addf %110, %111 : vector<4x32xf32>
    %113 = arith.negf %112 : vector<4x32xf32>
    %114 = math.exp %113 : vector<4x32xf32>
    %cst_38 = arith.constant 1.000000e+00 : f32
    %115 = vector.broadcast %cst_38 : f32 to vector<4x32xf32>
    %116 = arith.addf %115, %114 : vector<4x32xf32>
    %117 = arith.divf %115, %116 : vector<4x32xf32>
    %118 = vector.extract_strided_slice %101 {offsets = [0, 32], sizes = [4, 32], strides = [1, 1]} : vector<4x96xf32> to vector<4x32xf32>
    %119 = vector.extract_strided_slice %109 {offsets = [0, 32], sizes = [4, 32], strides = [1, 1]} : vector<4x96xf32> to vector<4x32xf32>
    %120 = arith.addf %118, %119 : vector<4x32xf32>
    %121 = arith.negf %120 : vector<4x32xf32>
    %122 = math.exp %121 : vector<4x32xf32>
    %cst_39 = arith.constant 1.000000e+00 : f32
    %123 = vector.broadcast %cst_39 : f32 to vector<4x32xf32>
    %124 = arith.addf %123, %122 : vector<4x32xf32>
    %125 = arith.divf %123, %124 : vector<4x32xf32>
    %126 = vector.extract_strided_slice %101 {offsets = [0, 64], sizes = [4, 32], strides = [1, 1]} : vector<4x96xf32> to vector<4x32xf32>
    %127 = vector.extract_strided_slice %109 {offsets = [0, 64], sizes = [4, 32], strides = [1, 1]} : vector<4x96xf32> to vector<4x32xf32>
    %128 = arith.mulf %117, %127 : vector<4x32xf32>
    %129 = arith.addf %126, %128 : vector<4x32xf32>
    %130 = math.tanh %129 : vector<4x32xf32>
    %cst_40 = arith.constant 1.000000e+00 : f32
    %131 = vector.broadcast %cst_40 : f32 to vector<4x32xf32>
    %132 = arith.subf %131, %125 : vector<4x32xf32>
    %133 = arith.mulf %132, %130 : vector<4x32xf32>
    %134 = arith.mulf %125, %93 : vector<4x32xf32>
    %135 = arith.addf %133, %134 : vector<4x32xf32>
    %136 = vector.broadcast %104 : vector<4x1xf32> to vector<4x32xf32>
    %137 = arith.mulf %136, %135 : vector<4x32xf32>
    %cst_41 = arith.constant 1.000000e+00 : f32
    %138 = vector.broadcast %cst_41 : f32 to vector<4x1xf32>
    %139 = arith.subf %138, %104 : vector<4x1xf32>
    %140 = vector.broadcast %139 : vector<4x1xf32> to vector<4x32xf32>
    %141 = arith.mulf %140, %93 : vector<4x32xf32>
    %142 = arith.addf %137, %141 : vector<4x32xf32>
    %143 = vector.broadcast %104 : vector<4x1xf32> to vector<4x32xf32>
    %144 = arith.mulf %143, %135 : vector<4x32xf32>
    %145 = vector.shape_cast %144 : vector<4x32xf32> to vector<1x4x32xf32>
    %146 = arith.index_cast %c2_i32 : i32 to index
    %c0_42 = arith.constant 0 : index
    %c0_43 = arith.constant 0 : index
    %147 = vector.load %arg8[%146, %c0_42, %c0_43] : memref<8x4x64xf32, #tpu.memory_space<vmem>>, vector<1x4x32xf32>
    tpu.vector_store %arg8[%146, %c0_42, %c0_43], %145 {strides = array<i32>} : memref<8x4x64xf32, #tpu.memory_space<vmem>>, vector<1x4x32xf32>,
    %c3_i32 = arith.constant 3 : i32
    %148 = arith.index_cast %c3_i32 : i32 to index
    %c0_44 = arith.constant 0 : index
    %c0_45 = arith.constant 0 : index
    %149 = vector.load %arg2[%148, %c0_44, %c0_45] : memref<8x4x96xf32, #tpu.memory_space<vmem>>, vector<1x4x96xf32>
    %150 = vector.shape_cast %149 : vector<1x4x96xf32> to vector<4x96xf32>
    %151 = arith.index_cast %c3_i32 : i32 to index
    %c0_46 = arith.constant 0 : index
    %c0_47 = arith.constant 0 : index
    %152 = vector.load %arg1[%151, %c0_46, %c0_47] : memref<8x4x1xf32, #tpu.memory_space<vmem>>, vector<1x4x1xf32>
    %153 = vector.shape_cast %152 : vector<1x4x1xf32> to vector<4x1xf32>
    %c0_48 = arith.constant 0 : index
    %c0_49 = arith.constant 0 : index
    %154 = vector.load %arg4[%c0_48, %c0_49] : memref<32x96xf32, #tpu.memory_space<vmem>>, vector<32x96xf32>
    %cst_50 = arith.constant dense<0.000000e+00> : vector<4x96xf32>
    %155 = tpu.matmul %142, %154, %cst_50 {dimension_numbers = #tpu.dot_dimension_numbers<[1], [0], [0], [1], [0, 0, 1, 1], [], []>} : vector<4x32xf32>, vector<32x96xf32>, vector<4x96xf32> -> vector<4x96xf32>
    %c0_51 = arith.constant 0 : index
    %c0_52 = arith.constant 0 : index
    %156 = vector.load %arg6[%c0_51, %c0_52] : memref<1x96xf32, #tpu.memory_space<vmem>>, vector<1x96xf32>
    %157 = vector.broadcast %156 : vector<1x96xf32> to vector<4x96xf32>
    %158 = arith.addf %155, %157 : vector<4x96xf32>
    %159 = vector.extract_strided_slice %150 {offsets = [0, 0], sizes = [4, 32], strides = [1, 1]} : vector<4x96xf32> to vector<4x32xf32>
    %160 = vector.extract_strided_slice %158 {offsets = [0, 0], sizes = [4, 32], strides = [1, 1]} : vector<4x96xf32> to vector<4x32xf32>
    %161 = arith.addf %159, %160 : vector<4x32xf32>
    %162 = arith.negf %161 : vector<4x32xf32>
    %163 = math.exp %162 : vector<4x32xf32>
    %cst_53 = arith.constant 1.000000e+00 : f32
    %164 = vector.broadcast %cst_53 : f32 to vector<4x32xf32>
    %165 = arith.addf %164, %163 : vector<4x32xf32>
    %166 = arith.divf %164, %165 : vector<4x32xf32>
    %167 = vector.extract_strided_slice %150 {offsets = [0, 32], sizes = [4, 32], strides = [1, 1]} : vector<4x96xf32> to vector<4x32xf32>
    %168 = vector.extract_strided_slice %158 {offsets = [0, 32], sizes = [4, 32], strides = [1, 1]} : vector<4x96xf32> to vector<4x32xf32>
    %169 = arith.addf %167, %168 : vector<4x32xf32>
    %170 = arith.negf %169 : vector<4x32xf32>
    %171 = math.exp %170 : vector<4x32xf32>
    %cst_54 = arith.constant 1.000000e+00 : f32
    %172 = vector.broadcast %cst_54 : f32 to vector<4x32xf32>
    %173 = arith.addf %172, %171 : vector<4x32xf32>
    %174 = arith.divf %172, %173 : vector<4x32xf32>
    %175 = vector.extract_strided_slice %150 {offsets = [0, 64], sizes = [4, 32], strides = [1, 1]} : vector<4x96xf32> to vector<4x32xf32>
    %176 = vector.extract_strided_slice %158 {offsets = [0, 64], sizes = [4, 32], strides = [1, 1]} : vector<4x96xf32> to vector<4x32xf32>
    %177 = arith.mulf %166, %176 : vector<4x32xf32>
    %178 = arith.addf %175, %177 : vector<4x32xf32>
    %179 = math.tanh %178 : vector<4x32xf32>
    %cst_55 = arith.constant 1.000000e+00 : f32
    %180 = vector.broadcast %cst_55 : f32 to vector<4x32xf32>
    %181 = arith.subf %180, %174 : vector<4x32xf32>
    %182 = arith.mulf %181, %179 : vector<4x32xf32>
    %183 = arith.mulf %174, %142 : vector<4x32xf32>
    %184 = arith.addf %182, %183 : vector<4x32xf32>
    %185 = vector.broadcast %153 : vector<4x1xf32> to vector<4x32xf32>
    %186 = arith.mulf %185, %184 : vector<4x32xf32>
    %cst_56 = arith.constant 1.000000e+00 : f32
    %187 = vector.broadcast %cst_56 : f32 to vector<4x1xf32>
    %188 = arith.subf %187, %153 : vector<4x1xf32>
    %189 = vector.broadcast %188 : vector<4x1xf32> to vector<4x32xf32>
    %190 = arith.mulf %189, %142 : vector<4x32xf32>
    %191 = arith.addf %186, %190 : vector<4x32xf32>
    %192 = vector.broadcast %153 : vector<4x1xf32> to vector<4x32xf32>
    %193 = arith.mulf %192, %184 : vector<4x32xf32>
    %194 = vector.shape_cast %193 : vector<4x32xf32> to vector<1x4x32xf32>
    %195 = arith.index_cast %c3_i32 : i32 to index
    %c0_57 = arith.constant 0 : index
    %c0_58 = arith.constant 0 : index
    %196 = vector.load %arg8[%195, %c0_57, %c0_58] : memref<8x4x64xf32, #tpu.memory_space<vmem>>, vector<1x4x32xf32>
    tpu.vector_store %arg8[%195, %c0_57, %c0_58], %194 {strides = array<i32>} : memref<8x4x64xf32, #tpu.memory_space<vmem>>, vector<1x4x32xf32>,
    %c4_i32 = arith.constant 4 : i32
    %197 = arith.index_cast %c4_i32 : i32 to index
    %c0_59 = arith.constant 0 : index
    %c0_60 = arith.constant 0 : index
    %198 = vector.load %arg2[%197, %c0_59, %c0_60] : memref<8x4x96xf32, #tpu.memory_space<vmem>>, vector<1x4x96xf32>
    %199 = vector.shape_cast %198 : vector<1x4x96xf32> to vector<4x96xf32>
    %200 = arith.index_cast %c4_i32 : i32 to index
    %c0_61 = arith.constant 0 : index
    %c0_62 = arith.constant 0 : index
    %201 = vector.load %arg1[%200, %c0_61, %c0_62] : memref<8x4x1xf32, #tpu.memory_space<vmem>>, vector<1x4x1xf32>
    %202 = vector.shape_cast %201 : vector<1x4x1xf32> to vector<4x1xf32>
    %c0_63 = arith.constant 0 : index
    %c0_64 = arith.constant 0 : index
    %203 = vector.load %arg4[%c0_63, %c0_64] : memref<32x96xf32, #tpu.memory_space<vmem>>, vector<32x96xf32>
    %cst_65 = arith.constant dense<0.000000e+00> : vector<4x96xf32>
    %204 = tpu.matmul %191, %203, %cst_65 {dimension_numbers = #tpu.dot_dimension_numbers<[1], [0], [0], [1], [0, 0, 1, 1], [], []>} : vector<4x32xf32>, vector<32x96xf32>, vector<4x96xf32> -> vector<4x96xf32>
    %c0_66 = arith.constant 0 : index
    %c0_67 = arith.constant 0 : index
    %205 = vector.load %arg6[%c0_66, %c0_67] : memref<1x96xf32, #tpu.memory_space<vmem>>, vector<1x96xf32>
    %206 = vector.broadcast %205 : vector<1x96xf32> to vector<4x96xf32>
    %207 = arith.addf %204, %206 : vector<4x96xf32>
    %208 = vector.extract_strided_slice %199 {offsets = [0, 0], sizes = [4, 32], strides = [1, 1]} : vector<4x96xf32> to vector<4x32xf32>
    %209 = vector.extract_strided_slice %207 {offsets = [0, 0], sizes = [4, 32], strides = [1, 1]} : vector<4x96xf32> to vector<4x32xf32>
    %210 = arith.addf %208, %209 : vector<4x32xf32>
    %211 = arith.negf %210 : vector<4x32xf32>
    %212 = math.exp %211 : vector<4x32xf32>
    %cst_68 = arith.constant 1.000000e+00 : f32
    %213 = vector.broadcast %cst_68 : f32 to vector<4x32xf32>
    %214 = arith.addf %213, %212 : vector<4x32xf32>
    %215 = arith.divf %213, %214 : vector<4x32xf32>
    %216 = vector.extract_strided_slice %199 {offsets = [0, 32], sizes = [4, 32], strides = [1, 1]} : vector<4x96xf32> to vector<4x32xf32>
    %217 = vector.extract_strided_slice %207 {offsets = [0, 32], sizes = [4, 32], strides = [1, 1]} : vector<4x96xf32> to vector<4x32xf32>
    %218 = arith.addf %216, %217 : vector<4x32xf32>
    %219 = arith.negf %218 : vector<4x32xf32>
    %220 = math.exp %219 : vector<4x32xf32>
    %cst_69 = arith.constant 1.000000e+00 : f32
    %221 = vector.broadcast %cst_69 : f32 to vector<4x32xf32>
    %222 = arith.addf %221, %220 : vector<4x32xf32>
    %223 = arith.divf %221, %222 : vector<4x32xf32>
    %224 = vector.extract_strided_slice %199 {offsets = [0, 64], sizes = [4, 32], strides = [1, 1]} : vector<4x96xf32> to vector<4x32xf32>
    %225 = vector.extract_strided_slice %207 {offsets = [0, 64], sizes = [4, 32], strides = [1, 1]} : vector<4x96xf32> to vector<4x32xf32>
    %226 = arith.mulf %215, %225 : vector<4x32xf32>
    %227 = arith.addf %224, %226 : vector<4x32xf32>
    %228 = math.tanh %227 : vector<4x32xf32>
    %cst_70 = arith.constant 1.000000e+00 : f32
    %229 = vector.broadcast %cst_70 : f32 to vector<4x32xf32>
    %230 = arith.subf %229, %223 : vector<4x32xf32>
    %231 = arith.mulf %230, %228 : vector<4x32xf32>
    %232 = arith.mulf %223, %191 : vector<4x32xf32>
    %233 = arith.addf %231, %232 : vector<4x32xf32>
    %234 = vector.broadcast %202 : vector<4x1xf32> to vector<4x32xf32>
    %235 = arith.mulf %234, %233 : vector<4x32xf32>
    %cst_71 = arith.constant 1.000000e+00 : f32
    %236 = vector.broadcast %cst_71 : f32 to vector<4x1xf32>
    %237 = arith.subf %236, %202 : vector<4x1xf32>
    %238 = vector.broadcast %237 : vector<4x1xf32> to vector<4x32xf32>
    %239 = arith.mulf %238, %191 : vector<4x32xf32>
    %240 = arith.addf %235, %239 : vector<4x32xf32>
    %241 = vector.broadcast %202 : vector<4x1xf32> to vector<4x32xf32>
    %242 = arith.mulf %241, %233 : vector<4x32xf32>
    %243 = vector.shape_cast %242 : vector<4x32xf32> to vector<1x4x32xf32>
    %244 = arith.index_cast %c4_i32 : i32 to index
    %c0_72 = arith.constant 0 : index
    %c0_73 = arith.constant 0 : index
    %245 = vector.load %arg8[%244, %c0_72, %c0_73] : memref<8x4x64xf32, #tpu.memory_space<vmem>>, vector<1x4x32xf32>
    tpu.vector_store %arg8[%244, %c0_72, %c0_73], %243 {strides = array<i32>} : memref<8x4x64xf32, #tpu.memory_space<vmem>>, vector<1x4x32xf32>,
    %c5_i32 = arith.constant 5 : i32
    %246 = arith.index_cast %c5_i32 : i32 to index
    %c0_74 = arith.constant 0 : index
    %c0_75 = arith.constant 0 : index
    %247 = vector.load %arg2[%246, %c0_74, %c0_75] : memref<8x4x96xf32, #tpu.memory_space<vmem>>, vector<1x4x96xf32>
    %248 = vector.shape_cast %247 : vector<1x4x96xf32> to vector<4x96xf32>
    %249 = arith.index_cast %c5_i32 : i32 to index
    %c0_76 = arith.constant 0 : index
    %c0_77 = arith.constant 0 : index
    %250 = vector.load %arg1[%249, %c0_76, %c0_77] : memref<8x4x1xf32, #tpu.memory_space<vmem>>, vector<1x4x1xf32>
    %251 = vector.shape_cast %250 : vector<1x4x1xf32> to vector<4x1xf32>
    %c0_78 = arith.constant 0 : index
    %c0_79 = arith.constant 0 : index
    %252 = vector.load %arg4[%c0_78, %c0_79] : memref<32x96xf32, #tpu.memory_space<vmem>>, vector<32x96xf32>
    %cst_80 = arith.constant dense<0.000000e+00> : vector<4x96xf32>
    %253 = tpu.matmul %240, %252, %cst_80 {dimension_numbers = #tpu.dot_dimension_numbers<[1], [0], [0], [1], [0, 0, 1, 1], [], []>} : vector<4x32xf32>, vector<32x96xf32>, vector<4x96xf32> -> vector<4x96xf32>
    %c0_81 = arith.constant 0 : index
    %c0_82 = arith.constant 0 : index
    %254 = vector.load %arg6[%c0_81, %c0_82] : memref<1x96xf32, #tpu.memory_space<vmem>>, vector<1x96xf32>
    %255 = vector.broadcast %254 : vector<1x96xf32> to vector<4x96xf32>
    %256 = arith.addf %253, %255 : vector<4x96xf32>
    %257 = vector.extract_strided_slice %248 {offsets = [0, 0], sizes = [4, 32], strides = [1, 1]} : vector<4x96xf32> to vector<4x32xf32>
    %258 = vector.extract_strided_slice %256 {offsets = [0, 0], sizes = [4, 32], strides = [1, 1]} : vector<4x96xf32> to vector<4x32xf32>
    %259 = arith.addf %257, %258 : vector<4x32xf32>
    %260 = arith.negf %259 : vector<4x32xf32>
    %261 = math.exp %260 : vector<4x32xf32>
    %cst_83 = arith.constant 1.000000e+00 : f32
    %262 = vector.broadcast %cst_83 : f32 to vector<4x32xf32>
    %263 = arith.addf %262, %261 : vector<4x32xf32>
    %264 = arith.divf %262, %263 : vector<4x32xf32>
    %265 = vector.extract_strided_slice %248 {offsets = [0, 32], sizes = [4, 32], strides = [1, 1]} : vector<4x96xf32> to vector<4x32xf32>
    %266 = vector.extract_strided_slice %256 {offsets = [0, 32], sizes = [4, 32], strides = [1, 1]} : vector<4x96xf32> to vector<4x32xf32>
    %267 = arith.addf %265, %266 : vector<4x32xf32>
    %268 = arith.negf %267 : vector<4x32xf32>
    %269 = math.exp %268 : vector<4x32xf32>
    %cst_84 = arith.constant 1.000000e+00 : f32
    %270 = vector.broadcast %cst_84 : f32 to vector<4x32xf32>
    %271 = arith.addf %270, %269 : vector<4x32xf32>
    %272 = arith.divf %270, %271 : vector<4x32xf32>
    %273 = vector.extract_strided_slice %248 {offsets = [0, 64], sizes = [4, 32], strides = [1, 1]} : vector<4x96xf32> to vector<4x32xf32>
    %274 = vector.extract_strided_slice %256 {offsets = [0, 64], sizes = [4, 32], strides = [1, 1]} : vector<4x96xf32> to vector<4x32xf32>
    %275 = arith.mulf %264, %274 : vector<4x32xf32>
    %276 = arith.addf %273, %275 : vector<4x32xf32>
    %277 = math.tanh %276 : vector<4x32xf32>
    %cst_85 = arith.constant 1.000000e+00 : f32
    %278 = vector.broadcast %cst_85 : f32 to vector<4x32xf32>
    %279 = arith.subf %278, %272 : vector<4x32xf32>
    %280 = arith.mulf %279, %277 : vector<4x32xf32>
    %281 = arith.mulf %272, %240 : vector<4x32xf32>
    %282 = arith.addf %280, %281 : vector<4x32xf32>
    %283 = vector.broadcast %251 : vector<4x1xf32> to vector<4x32xf32>
    %284 = arith.mulf %283, %282 : vector<4x32xf32>
    %cst_86 = arith.constant 1.000000e+00 : f32
    %285 = vector.broadcast %cst_86 : f32 to vector<4x1xf32>
    %286 = arith.subf %285, %251 : vector<4x1xf32>
    %287 = vector.broadcast %286 : vector<4x1xf32> to vector<4x32xf32>
    %288 = arith.mulf %287, %240 : vector<4x32xf32>
    %289 = arith.addf %284, %288 : vector<4x32xf32>
    %290 = vector.broadcast %251 : vector<4x1xf32> to vector<4x32xf32>
    %291 = arith.mulf %290, %282 : vector<4x32xf32>
    %292 = vector.shape_cast %291 : vector<4x32xf32> to vector<1x4x32xf32>
    %293 = arith.index_cast %c5_i32 : i32 to index
    %c0_87 = arith.constant 0 : index
    %c0_88 = arith.constant 0 : index
    %294 = vector.load %arg8[%293, %c0_87, %c0_88] : memref<8x4x64xf32, #tpu.memory_space<vmem>>, vector<1x4x32xf32>
    tpu.vector_store %arg8[%293, %c0_87, %c0_88], %292 {strides = array<i32>} : memref<8x4x64xf32, #tpu.memory_space<vmem>>, vector<1x4x32xf32>,
    %c6_i32 = arith.constant 6 : i32
    %295 = arith.index_cast %c6_i32 : i32 to index
    %c0_89 = arith.constant 0 : index
    %c0_90 = arith.constant 0 : index
    %296 = vector.load %arg2[%295, %c0_89, %c0_90] : memref<8x4x96xf32, #tpu.memory_space<vmem>>, vector<1x4x96xf32>
    %297 = vector.shape_cast %296 : vector<1x4x96xf32> to vector<4x96xf32>
    %298 = arith.index_cast %c6_i32 : i32 to index
    %c0_91 = arith.constant 0 : index
    %c0_92 = arith.constant 0 : index
    %299 = vector.load %arg1[%298, %c0_91, %c0_92] : memref<8x4x1xf32, #tpu.memory_space<vmem>>, vector<1x4x1xf32>
    %300 = vector.shape_cast %299 : vector<1x4x1xf32> to vector<4x1xf32>
    %c0_93 = arith.constant 0 : index
    %c0_94 = arith.constant 0 : index
    %301 = vector.load %arg4[%c0_93, %c0_94] : memref<32x96xf32, #tpu.memory_space<vmem>>, vector<32x96xf32>
    %cst_95 = arith.constant dense<0.000000e+00> : vector<4x96xf32>
    %302 = tpu.matmul %289, %301, %cst_95 {dimension_numbers = #tpu.dot_dimension_numbers<[1], [0], [0], [1], [0, 0, 1, 1], [], []>} : vector<4x32xf32>, vector<32x96xf32>, vector<4x96xf32> -> vector<4x96xf32>
    %c0_96 = arith.constant 0 : index
    %c0_97 = arith.constant 0 : index
    %303 = vector.load %arg6[%c0_96, %c0_97] : memref<1x96xf32, #tpu.memory_space<vmem>>, vector<1x96xf32>
    %304 = vector.broadcast %303 : vector<1x96xf32> to vector<4x96xf32>
    %305 = arith.addf %302, %304 : vector<4x96xf32>
    %306 = vector.extract_strided_slice %297 {offsets = [0, 0], sizes = [4, 32], strides = [1, 1]} : vector<4x96xf32> to vector<4x32xf32>
    %307 = vector.extract_strided_slice %305 {offsets = [0, 0], sizes = [4, 32], strides = [1, 1]} : vector<4x96xf32> to vector<4x32xf32>
    %308 = arith.addf %306, %307 : vector<4x32xf32>
    %309 = arith.negf %308 : vector<4x32xf32>
    %310 = math.exp %309 : vector<4x32xf32>
    %cst_98 = arith.constant 1.000000e+00 : f32
    %311 = vector.broadcast %cst_98 : f32 to vector<4x32xf32>
    %312 = arith.addf %311, %310 : vector<4x32xf32>
    %313 = arith.divf %311, %312 : vector<4x32xf32>
    %314 = vector.extract_strided_slice %297 {offsets = [0, 32], sizes = [4, 32], strides = [1, 1]} : vector<4x96xf32> to vector<4x32xf32>
    %315 = vector.extract_strided_slice %305 {offsets = [0, 32], sizes = [4, 32], strides = [1, 1]} : vector<4x96xf32> to vector<4x32xf32>
    %316 = arith.addf %314, %315 : vector<4x32xf32>
    %317 = arith.negf %316 : vector<4x32xf32>
    %318 = math.exp %317 : vector<4x32xf32>
    %cst_99 = arith.constant 1.000000e+00 : f32
    %319 = vector.broadcast %cst_99 : f32 to vector<4x32xf32>
    %320 = arith.addf %319, %318 : vector<4x32xf32>
    %321 = arith.divf %319, %320 : vector<4x32xf32>
    %322 = vector.extract_strided_slice %297 {offsets = [0, 64], sizes = [4, 32], strides = [1, 1]} : vector<4x96xf32> to vector<4x32xf32>
    %323 = vector.extract_strided_slice %305 {offsets = [0, 64], sizes = [4, 32], strides = [1, 1]} : vector<4x96xf32> to vector<4x32xf32>
    %324 = arith.mulf %313, %323 : vector<4x32xf32>
    %325 = arith.addf %322, %324 : vector<4x32xf32>
    %326 = math.tanh %325 : vector<4x32xf32>
    %cst_100 = arith.constant 1.000000e+00 : f32
    %327 = vector.broadcast %cst_100 : f32 to vector<4x32xf32>
    %328 = arith.subf %327, %321 : vector<4x32xf32>
    %329 = arith.mulf %328, %326 : vector<4x32xf32>
    %330 = arith.mulf %321, %289 : vector<4x32xf32>
    %331 = arith.addf %329, %330 : vector<4x32xf32>
    %332 = vector.broadcast %300 : vector<4x1xf32> to vector<4x32xf32>
    %333 = arith.mulf %332, %331 : vector<4x32xf32>
    %cst_101 = arith.constant 1.000000e+00 : f32
    %334 = vector.broadcast %cst_101 : f32 to vector<4x1xf32>
    %335 = arith.subf %334, %300 : vector<4x1xf32>
    %336 = vector.broadcast %335 : vector<4x1xf32> to vector<4x32xf32>
    %337 = arith.mulf %336, %289 : vector<4x32xf32>
    %338 = arith.addf %333, %337 : vector<4x32xf32>
    %339 = vector.broadcast %300 : vector<4x1xf32> to vector<4x32xf32>
    %340 = arith.mulf %339, %331 : vector<4x32xf32>
    %341 = vector.shape_cast %340 : vector<4x32xf32> to vector<1x4x32xf32>
    %342 = arith.index_cast %c6_i32 : i32 to index
    %c0_102 = arith.constant 0 : index
    %c0_103 = arith.constant 0 : index
    %343 = vector.load %arg8[%342, %c0_102, %c0_103] : memref<8x4x64xf32, #tpu.memory_space<vmem>>, vector<1x4x32xf32>
    tpu.vector_store %arg8[%342, %c0_102, %c0_103], %341 {strides = array<i32>} : memref<8x4x64xf32, #tpu.memory_space<vmem>>, vector<1x4x32xf32>,
    %c7_i32 = arith.constant 7 : i32
    %344 = arith.index_cast %c7_i32 : i32 to index
    %c0_104 = arith.constant 0 : index
    %c0_105 = arith.constant 0 : index
    %345 = vector.load %arg2[%344, %c0_104, %c0_105] : memref<8x4x96xf32, #tpu.memory_space<vmem>>, vector<1x4x96xf32>
    %346 = vector.shape_cast %345 : vector<1x4x96xf32> to vector<4x96xf32>
    %347 = arith.index_cast %c7_i32 : i32 to index
    %c0_106 = arith.constant 0 : index
    %c0_107 = arith.constant 0 : index
    %348 = vector.load %arg1[%347, %c0_106, %c0_107] : memref<8x4x1xf32, #tpu.memory_space<vmem>>, vector<1x4x1xf32>
    %349 = vector.shape_cast %348 : vector<1x4x1xf32> to vector<4x1xf32>
    %c0_108 = arith.constant 0 : index
    %c0_109 = arith.constant 0 : index
    %350 = vector.load %arg4[%c0_108, %c0_109] : memref<32x96xf32, #tpu.memory_space<vmem>>, vector<32x96xf32>
    %cst_110 = arith.constant dense<0.000000e+00> : vector<4x96xf32>
    %351 = tpu.matmul %338, %350, %cst_110 {dimension_numbers = #tpu.dot_dimension_numbers<[1], [0], [0], [1], [0, 0, 1, 1], [], []>} : vector<4x32xf32>, vector<32x96xf32>, vector<4x96xf32> -> vector<4x96xf32>
    %c0_111 = arith.constant 0 : index
    %c0_112 = arith.constant 0 : index
    %352 = vector.load %arg6[%c0_111, %c0_112] : memref<1x96xf32, #tpu.memory_space<vmem>>, vector<1x96xf32>
    %353 = vector.broadcast %352 : vector<1x96xf32> to vector<4x96xf32>
    %354 = arith.addf %351, %353 : vector<4x96xf32>
    %355 = vector.extract_strided_slice %346 {offsets = [0, 0], sizes = [4, 32], strides = [1, 1]} : vector<4x96xf32> to vector<4x32xf32>
    %356 = vector.extract_strided_slice %354 {offsets = [0, 0], sizes = [4, 32], strides = [1, 1]} : vector<4x96xf32> to vector<4x32xf32>
    %357 = arith.addf %355, %356 : vector<4x32xf32>
    %358 = arith.negf %357 : vector<4x32xf32>
    %359 = math.exp %358 : vector<4x32xf32>
    %cst_113 = arith.constant 1.000000e+00 : f32
    %360 = vector.broadcast %cst_113 : f32 to vector<4x32xf32>
    %361 = arith.addf %360, %359 : vector<4x32xf32>
    %362 = arith.divf %360, %361 : vector<4x32xf32>
    %363 = vector.extract_strided_slice %346 {offsets = [0, 32], sizes = [4, 32], strides = [1, 1]} : vector<4x96xf32> to vector<4x32xf32>
    %364 = vector.extract_strided_slice %354 {offsets = [0, 32], sizes = [4, 32], strides = [1, 1]} : vector<4x96xf32> to vector<4x32xf32>
    %365 = arith.addf %363, %364 : vector<4x32xf32>
    %366 = arith.negf %365 : vector<4x32xf32>
    %367 = math.exp %366 : vector<4x32xf32>
    %cst_114 = arith.constant 1.000000e+00 : f32
    %368 = vector.broadcast %cst_114 : f32 to vector<4x32xf32>
    %369 = arith.addf %368, %367 : vector<4x32xf32>
    %370 = arith.divf %368, %369 : vector<4x32xf32>
    %371 = vector.extract_strided_slice %346 {offsets = [0, 64], sizes = [4, 32], strides = [1, 1]} : vector<4x96xf32> to vector<4x32xf32>
    %372 = vector.extract_strided_slice %354 {offsets = [0, 64], sizes = [4, 32], strides = [1, 1]} : vector<4x96xf32> to vector<4x32xf32>
    %373 = arith.mulf %362, %372 : vector<4x32xf32>
    %374 = arith.addf %371, %373 : vector<4x32xf32>
    %375 = math.tanh %374 : vector<4x32xf32>
    %cst_115 = arith.constant 1.000000e+00 : f32
    %376 = vector.broadcast %cst_115 : f32 to vector<4x32xf32>
    %377 = arith.subf %376, %370 : vector<4x32xf32>
    %378 = arith.mulf %377, %375 : vector<4x32xf32>
    %379 = arith.mulf %370, %338 : vector<4x32xf32>
    %380 = arith.addf %378, %379 : vector<4x32xf32>
    %381 = vector.broadcast %349 : vector<4x1xf32> to vector<4x32xf32>
    %382 = arith.mulf %381, %380 : vector<4x32xf32>
    %cst_116 = arith.constant 1.000000e+00 : f32
    %383 = vector.broadcast %cst_116 : f32 to vector<4x1xf32>
    %384 = arith.subf %383, %349 : vector<4x1xf32>
    %385 = vector.broadcast %384 : vector<4x1xf32> to vector<4x32xf32>
    %386 = arith.mulf %385, %338 : vector<4x32xf32>
    %387 = arith.addf %382, %386 : vector<4x32xf32>
    %388 = vector.broadcast %349 : vector<4x1xf32> to vector<4x32xf32>
    %389 = arith.mulf %388, %380 : vector<4x32xf32>
    %390 = vector.shape_cast %389 : vector<4x32xf32> to vector<1x4x32xf32>
    %391 = arith.index_cast %c7_i32 : i32 to index
    %c0_117 = arith.constant 0 : index
    %c0_118 = arith.constant 0 : index
    %392 = vector.load %arg8[%391, %c0_117, %c0_118] : memref<8x4x64xf32, #tpu.memory_space<vmem>>, vector<1x4x32xf32>
    tpu.vector_store %arg8[%391, %c0_117, %c0_118], %390 {strides = array<i32>} : memref<8x4x64xf32, #tpu.memory_space<vmem>>, vector<1x4x32xf32>,
    %c8_i32 = arith.constant 8 : i32
    %c0_i32_119 = arith.constant 0 : i32
    %c7_i32_120 = arith.constant 7 : i32
    %393 = arith.subi %c7_i32_120, %c0_i32_119 : i32
    %394 = arith.index_cast %393 : i32 to index
    %c0_121 = arith.constant 0 : index
    %c0_122 = arith.constant 0 : index
    %395 = vector.load %arg3[%394, %c0_121, %c0_122] : memref<8x4x96xf32, #tpu.memory_space<vmem>>, vector<1x4x96xf32>
    %396 = vector.shape_cast %395 : vector<1x4x96xf32> to vector<4x96xf32>
    %397 = arith.index_cast %393 : i32 to index
    %c0_123 = arith.constant 0 : index
    %c0_124 = arith.constant 0 : index
    %398 = vector.load %arg1[%397, %c0_123, %c0_124] : memref<8x4x1xf32, #tpu.memory_space<vmem>>, vector<1x4x1xf32>
    %399 = vector.shape_cast %398 : vector<1x4x1xf32> to vector<4x1xf32>
    %c0_125 = arith.constant 0 : index
    %c0_126 = arith.constant 0 : index
    %400 = vector.load %arg5[%c0_125, %c0_126] : memref<32x96xf32, #tpu.memory_space<vmem>>, vector<32x96xf32>
    %cst_127 = arith.constant dense<0.000000e+00> : vector<4x96xf32>
    %401 = tpu.matmul %0, %400, %cst_127 {dimension_numbers = #tpu.dot_dimension_numbers<[1], [0], [0], [1], [0, 0, 1, 1], [], []>} : vector<4x32xf32>, vector<32x96xf32>, vector<4x96xf32> -> vector<4x96xf32>
    %c0_128 = arith.constant 0 : index
    %c0_129 = arith.constant 0 : index
    %402 = vector.load %arg7[%c0_128, %c0_129] : memref<1x96xf32, #tpu.memory_space<vmem>>, vector<1x96xf32>
    %403 = vector.broadcast %402 : vector<1x96xf32> to vector<4x96xf32>
    %404 = arith.addf %401, %403 : vector<4x96xf32>
    %405 = vector.extract_strided_slice %396 {offsets = [0, 0], sizes = [4, 32], strides = [1, 1]} : vector<4x96xf32> to vector<4x32xf32>
    %406 = vector.extract_strided_slice %404 {offsets = [0, 0], sizes = [4, 32], strides = [1, 1]} : vector<4x96xf32> to vector<4x32xf32>
    %407 = arith.addf %405, %406 : vector<4x32xf32>
    %408 = arith.negf %407 : vector<4x32xf32>
    %409 = math.exp %408 : vector<4x32xf32>
    %cst_130 = arith.constant 1.000000e+00 : f32
    %410 = vector.broadcast %cst_130 : f32 to vector<4x32xf32>
    %411 = arith.addf %410, %409 : vector<4x32xf32>
    %412 = arith.divf %410, %411 : vector<4x32xf32>
    %413 = vector.extract_strided_slice %396 {offsets = [0, 32], sizes = [4, 32], strides = [1, 1]} : vector<4x96xf32> to vector<4x32xf32>
    %414 = vector.extract_strided_slice %404 {offsets = [0, 32], sizes = [4, 32], strides = [1, 1]} : vector<4x96xf32> to vector<4x32xf32>
    %415 = arith.addf %413, %414 : vector<4x32xf32>
    %416 = arith.negf %415 : vector<4x32xf32>
    %417 = math.exp %416 : vector<4x32xf32>
    %cst_131 = arith.constant 1.000000e+00 : f32
    %418 = vector.broadcast %cst_131 : f32 to vector<4x32xf32>
    %419 = arith.addf %418, %417 : vector<4x32xf32>
    %420 = arith.divf %418, %419 : vector<4x32xf32>
    %421 = vector.extract_strided_slice %396 {offsets = [0, 64], sizes = [4, 32], strides = [1, 1]} : vector<4x96xf32> to vector<4x32xf32>
    %422 = vector.extract_strided_slice %404 {offsets = [0, 64], sizes = [4, 32], strides = [1, 1]} : vector<4x96xf32> to vector<4x32xf32>
    %423 = arith.mulf %412, %422 : vector<4x32xf32>
    %424 = arith.addf %421, %423 : vector<4x32xf32>
    %425 = math.tanh %424 : vector<4x32xf32>
    %cst_132 = arith.constant 1.000000e+00 : f32
    %426 = vector.broadcast %cst_132 : f32 to vector<4x32xf32>
    %427 = arith.subf %426, %420 : vector<4x32xf32>
    %428 = arith.mulf %427, %425 : vector<4x32xf32>
    %429 = arith.mulf %420, %0 : vector<4x32xf32>
    %430 = arith.addf %428, %429 : vector<4x32xf32>
    %431 = vector.broadcast %399 : vector<4x1xf32> to vector<4x32xf32>
    %432 = arith.mulf %431, %430 : vector<4x32xf32>
    %cst_133 = arith.constant 1.000000e+00 : f32
    %433 = vector.broadcast %cst_133 : f32 to vector<4x1xf32>
    %434 = arith.subf %433, %399 : vector<4x1xf32>
    %435 = vector.broadcast %434 : vector<4x1xf32> to vector<4x32xf32>
    %436 = arith.mulf %435, %0 : vector<4x32xf32>
    %437 = arith.addf %432, %436 : vector<4x32xf32>
    %438 = vector.broadcast %399 : vector<4x1xf32> to vector<4x32xf32>
    %439 = arith.mulf %438, %430 : vector<4x32xf32>
    %440 = vector.shape_cast %439 : vector<4x32xf32> to vector<1x4x32xf32>
    %441 = arith.index_cast %393 : i32 to index
    %c0_134 = arith.constant 0 : index
    %c32 = arith.constant 32 : index
    %442 = vector.load %arg8[%441, %c0_134, %c32] : memref<8x4x64xf32, #tpu.memory_space<vmem>>, vector<1x4x32xf32>
    tpu.vector_store %arg8[%441, %c0_134, %c32], %440 {strides = array<i32>} : memref<8x4x64xf32, #tpu.memory_space<vmem>>, vector<1x4x32xf32>,
    %c1_i32_135 = arith.constant 1 : i32
    %c7_i32_136 = arith.constant 7 : i32
    %443 = arith.subi %c7_i32_136, %c1_i32_135 : i32
    %444 = arith.index_cast %443 : i32 to index
    %c0_137 = arith.constant 0 : index
    %c0_138 = arith.constant 0 : index
    %445 = vector.load %arg3[%444, %c0_137, %c0_138] : memref<8x4x96xf32, #tpu.memory_space<vmem>>, vector<1x4x96xf32>
    %446 = vector.shape_cast %445 : vector<1x4x96xf32> to vector<4x96xf32>
    %447 = arith.index_cast %443 : i32 to index
    %c0_139 = arith.constant 0 : index
    %c0_140 = arith.constant 0 : index
    %448 = vector.load %arg1[%447, %c0_139, %c0_140] : memref<8x4x1xf32, #tpu.memory_space<vmem>>, vector<1x4x1xf32>
    %449 = vector.shape_cast %448 : vector<1x4x1xf32> to vector<4x1xf32>
    %c0_141 = arith.constant 0 : index
    %c0_142 = arith.constant 0 : index
    %450 = vector.load %arg5[%c0_141, %c0_142] : memref<32x96xf32, #tpu.memory_space<vmem>>, vector<32x96xf32>
    %cst_143 = arith.constant dense<0.000000e+00> : vector<4x96xf32>
    %451 = tpu.matmul %437, %450, %cst_143 {dimension_numbers = #tpu.dot_dimension_numbers<[1], [0], [0], [1], [0, 0, 1, 1], [], []>} : vector<4x32xf32>, vector<32x96xf32>, vector<4x96xf32> -> vector<4x96xf32>
    %c0_144 = arith.constant 0 : index
    %c0_145 = arith.constant 0 : index
    %452 = vector.load %arg7[%c0_144, %c0_145] : memref<1x96xf32, #tpu.memory_space<vmem>>, vector<1x96xf32>
    %453 = vector.broadcast %452 : vector<1x96xf32> to vector<4x96xf32>
    %454 = arith.addf %451, %453 : vector<4x96xf32>
    %455 = vector.extract_strided_slice %446 {offsets = [0, 0], sizes = [4, 32], strides = [1, 1]} : vector<4x96xf32> to vector<4x32xf32>
    %456 = vector.extract_strided_slice %454 {offsets = [0, 0], sizes = [4, 32], strides = [1, 1]} : vector<4x96xf32> to vector<4x32xf32>
    %457 = arith.addf %455, %456 : vector<4x32xf32>
    %458 = arith.negf %457 : vector<4x32xf32>
    %459 = math.exp %458 : vector<4x32xf32>
    %cst_146 = arith.constant 1.000000e+00 : f32
    %460 = vector.broadcast %cst_146 : f32 to vector<4x32xf32>
    %461 = arith.addf %460, %459 : vector<4x32xf32>
    %462 = arith.divf %460, %461 : vector<4x32xf32>
    %463 = vector.extract_strided_slice %446 {offsets = [0, 32], sizes = [4, 32], strides = [1, 1]} : vector<4x96xf32> to vector<4x32xf32>
    %464 = vector.extract_strided_slice %454 {offsets = [0, 32], sizes = [4, 32], strides = [1, 1]} : vector<4x96xf32> to vector<4x32xf32>
    %465 = arith.addf %463, %464 : vector<4x32xf32>
    %466 = arith.negf %465 : vector<4x32xf32>
    %467 = math.exp %466 : vector<4x32xf32>
    %cst_147 = arith.constant 1.000000e+00 : f32
    %468 = vector.broadcast %cst_147 : f32 to vector<4x32xf32>
    %469 = arith.addf %468, %467 : vector<4x32xf32>
    %470 = arith.divf %468, %469 : vector<4x32xf32>
    %471 = vector.extract_strided_slice %446 {offsets = [0, 64], sizes = [4, 32], strides = [1, 1]} : vector<4x96xf32> to vector<4x32xf32>
    %472 = vector.extract_strided_slice %454 {offsets = [0, 64], sizes = [4, 32], strides = [1, 1]} : vector<4x96xf32> to vector<4x32xf32>
    %473 = arith.mulf %462, %472 : vector<4x32xf32>
    %474 = arith.addf %471, %473 : vector<4x32xf32>
    %475 = math.tanh %474 : vector<4x32xf32>
    %cst_148 = arith.constant 1.000000e+00 : f32
    %476 = vector.broadcast %cst_148 : f32 to vector<4x32xf32>
    %477 = arith.subf %476, %470 : vector<4x32xf32>
    %478 = arith.mulf %477, %475 : vector<4x32xf32>
    %479 = arith.mulf %470, %437 : vector<4x32xf32>
    %480 = arith.addf %478, %479 : vector<4x32xf32>
    %481 = vector.broadcast %449 : vector<4x1xf32> to vector<4x32xf32>
    %482 = arith.mulf %481, %480 : vector<4x32xf32>
    %cst_149 = arith.constant 1.000000e+00 : f32
    %483 = vector.broadcast %cst_149 : f32 to vector<4x1xf32>
    %484 = arith.subf %483, %449 : vector<4x1xf32>
    %485 = vector.broadcast %484 : vector<4x1xf32> to vector<4x32xf32>
    %486 = arith.mulf %485, %437 : vector<4x32xf32>
    %487 = arith.addf %482, %486 : vector<4x32xf32>
    %488 = vector.broadcast %449 : vector<4x1xf32> to vector<4x32xf32>
    %489 = arith.mulf %488, %480 : vector<4x32xf32>
    %490 = vector.shape_cast %489 : vector<4x32xf32> to vector<1x4x32xf32>
    %491 = arith.index_cast %443 : i32 to index
    %c0_150 = arith.constant 0 : index
    %c32_151 = arith.constant 32 : index
    %492 = vector.load %arg8[%491, %c0_150, %c32_151] : memref<8x4x64xf32, #tpu.memory_space<vmem>>, vector<1x4x32xf32>
    tpu.vector_store %arg8[%491, %c0_150, %c32_151], %490 {strides = array<i32>} : memref<8x4x64xf32, #tpu.memory_space<vmem>>, vector<1x4x32xf32>,
    %c2_i32_152 = arith.constant 2 : i32
    %c7_i32_153 = arith.constant 7 : i32
    %493 = arith.subi %c7_i32_153, %c2_i32_152 : i32
    %494 = arith.index_cast %493 : i32 to index
    %c0_154 = arith.constant 0 : index
    %c0_155 = arith.constant 0 : index
    %495 = vector.load %arg3[%494, %c0_154, %c0_155] : memref<8x4x96xf32, #tpu.memory_space<vmem>>, vector<1x4x96xf32>
    %496 = vector.shape_cast %495 : vector<1x4x96xf32> to vector<4x96xf32>
    %497 = arith.index_cast %493 : i32 to index
    %c0_156 = arith.constant 0 : index
    %c0_157 = arith.constant 0 : index
    %498 = vector.load %arg1[%497, %c0_156, %c0_157] : memref<8x4x1xf32, #tpu.memory_space<vmem>>, vector<1x4x1xf32>
    %499 = vector.shape_cast %498 : vector<1x4x1xf32> to vector<4x1xf32>
    %c0_158 = arith.constant 0 : index
    %c0_159 = arith.constant 0 : index
    %500 = vector.load %arg5[%c0_158, %c0_159] : memref<32x96xf32, #tpu.memory_space<vmem>>, vector<32x96xf32>
    %cst_160 = arith.constant dense<0.000000e+00> : vector<4x96xf32>
    %501 = tpu.matmul %487, %500, %cst_160 {dimension_numbers = #tpu.dot_dimension_numbers<[1], [0], [0], [1], [0, 0, 1, 1], [], []>} : vector<4x32xf32>, vector<32x96xf32>, vector<4x96xf32> -> vector<4x96xf32>
    %c0_161 = arith.constant 0 : index
    %c0_162 = arith.constant 0 : index
    %502 = vector.load %arg7[%c0_161, %c0_162] : memref<1x96xf32, #tpu.memory_space<vmem>>, vector<1x96xf32>
    %503 = vector.broadcast %502 : vector<1x96xf32> to vector<4x96xf32>
    %504 = arith.addf %501, %503 : vector<4x96xf32>
    %505 = vector.extract_strided_slice %496 {offsets = [0, 0], sizes = [4, 32], strides = [1, 1]} : vector<4x96xf32> to vector<4x32xf32>
    %506 = vector.extract_strided_slice %504 {offsets = [0, 0], sizes = [4, 32], strides = [1, 1]} : vector<4x96xf32> to vector<4x32xf32>
    %507 = arith.addf %505, %506 : vector<4x32xf32>
    %508 = arith.negf %507 : vector<4x32xf32>
    %509 = math.exp %508 : vector<4x32xf32>
    %cst_163 = arith.constant 1.000000e+00 : f32
    %510 = vector.broadcast %cst_163 : f32 to vector<4x32xf32>
    %511 = arith.addf %510, %509 : vector<4x32xf32>
    %512 = arith.divf %510, %511 : vector<4x32xf32>
    %513 = vector.extract_strided_slice %496 {offsets = [0, 32], sizes = [4, 32], strides = [1, 1]} : vector<4x96xf32> to vector<4x32xf32>
    %514 = vector.extract_strided_slice %504 {offsets = [0, 32], sizes = [4, 32], strides = [1, 1]} : vector<4x96xf32> to vector<4x32xf32>
    %515 = arith.addf %513, %514 : vector<4x32xf32>
    %516 = arith.negf %515 : vector<4x32xf32>
    %517 = math.exp %516 : vector<4x32xf32>
    %cst_164 = arith.constant 1.000000e+00 : f32
    %518 = vector.broadcast %cst_164 : f32 to vector<4x32xf32>
    %519 = arith.addf %518, %517 : vector<4x32xf32>
    %520 = arith.divf %518, %519 : vector<4x32xf32>
    %521 = vector.extract_strided_slice %496 {offsets = [0, 64], sizes = [4, 32], strides = [1, 1]} : vector<4x96xf32> to vector<4x32xf32>
    %522 = vector.extract_strided_slice %504 {offsets = [0, 64], sizes = [4, 32], strides = [1, 1]} : vector<4x96xf32> to vector<4x32xf32>
    %523 = arith.mulf %512, %522 : vector<4x32xf32>
    %524 = arith.addf %521, %523 : vector<4x32xf32>
    %525 = math.tanh %524 : vector<4x32xf32>
    %cst_165 = arith.constant 1.000000e+00 : f32
    %526 = vector.broadcast %cst_165 : f32 to vector<4x32xf32>
    %527 = arith.subf %526, %520 : vector<4x32xf32>
    %528 = arith.mulf %527, %525 : vector<4x32xf32>
    %529 = arith.mulf %520, %487 : vector<4x32xf32>
    %530 = arith.addf %528, %529 : vector<4x32xf32>
    %531 = vector.broadcast %499 : vector<4x1xf32> to vector<4x32xf32>
    %532 = arith.mulf %531, %530 : vector<4x32xf32>
    %cst_166 = arith.constant 1.000000e+00 : f32
    %533 = vector.broadcast %cst_166 : f32 to vector<4x1xf32>
    %534 = arith.subf %533, %499 : vector<4x1xf32>
    %535 = vector.broadcast %534 : vector<4x1xf32> to vector<4x32xf32>
    %536 = arith.mulf %535, %487 : vector<4x32xf32>
    %537 = arith.addf %532, %536 : vector<4x32xf32>
    %538 = vector.broadcast %499 : vector<4x1xf32> to vector<4x32xf32>
    %539 = arith.mulf %538, %530 : vector<4x32xf32>
    %540 = vector.shape_cast %539 : vector<4x32xf32> to vector<1x4x32xf32>
    %541 = arith.index_cast %493 : i32 to index
    %c0_167 = arith.constant 0 : index
    %c32_168 = arith.constant 32 : index
    %542 = vector.load %arg8[%541, %c0_167, %c32_168] : memref<8x4x64xf32, #tpu.memory_space<vmem>>, vector<1x4x32xf32>
    tpu.vector_store %arg8[%541, %c0_167, %c32_168], %540 {strides = array<i32>} : memref<8x4x64xf32, #tpu.memory_space<vmem>>, vector<1x4x32xf32>,
    %c3_i32_169 = arith.constant 3 : i32
    %c7_i32_170 = arith.constant 7 : i32
    %543 = arith.subi %c7_i32_170, %c3_i32_169 : i32
    %544 = arith.index_cast %543 : i32 to index
    %c0_171 = arith.constant 0 : index
    %c0_172 = arith.constant 0 : index
    %545 = vector.load %arg3[%544, %c0_171, %c0_172] : memref<8x4x96xf32, #tpu.memory_space<vmem>>, vector<1x4x96xf32>
    %546 = vector.shape_cast %545 : vector<1x4x96xf32> to vector<4x96xf32>
    %547 = arith.index_cast %543 : i32 to index
    %c0_173 = arith.constant 0 : index
    %c0_174 = arith.constant 0 : index
    %548 = vector.load %arg1[%547, %c0_173, %c0_174] : memref<8x4x1xf32, #tpu.memory_space<vmem>>, vector<1x4x1xf32>
    %549 = vector.shape_cast %548 : vector<1x4x1xf32> to vector<4x1xf32>
    %c0_175 = arith.constant 0 : index
    %c0_176 = arith.constant 0 : index
    %550 = vector.load %arg5[%c0_175, %c0_176] : memref<32x96xf32, #tpu.memory_space<vmem>>, vector<32x96xf32>
    %cst_177 = arith.constant dense<0.000000e+00> : vector<4x96xf32>
    %551 = tpu.matmul %537, %550, %cst_177 {dimension_numbers = #tpu.dot_dimension_numbers<[1], [0], [0], [1], [0, 0, 1, 1], [], []>} : vector<4x32xf32>, vector<32x96xf32>, vector<4x96xf32> -> vector<4x96xf32>
    %c0_178 = arith.constant 0 : index
    %c0_179 = arith.constant 0 : index
    %552 = vector.load %arg7[%c0_178, %c0_179] : memref<1x96xf32, #tpu.memory_space<vmem>>, vector<1x96xf32>
    %553 = vector.broadcast %552 : vector<1x96xf32> to vector<4x96xf32>
    %554 = arith.addf %551, %553 : vector<4x96xf32>
    %555 = vector.extract_strided_slice %546 {offsets = [0, 0], sizes = [4, 32], strides = [1, 1]} : vector<4x96xf32> to vector<4x32xf32>
    %556 = vector.extract_strided_slice %554 {offsets = [0, 0], sizes = [4, 32], strides = [1, 1]} : vector<4x96xf32> to vector<4x32xf32>
    %557 = arith.addf %555, %556 : vector<4x32xf32>
    %558 = arith.negf %557 : vector<4x32xf32>
    %559 = math.exp %558 : vector<4x32xf32>
    %cst_180 = arith.constant 1.000000e+00 : f32
    %560 = vector.broadcast %cst_180 : f32 to vector<4x32xf32>
    %561 = arith.addf %560, %559 : vector<4x32xf32>
    %562 = arith.divf %560, %561 : vector<4x32xf32>
    %563 = vector.extract_strided_slice %546 {offsets = [0, 32], sizes = [4, 32], strides = [1, 1]} : vector<4x96xf32> to vector<4x32xf32>
    %564 = vector.extract_strided_slice %554 {offsets = [0, 32], sizes = [4, 32], strides = [1, 1]} : vector<4x96xf32> to vector<4x32xf32>
    %565 = arith.addf %563, %564 : vector<4x32xf32>
    %566 = arith.negf %565 : vector<4x32xf32>
    %567 = math.exp %566 : vector<4x32xf32>
    %cst_181 = arith.constant 1.000000e+00 : f32
    %568 = vector.broadcast %cst_181 : f32 to vector<4x32xf32>
    %569 = arith.addf %568, %567 : vector<4x32xf32>
    %570 = arith.divf %568, %569 : vector<4x32xf32>
    %571 = vector.extract_strided_slice %546 {offsets = [0, 64], sizes = [4, 32], strides = [1, 1]} : vector<4x96xf32> to vector<4x32xf32>
    %572 = vector.extract_strided_slice %554 {offsets = [0, 64], sizes = [4, 32], strides = [1, 1]} : vector<4x96xf32> to vector<4x32xf32>
    %573 = arith.mulf %562, %572 : vector<4x32xf32>
    %574 = arith.addf %571, %573 : vector<4x32xf32>
    %575 = math.tanh %574 : vector<4x32xf32>
    %cst_182 = arith.constant 1.000000e+00 : f32
    %576 = vector.broadcast %cst_182 : f32 to vector<4x32xf32>
    %577 = arith.subf %576, %570 : vector<4x32xf32>
    %578 = arith.mulf %577, %575 : vector<4x32xf32>
    %579 = arith.mulf %570, %537 : vector<4x32xf32>
    %580 = arith.addf %578, %579 : vector<4x32xf32>
    %581 = vector.broadcast %549 : vector<4x1xf32> to vector<4x32xf32>
    %582 = arith.mulf %581, %580 : vector<4x32xf32>
    %cst_183 = arith.constant 1.000000e+00 : f32
    %583 = vector.broadcast %cst_183 : f32 to vector<4x1xf32>
    %584 = arith.subf %583, %549 : vector<4x1xf32>
    %585 = vector.broadcast %584 : vector<4x1xf32> to vector<4x32xf32>
    %586 = arith.mulf %585, %537 : vector<4x32xf32>
    %587 = arith.addf %582, %586 : vector<4x32xf32>
    %588 = vector.broadcast %549 : vector<4x1xf32> to vector<4x32xf32>
    %589 = arith.mulf %588, %580 : vector<4x32xf32>
    %590 = vector.shape_cast %589 : vector<4x32xf32> to vector<1x4x32xf32>
    %591 = arith.index_cast %543 : i32 to index
    %c0_184 = arith.constant 0 : index
    %c32_185 = arith.constant 32 : index
    %592 = vector.load %arg8[%591, %c0_184, %c32_185] : memref<8x4x64xf32, #tpu.memory_space<vmem>>, vector<1x4x32xf32>
    tpu.vector_store %arg8[%591, %c0_184, %c32_185], %590 {strides = array<i32>} : memref<8x4x64xf32, #tpu.memory_space<vmem>>, vector<1x4x32xf32>,
    %c4_i32_186 = arith.constant 4 : i32
    %c7_i32_187 = arith.constant 7 : i32
    %593 = arith.subi %c7_i32_187, %c4_i32_186 : i32
    %594 = arith.index_cast %593 : i32 to index
    %c0_188 = arith.constant 0 : index
    %c0_189 = arith.constant 0 : index
    %595 = vector.load %arg3[%594, %c0_188, %c0_189] : memref<8x4x96xf32, #tpu.memory_space<vmem>>, vector<1x4x96xf32>
    %596 = vector.shape_cast %595 : vector<1x4x96xf32> to vector<4x96xf32>
    %597 = arith.index_cast %593 : i32 to index
    %c0_190 = arith.constant 0 : index
    %c0_191 = arith.constant 0 : index
    %598 = vector.load %arg1[%597, %c0_190, %c0_191] : memref<8x4x1xf32, #tpu.memory_space<vmem>>, vector<1x4x1xf32>
    %599 = vector.shape_cast %598 : vector<1x4x1xf32> to vector<4x1xf32>
    %c0_192 = arith.constant 0 : index
    %c0_193 = arith.constant 0 : index
    %600 = vector.load %arg5[%c0_192, %c0_193] : memref<32x96xf32, #tpu.memory_space<vmem>>, vector<32x96xf32>
    %cst_194 = arith.constant dense<0.000000e+00> : vector<4x96xf32>
    %601 = tpu.matmul %587, %600, %cst_194 {dimension_numbers = #tpu.dot_dimension_numbers<[1], [0], [0], [1], [0, 0, 1, 1], [], []>} : vector<4x32xf32>, vector<32x96xf32>, vector<4x96xf32> -> vector<4x96xf32>
    %c0_195 = arith.constant 0 : index
    %c0_196 = arith.constant 0 : index
    %602 = vector.load %arg7[%c0_195, %c0_196] : memref<1x96xf32, #tpu.memory_space<vmem>>, vector<1x96xf32>
    %603 = vector.broadcast %602 : vector<1x96xf32> to vector<4x96xf32>
    %604 = arith.addf %601, %603 : vector<4x96xf32>
    %605 = vector.extract_strided_slice %596 {offsets = [0, 0], sizes = [4, 32], strides = [1, 1]} : vector<4x96xf32> to vector<4x32xf32>
    %606 = vector.extract_strided_slice %604 {offsets = [0, 0], sizes = [4, 32], strides = [1, 1]} : vector<4x96xf32> to vector<4x32xf32>
    %607 = arith.addf %605, %606 : vector<4x32xf32>
    %608 = arith.negf %607 : vector<4x32xf32>
    %609 = math.exp %608 : vector<4x32xf32>
    %cst_197 = arith.constant 1.000000e+00 : f32
    %610 = vector.broadcast %cst_197 : f32 to vector<4x32xf32>
    %611 = arith.addf %610, %609 : vector<4x32xf32>
    %612 = arith.divf %610, %611 : vector<4x32xf32>
    %613 = vector.extract_strided_slice %596 {offsets = [0, 32], sizes = [4, 32], strides = [1, 1]} : vector<4x96xf32> to vector<4x32xf32>
    %614 = vector.extract_strided_slice %604 {offsets = [0, 32], sizes = [4, 32], strides = [1, 1]} : vector<4x96xf32> to vector<4x32xf32>
    %615 = arith.addf %613, %614 : vector<4x32xf32>
    %616 = arith.negf %615 : vector<4x32xf32>
    %617 = math.exp %616 : vector<4x32xf32>
    %cst_198 = arith.constant 1.000000e+00 : f32
    %618 = vector.broadcast %cst_198 : f32 to vector<4x32xf32>
    %619 = arith.addf %618, %617 : vector<4x32xf32>
    %620 = arith.divf %618, %619 : vector<4x32xf32>
    %621 = vector.extract_strided_slice %596 {offsets = [0, 64], sizes = [4, 32], strides = [1, 1]} : vector<4x96xf32> to vector<4x32xf32>
    %622 = vector.extract_strided_slice %604 {offsets = [0, 64], sizes = [4, 32], strides = [1, 1]} : vector<4x96xf32> to vector<4x32xf32>
    %623 = arith.mulf %612, %622 : vector<4x32xf32>
    %624 = arith.addf %621, %623 : vector<4x32xf32>
    %625 = math.tanh %624 : vector<4x32xf32>
    %cst_199 = arith.constant 1.000000e+00 : f32
    %626 = vector.broadcast %cst_199 : f32 to vector<4x32xf32>
    %627 = arith.subf %626, %620 : vector<4x32xf32>
    %628 = arith.mulf %627, %625 : vector<4x32xf32>
    %629 = arith.mulf %620, %587 : vector<4x32xf32>
    %630 = arith.addf %628, %629 : vector<4x32xf32>
    %631 = vector.broadcast %599 : vector<4x1xf32> to vector<4x32xf32>
    %632 = arith.mulf %631, %630 : vector<4x32xf32>
    %cst_200 = arith.constant 1.000000e+00 : f32
    %633 = vector.broadcast %cst_200 : f32 to vector<4x1xf32>
    %634 = arith.subf %633, %599 : vector<4x1xf32>
    %635 = vector.broadcast %634 : vector<4x1xf32> to vector<4x32xf32>
    %636 = arith.mulf %635, %587 : vector<4x32xf32>
    %637 = arith.addf %632, %636 : vector<4x32xf32>
    %638 = vector.broadcast %599 : vector<4x1xf32> to vector<4x32xf32>
    %639 = arith.mulf %638, %630 : vector<4x32xf32>
    %640 = vector.shape_cast %639 : vector<4x32xf32> to vector<1x4x32xf32>
    %641 = arith.index_cast %593 : i32 to index
    %c0_201 = arith.constant 0 : index
    %c32_202 = arith.constant 32 : index
    %642 = vector.load %arg8[%641, %c0_201, %c32_202] : memref<8x4x64xf32, #tpu.memory_space<vmem>>, vector<1x4x32xf32>
    tpu.vector_store %arg8[%641, %c0_201, %c32_202], %640 {strides = array<i32>} : memref<8x4x64xf32, #tpu.memory_space<vmem>>, vector<1x4x32xf32>,
    %c5_i32_203 = arith.constant 5 : i32
    %c7_i32_204 = arith.constant 7 : i32
    %643 = arith.subi %c7_i32_204, %c5_i32_203 : i32
    %644 = arith.index_cast %643 : i32 to index
    %c0_205 = arith.constant 0 : index
    %c0_206 = arith.constant 0 : index
    %645 = vector.load %arg3[%644, %c0_205, %c0_206] : memref<8x4x96xf32, #tpu.memory_space<vmem>>, vector<1x4x96xf32>
    %646 = vector.shape_cast %645 : vector<1x4x96xf32> to vector<4x96xf32>
    %647 = arith.index_cast %643 : i32 to index
    %c0_207 = arith.constant 0 : index
    %c0_208 = arith.constant 0 : index
    %648 = vector.load %arg1[%647, %c0_207, %c0_208] : memref<8x4x1xf32, #tpu.memory_space<vmem>>, vector<1x4x1xf32>
    %649 = vector.shape_cast %648 : vector<1x4x1xf32> to vector<4x1xf32>
    %c0_209 = arith.constant 0 : index
    %c0_210 = arith.constant 0 : index
    %650 = vector.load %arg5[%c0_209, %c0_210] : memref<32x96xf32, #tpu.memory_space<vmem>>, vector<32x96xf32>
    %cst_211 = arith.constant dense<0.000000e+00> : vector<4x96xf32>
    %651 = tpu.matmul %637, %650, %cst_211 {dimension_numbers = #tpu.dot_dimension_numbers<[1], [0], [0], [1], [0, 0, 1, 1], [], []>} : vector<4x32xf32>, vector<32x96xf32>, vector<4x96xf32> -> vector<4x96xf32>
    %c0_212 = arith.constant 0 : index
    %c0_213 = arith.constant 0 : index
    %652 = vector.load %arg7[%c0_212, %c0_213] : memref<1x96xf32, #tpu.memory_space<vmem>>, vector<1x96xf32>
    %653 = vector.broadcast %652 : vector<1x96xf32> to vector<4x96xf32>
    %654 = arith.addf %651, %653 : vector<4x96xf32>
    %655 = vector.extract_strided_slice %646 {offsets = [0, 0], sizes = [4, 32], strides = [1, 1]} : vector<4x96xf32> to vector<4x32xf32>
    %656 = vector.extract_strided_slice %654 {offsets = [0, 0], sizes = [4, 32], strides = [1, 1]} : vector<4x96xf32> to vector<4x32xf32>
    %657 = arith.addf %655, %656 : vector<4x32xf32>
    %658 = arith.negf %657 : vector<4x32xf32>
    %659 = math.exp %658 : vector<4x32xf32>
    %cst_214 = arith.constant 1.000000e+00 : f32
    %660 = vector.broadcast %cst_214 : f32 to vector<4x32xf32>
    %661 = arith.addf %660, %659 : vector<4x32xf32>
    %662 = arith.divf %660, %661 : vector<4x32xf32>
    %663 = vector.extract_strided_slice %646 {offsets = [0, 32], sizes = [4, 32], strides = [1, 1]} : vector<4x96xf32> to vector<4x32xf32>
    %664 = vector.extract_strided_slice %654 {offsets = [0, 32], sizes = [4, 32], strides = [1, 1]} : vector<4x96xf32> to vector<4x32xf32>
    %665 = arith.addf %663, %664 : vector<4x32xf32>
    %666 = arith.negf %665 : vector<4x32xf32>
    %667 = math.exp %666 : vector<4x32xf32>
    %cst_215 = arith.constant 1.000000e+00 : f32
    %668 = vector.broadcast %cst_215 : f32 to vector<4x32xf32>
    %669 = arith.addf %668, %667 : vector<4x32xf32>
    %670 = arith.divf %668, %669 : vector<4x32xf32>
    %671 = vector.extract_strided_slice %646 {offsets = [0, 64], sizes = [4, 32], strides = [1, 1]} : vector<4x96xf32> to vector<4x32xf32>
    %672 = vector.extract_strided_slice %654 {offsets = [0, 64], sizes = [4, 32], strides = [1, 1]} : vector<4x96xf32> to vector<4x32xf32>
    %673 = arith.mulf %662, %672 : vector<4x32xf32>
    %674 = arith.addf %671, %673 : vector<4x32xf32>
    %675 = math.tanh %674 : vector<4x32xf32>
    %cst_216 = arith.constant 1.000000e+00 : f32
    %676 = vector.broadcast %cst_216 : f32 to vector<4x32xf32>
    %677 = arith.subf %676, %670 : vector<4x32xf32>
    %678 = arith.mulf %677, %675 : vector<4x32xf32>
    %679 = arith.mulf %670, %637 : vector<4x32xf32>
    %680 = arith.addf %678, %679 : vector<4x32xf32>
    %681 = vector.broadcast %649 : vector<4x1xf32> to vector<4x32xf32>
    %682 = arith.mulf %681, %680 : vector<4x32xf32>
    %cst_217 = arith.constant 1.000000e+00 : f32
    %683 = vector.broadcast %cst_217 : f32 to vector<4x1xf32>
    %684 = arith.subf %683, %649 : vector<4x1xf32>
    %685 = vector.broadcast %684 : vector<4x1xf32> to vector<4x32xf32>
    %686 = arith.mulf %685, %637 : vector<4x32xf32>
    %687 = arith.addf %682, %686 : vector<4x32xf32>
    %688 = vector.broadcast %649 : vector<4x1xf32> to vector<4x32xf32>
    %689 = arith.mulf %688, %680 : vector<4x32xf32>
    %690 = vector.shape_cast %689 : vector<4x32xf32> to vector<1x4x32xf32>
    %691 = arith.index_cast %643 : i32 to index
    %c0_218 = arith.constant 0 : index
    %c32_219 = arith.constant 32 : index
    %692 = vector.load %arg8[%691, %c0_218, %c32_219] : memref<8x4x64xf32, #tpu.memory_space<vmem>>, vector<1x4x32xf32>
    tpu.vector_store %arg8[%691, %c0_218, %c32_219], %690 {strides = array<i32>} : memref<8x4x64xf32, #tpu.memory_space<vmem>>, vector<1x4x32xf32>,
    %c6_i32_220 = arith.constant 6 : i32
    %c7_i32_221 = arith.constant 7 : i32
    %693 = arith.subi %c7_i32_221, %c6_i32_220 : i32
    %694 = arith.index_cast %693 : i32 to index
    %c0_222 = arith.constant 0 : index
    %c0_223 = arith.constant 0 : index
    %695 = vector.load %arg3[%694, %c0_222, %c0_223] : memref<8x4x96xf32, #tpu.memory_space<vmem>>, vector<1x4x96xf32>
    %696 = vector.shape_cast %695 : vector<1x4x96xf32> to vector<4x96xf32>
    %697 = arith.index_cast %693 : i32 to index
    %c0_224 = arith.constant 0 : index
    %c0_225 = arith.constant 0 : index
    %698 = vector.load %arg1[%697, %c0_224, %c0_225] : memref<8x4x1xf32, #tpu.memory_space<vmem>>, vector<1x4x1xf32>
    %699 = vector.shape_cast %698 : vector<1x4x1xf32> to vector<4x1xf32>
    %c0_226 = arith.constant 0 : index
    %c0_227 = arith.constant 0 : index
    %700 = vector.load %arg5[%c0_226, %c0_227] : memref<32x96xf32, #tpu.memory_space<vmem>>, vector<32x96xf32>
    %cst_228 = arith.constant dense<0.000000e+00> : vector<4x96xf32>
    %701 = tpu.matmul %687, %700, %cst_228 {dimension_numbers = #tpu.dot_dimension_numbers<[1], [0], [0], [1], [0, 0, 1, 1], [], []>} : vector<4x32xf32>, vector<32x96xf32>, vector<4x96xf32> -> vector<4x96xf32>
    %c0_229 = arith.constant 0 : index
    %c0_230 = arith.constant 0 : index
    %702 = vector.load %arg7[%c0_229, %c0_230] : memref<1x96xf32, #tpu.memory_space<vmem>>, vector<1x96xf32>
    %703 = vector.broadcast %702 : vector<1x96xf32> to vector<4x96xf32>
    %704 = arith.addf %701, %703 : vector<4x96xf32>
    %705 = vector.extract_strided_slice %696 {offsets = [0, 0], sizes = [4, 32], strides = [1, 1]} : vector<4x96xf32> to vector<4x32xf32>
    %706 = vector.extract_strided_slice %704 {offsets = [0, 0], sizes = [4, 32], strides = [1, 1]} : vector<4x96xf32> to vector<4x32xf32>
    %707 = arith.addf %705, %706 : vector<4x32xf32>
    %708 = arith.negf %707 : vector<4x32xf32>
    %709 = math.exp %708 : vector<4x32xf32>
    %cst_231 = arith.constant 1.000000e+00 : f32
    %710 = vector.broadcast %cst_231 : f32 to vector<4x32xf32>
    %711 = arith.addf %710, %709 : vector<4x32xf32>
    %712 = arith.divf %710, %711 : vector<4x32xf32>
    %713 = vector.extract_strided_slice %696 {offsets = [0, 32], sizes = [4, 32], strides = [1, 1]} : vector<4x96xf32> to vector<4x32xf32>
    %714 = vector.extract_strided_slice %704 {offsets = [0, 32], sizes = [4, 32], strides = [1, 1]} : vector<4x96xf32> to vector<4x32xf32>
    %715 = arith.addf %713, %714 : vector<4x32xf32>
    %716 = arith.negf %715 : vector<4x32xf32>
    %717 = math.exp %716 : vector<4x32xf32>
    %cst_232 = arith.constant 1.000000e+00 : f32
    %718 = vector.broadcast %cst_232 : f32 to vector<4x32xf32>
    %719 = arith.addf %718, %717 : vector<4x32xf32>
    %720 = arith.divf %718, %719 : vector<4x32xf32>
    %721 = vector.extract_strided_slice %696 {offsets = [0, 64], sizes = [4, 32], strides = [1, 1]} : vector<4x96xf32> to vector<4x32xf32>
    %722 = vector.extract_strided_slice %704 {offsets = [0, 64], sizes = [4, 32], strides = [1, 1]} : vector<4x96xf32> to vector<4x32xf32>
    %723 = arith.mulf %712, %722 : vector<4x32xf32>
    %724 = arith.addf %721, %723 : vector<4x32xf32>
    %725 = math.tanh %724 : vector<4x32xf32>
    %cst_233 = arith.constant 1.000000e+00 : f32
    %726 = vector.broadcast %cst_233 : f32 to vector<4x32xf32>
    %727 = arith.subf %726, %720 : vector<4x32xf32>
    %728 = arith.mulf %727, %725 : vector<4x32xf32>
    %729 = arith.mulf %720, %687 : vector<4x32xf32>
    %730 = arith.addf %728, %729 : vector<4x32xf32>
    %731 = vector.broadcast %699 : vector<4x1xf32> to vector<4x32xf32>
    %732 = arith.mulf %731, %730 : vector<4x32xf32>
    %cst_234 = arith.constant 1.000000e+00 : f32
    %733 = vector.broadcast %cst_234 : f32 to vector<4x1xf32>
    %734 = arith.subf %733, %699 : vector<4x1xf32>
    %735 = vector.broadcast %734 : vector<4x1xf32> to vector<4x32xf32>
    %736 = arith.mulf %735, %687 : vector<4x32xf32>
    %737 = arith.addf %732, %736 : vector<4x32xf32>
    %738 = vector.broadcast %699 : vector<4x1xf32> to vector<4x32xf32>
    %739 = arith.mulf %738, %730 : vector<4x32xf32>
    %740 = vector.shape_cast %739 : vector<4x32xf32> to vector<1x4x32xf32>
    %741 = arith.index_cast %693 : i32 to index
    %c0_235 = arith.constant 0 : index
    %c32_236 = arith.constant 32 : index
    %742 = vector.load %arg8[%741, %c0_235, %c32_236] : memref<8x4x64xf32, #tpu.memory_space<vmem>>, vector<1x4x32xf32>
    tpu.vector_store %arg8[%741, %c0_235, %c32_236], %740 {strides = array<i32>} : memref<8x4x64xf32, #tpu.memory_space<vmem>>, vector<1x4x32xf32>,
    %c7_i32_237 = arith.constant 7 : i32
    %c7_i32_238 = arith.constant 7 : i32
    %743 = arith.subi %c7_i32_238, %c7_i32_237 : i32
    %744 = arith.index_cast %743 : i32 to index
    %c0_239 = arith.constant 0 : index
    %c0_240 = arith.constant 0 : index
    %745 = vector.load %arg3[%744, %c0_239, %c0_240] : memref<8x4x96xf32, #tpu.memory_space<vmem>>, vector<1x4x96xf32>
    %746 = vector.shape_cast %745 : vector<1x4x96xf32> to vector<4x96xf32>
    %747 = arith.index_cast %743 : i32 to index
    %c0_241 = arith.constant 0 : index
    %c0_242 = arith.constant 0 : index
    %748 = vector.load %arg1[%747, %c0_241, %c0_242] : memref<8x4x1xf32, #tpu.memory_space<vmem>>, vector<1x4x1xf32>
    %749 = vector.shape_cast %748 : vector<1x4x1xf32> to vector<4x1xf32>
    %c0_243 = arith.constant 0 : index
    %c0_244 = arith.constant 0 : index
    %750 = vector.load %arg5[%c0_243, %c0_244] : memref<32x96xf32, #tpu.memory_space<vmem>>, vector<32x96xf32>
    %cst_245 = arith.constant dense<0.000000e+00> : vector<4x96xf32>
    %751 = tpu.matmul %737, %750, %cst_245 {dimension_numbers = #tpu.dot_dimension_numbers<[1], [0], [0], [1], [0, 0, 1, 1], [], []>} : vector<4x32xf32>, vector<32x96xf32>, vector<4x96xf32> -> vector<4x96xf32>
    %c0_246 = arith.constant 0 : index
    %c0_247 = arith.constant 0 : index
    %752 = vector.load %arg7[%c0_246, %c0_247] : memref<1x96xf32, #tpu.memory_space<vmem>>, vector<1x96xf32>
    %753 = vector.broadcast %752 : vector<1x96xf32> to vector<4x96xf32>
    %754 = arith.addf %751, %753 : vector<4x96xf32>
    %755 = vector.extract_strided_slice %746 {offsets = [0, 0], sizes = [4, 32], strides = [1, 1]} : vector<4x96xf32> to vector<4x32xf32>
    %756 = vector.extract_strided_slice %754 {offsets = [0, 0], sizes = [4, 32], strides = [1, 1]} : vector<4x96xf32> to vector<4x32xf32>
    %757 = arith.addf %755, %756 : vector<4x32xf32>
    %758 = arith.negf %757 : vector<4x32xf32>
    %759 = math.exp %758 : vector<4x32xf32>
    %cst_248 = arith.constant 1.000000e+00 : f32
    %760 = vector.broadcast %cst_248 : f32 to vector<4x32xf32>
    %761 = arith.addf %760, %759 : vector<4x32xf32>
    %762 = arith.divf %760, %761 : vector<4x32xf32>
    %763 = vector.extract_strided_slice %746 {offsets = [0, 32], sizes = [4, 32], strides = [1, 1]} : vector<4x96xf32> to vector<4x32xf32>
    %764 = vector.extract_strided_slice %754 {offsets = [0, 32], sizes = [4, 32], strides = [1, 1]} : vector<4x96xf32> to vector<4x32xf32>
    %765 = arith.addf %763, %764 : vector<4x32xf32>
    %766 = arith.negf %765 : vector<4x32xf32>
    %767 = math.exp %766 : vector<4x32xf32>
    %cst_249 = arith.constant 1.000000e+00 : f32
    %768 = vector.broadcast %cst_249 : f32 to vector<4x32xf32>
    %769 = arith.addf %768, %767 : vector<4x32xf32>
    %770 = arith.divf %768, %769 : vector<4x32xf32>
    %771 = vector.extract_strided_slice %746 {offsets = [0, 64], sizes = [4, 32], strides = [1, 1]} : vector<4x96xf32> to vector<4x32xf32>
    %772 = vector.extract_strided_slice %754 {offsets = [0, 64], sizes = [4, 32], strides = [1, 1]} : vector<4x96xf32> to vector<4x32xf32>
    %773 = arith.mulf %762, %772 : vector<4x32xf32>
    %774 = arith.addf %771, %773 : vector<4x32xf32>
    %775 = math.tanh %774 : vector<4x32xf32>
    %cst_250 = arith.constant 1.000000e+00 : f32
    %776 = vector.broadcast %cst_250 : f32 to vector<4x32xf32>
    %777 = arith.subf %776, %770 : vector<4x32xf32>
    %778 = arith.mulf %777, %775 : vector<4x32xf32>
    %779 = arith.mulf %770, %737 : vector<4x32xf32>
    %780 = arith.addf %778, %779 : vector<4x32xf32>
    %781 = vector.broadcast %749 : vector<4x1xf32> to vector<4x32xf32>
    %782 = arith.mulf %781, %780 : vector<4x32xf32>
    %cst_251 = arith.constant 1.000000e+00 : f32
    %783 = vector.broadcast %cst_251 : f32 to vector<4x1xf32>
    %784 = arith.subf %783, %749 : vector<4x1xf32>
    %785 = vector.broadcast %784 : vector<4x1xf32> to vector<4x32xf32>
    %786 = arith.mulf %785, %737 : vector<4x32xf32>
    %787 = arith.addf %782, %786 : vector<4x32xf32>
    %788 = vector.broadcast %749 : vector<4x1xf32> to vector<4x32xf32>
    %789 = arith.mulf %788, %780 : vector<4x32xf32>
    %790 = vector.shape_cast %789 : vector<4x32xf32> to vector<1x4x32xf32>
    %791 = arith.index_cast %743 : i32 to index
    %c0_252 = arith.constant 0 : index
    %c32_253 = arith.constant 32 : index
    %792 = vector.load %arg8[%791, %c0_252, %c32_253] : memref<8x4x64xf32, #tpu.memory_space<vmem>>, vector<1x4x32xf32>
    tpu.vector_store %arg8[%791, %c0_252, %c32_253], %790 {strides = array<i32>} : memref<8x4x64xf32, #tpu.memory_space<vmem>>, vector<1x4x32xf32>,
    %c8_i32_254 = arith.constant 8 : i32
    return
  }
  func.func @transform_0(%arg0: i32) -> (i32, i32, i32) {
    %c0_i32 = arith.constant 0 : i32
    %c0_i32_0 = arith.constant 0 : i32
    %c0_i32_1 = arith.constant 0 : i32
    %c0_i32_2 = arith.constant 0 : i32
    return %c0_i32, %c0_i32_0, %c0_i32_1 : i32, i32, i32
  }
  func.func @transform_1(%arg0: i32) -> (i32, i32, i32) {
    %c0_i32 = arith.constant 0 : i32
    %c0_i32_0 = arith.constant 0 : i32
    %c0_i32_1 = arith.constant 0 : i32
    %c0_i32_2 = arith.constant 0 : i32
    return %c0_i32, %c0_i32_0, %c0_i32_1 : i32, i32, i32
  }
  func.func @transform_2(%arg0: i32) -> (i32, i32, i32) {
    %c0_i32 = arith.constant 0 : i32
    %c0_i32_0 = arith.constant 0 : i32
    %c0_i32_1 = arith.constant 0 : i32
    %c0_i32_2 = arith.constant 0 : i32
    return %c0_i32, %c0_i32_0, %c0_i32_1 : i32, i32, i32
  }
  func.func @transform_3(%arg0: i32) -> (i32, i32) {
    %c0_i32 = arith.constant 0 : i32
    %c0_i32_0 = arith.constant 0 : i32
    %c0_i32_1 = arith.constant 0 : i32
    return %c0_i32, %c0_i32_0 : i32, i32
  }
  func.func @transform_4(%arg0: i32) -> (i32, i32) {
    %c0_i32 = arith.constant 0 : i32
    %c0_i32_0 = arith.constant 0 : i32
    %c0_i32_1 = arith.constant 0 : i32
    return %c0_i32, %c0_i32_0 : i32, i32
  }
  func.func @transform_5(%arg0: i32) -> (i32, i32) {
    %c0_i32 = arith.constant 0 : i32
    %c0_i32_0 = arith.constant 0 : i32
    %c0_i32_1 = arith.constant 0 : i32
    return %c0_i32, %c0_i32_0 : i32, i32
  }
  func.func @transform_6(%arg0: i32) -> (i32, i32) {
    %c0_i32 = arith.constant 0 : i32
    %c0_i32_0 = arith.constant 0 : i32
    %c0_i32_1 = arith.constant 0 : i32
    return %c0_i32, %c0_i32_0 : i32, i32
  }
  func.func @transform_7(%arg0: i32) -> (i32, i32, i32) {
    %c0_i32 = arith.constant 0 : i32
    %c0_i32_0 = arith.constant 0 : i32
    %c0_i32_1 = arith.constant 0 : i32
    %c0_i32_2 = arith.constant 0 : i32
    return %c0_i32, %c0_i32_0, %c0_i32_1 : i32, i32, i32
  }
}

module attributes {stable_mosaic.version = 11 : i64} {
  func.func @_bigru_layer_kernel(%arg0: i32, %arg1: memref<8x4x1xf32, #tpu.memory_space<vmem>>, %arg2: memref<8x4x96xf32, #tpu.memory_space<vmem>>, %arg3: memref<8x4x96xf32, #tpu.memory_space<vmem>>, %arg4: memref<32x96xf32, #tpu.memory_space<vmem>>, %arg5: memref<32x96xf32, #tpu.memory_space<vmem>>, %arg6: memref<1x96xf32, #tpu.memory_space<vmem>>, %arg7: memref<1x96xf32, #tpu.memory_space<vmem>>, %arg8: memref<32x32xf32, #tpu.memory_space<vmem>>, %arg9: memref<32x32xf32, #tpu.memory_space<vmem>>, %arg10: memref<1x32xf32, #tpu.memory_space<vmem>>, %arg11: memref<8x4x64xf32, #tpu.memory_space<vmem>>, %arg12: memref<4x32xf32, #tpu.memory_space<vmem>>) attributes {dimension_semantics = [#tpu.dimension_semantics<arbitrary>], iteration_bounds = array<i64: 1>, scalar_prefetch = 0 : i64, scratch_operands = 0 : i64, tpu.core_type = #tpu.core_type<tc>, window_params = [{pipeline_mode = #tpu.pipeline_mode<synchronous>, transform_indices = @transform_0, window_bounds = array<i64: 8, 4, 1>}, {pipeline_mode = #tpu.pipeline_mode<synchronous>, transform_indices = @transform_1, window_bounds = array<i64: 8, 4, 96>}, {pipeline_mode = #tpu.pipeline_mode<synchronous>, transform_indices = @transform_2, window_bounds = array<i64: 8, 4, 96>}, {pipeline_mode = #tpu.pipeline_mode<synchronous>, transform_indices = @transform_3, window_bounds = array<i64: 32, 96>}, {pipeline_mode = #tpu.pipeline_mode<synchronous>, transform_indices = @transform_4, window_bounds = array<i64: 32, 96>}, {pipeline_mode = #tpu.pipeline_mode<synchronous>, transform_indices = @transform_5, window_bounds = array<i64: 1, 96>}, {pipeline_mode = #tpu.pipeline_mode<synchronous>, transform_indices = @transform_6, window_bounds = array<i64: 1, 96>}, {pipeline_mode = #tpu.pipeline_mode<synchronous>, transform_indices = @transform_7, window_bounds = array<i64: 32, 32>}, {pipeline_mode = #tpu.pipeline_mode<synchronous>, transform_indices = @transform_8, window_bounds = array<i64: 32, 32>}, {pipeline_mode = #tpu.pipeline_mode<synchronous>, transform_indices = @transform_9, window_bounds = array<i64: 1, 32>}, {pipeline_mode = #tpu.pipeline_mode<synchronous>, transform_indices = @transform_10, window_bounds = array<i64: 8, 4, 64>}, {pipeline_mode = #tpu.pipeline_mode<synchronous>, transform_indices = @transform_11, window_bounds = array<i64: 4, 32>}]} {
    %cst = arith.constant 0.000000e+00 : f32
    %0 = vector.broadcast %cst : f32 to vector<4x32xf32>
    %c0_i32 = arith.constant 0 : i32
    %1 = arith.index_cast %c0_i32 : i32 to index
    %c0 = arith.constant 0 : index
    %c0_0 = arith.constant 0 : index
    %2 = vector.load %arg2[%1, %c0, %c0_0] : memref<8x4x96xf32, #tpu.memory_space<vmem>>, vector<1x4x96xf32>
    %3 = vector.shape_cast %2 : vector<1x4x96xf32> to vector<4x96xf32>
    %4 = arith.index_cast %c0_i32 : i32 to index
    %c0_1 = arith.constant 0 : index
    %c0_2 = arith.constant 0 : index
    %5 = vector.load %arg1[%4, %c0_1, %c0_2] : memref<8x4x1xf32, #tpu.memory_space<vmem>>, vector<1x4x1xf32>
    %6 = vector.shape_cast %5 : vector<1x4x1xf32> to vector<4x1xf32>
    %c0_3 = arith.constant 0 : index
    %c0_4 = arith.constant 0 : index
    %7 = vector.load %arg4[%c0_3, %c0_4] : memref<32x96xf32, #tpu.memory_space<vmem>>, vector<32x96xf32>
    %cst_5 = arith.constant dense<0.000000e+00> : vector<4x96xf32>
    %8 = tpu.matmul %0, %7, %cst_5 {dimension_numbers = #tpu.dot_dimension_numbers<[1], [0], [0], [1], [0, 0, 1, 1], [], []>} : vector<4x32xf32>, vector<32x96xf32>, vector<4x96xf32> -> vector<4x96xf32>
    %c0_6 = arith.constant 0 : index
    %c0_7 = arith.constant 0 : index
    %9 = vector.load %arg6[%c0_6, %c0_7] : memref<1x96xf32, #tpu.memory_space<vmem>>, vector<1x96xf32>
    %10 = vector.broadcast %9 : vector<1x96xf32> to vector<4x96xf32>
    %11 = arith.addf %8, %10 : vector<4x96xf32>
    %12 = vector.extract_strided_slice %3 {offsets = [0, 0], sizes = [4, 32], strides = [1, 1]} : vector<4x96xf32> to vector<4x32xf32>
    %13 = vector.extract_strided_slice %11 {offsets = [0, 0], sizes = [4, 32], strides = [1, 1]} : vector<4x96xf32> to vector<4x32xf32>
    %14 = arith.addf %12, %13 : vector<4x32xf32>
    %15 = arith.negf %14 : vector<4x32xf32>
    %16 = math.exp %15 : vector<4x32xf32>
    %cst_8 = arith.constant 1.000000e+00 : f32
    %17 = vector.broadcast %cst_8 : f32 to vector<4x32xf32>
    %18 = arith.addf %17, %16 : vector<4x32xf32>
    %19 = arith.divf %17, %18 : vector<4x32xf32>
    %20 = vector.extract_strided_slice %3 {offsets = [0, 32], sizes = [4, 32], strides = [1, 1]} : vector<4x96xf32> to vector<4x32xf32>
    %21 = vector.extract_strided_slice %11 {offsets = [0, 32], sizes = [4, 32], strides = [1, 1]} : vector<4x96xf32> to vector<4x32xf32>
    %22 = arith.addf %20, %21 : vector<4x32xf32>
    %23 = arith.negf %22 : vector<4x32xf32>
    %24 = math.exp %23 : vector<4x32xf32>
    %cst_9 = arith.constant 1.000000e+00 : f32
    %25 = vector.broadcast %cst_9 : f32 to vector<4x32xf32>
    %26 = arith.addf %25, %24 : vector<4x32xf32>
    %27 = arith.divf %25, %26 : vector<4x32xf32>
    %28 = vector.extract_strided_slice %3 {offsets = [0, 64], sizes = [4, 32], strides = [1, 1]} : vector<4x96xf32> to vector<4x32xf32>
    %29 = vector.extract_strided_slice %11 {offsets = [0, 64], sizes = [4, 32], strides = [1, 1]} : vector<4x96xf32> to vector<4x32xf32>
    %30 = arith.mulf %19, %29 : vector<4x32xf32>
    %31 = arith.addf %28, %30 : vector<4x32xf32>
    %32 = math.tanh %31 : vector<4x32xf32>
    %cst_10 = arith.constant 1.000000e+00 : f32
    %33 = vector.broadcast %cst_10 : f32 to vector<4x32xf32>
    %34 = arith.subf %33, %27 : vector<4x32xf32>
    %35 = arith.mulf %34, %32 : vector<4x32xf32>
    %36 = arith.mulf %27, %0 : vector<4x32xf32>
    %37 = arith.addf %35, %36 : vector<4x32xf32>
    %38 = vector.broadcast %6 : vector<4x1xf32> to vector<4x32xf32>
    %39 = arith.mulf %38, %37 : vector<4x32xf32>
    %cst_11 = arith.constant 1.000000e+00 : f32
    %40 = vector.broadcast %cst_11 : f32 to vector<4x1xf32>
    %41 = arith.subf %40, %6 : vector<4x1xf32>
    %42 = vector.broadcast %41 : vector<4x1xf32> to vector<4x32xf32>
    %43 = arith.mulf %42, %0 : vector<4x32xf32>
    %44 = arith.addf %39, %43 : vector<4x32xf32>
    %45 = vector.broadcast %6 : vector<4x1xf32> to vector<4x32xf32>
    %46 = arith.mulf %45, %37 : vector<4x32xf32>
    %47 = vector.shape_cast %46 : vector<4x32xf32> to vector<1x4x32xf32>
    %48 = arith.index_cast %c0_i32 : i32 to index
    %c0_12 = arith.constant 0 : index
    %c0_13 = arith.constant 0 : index
    %49 = vector.load %arg11[%48, %c0_12, %c0_13] : memref<8x4x64xf32, #tpu.memory_space<vmem>>, vector<1x4x32xf32>
    tpu.vector_store %arg11[%48, %c0_12, %c0_13], %47 {strides = array<i32>} : memref<8x4x64xf32, #tpu.memory_space<vmem>>, vector<1x4x32xf32>,
    %c1_i32 = arith.constant 1 : i32
    %50 = arith.index_cast %c1_i32 : i32 to index
    %c0_14 = arith.constant 0 : index
    %c0_15 = arith.constant 0 : index
    %51 = vector.load %arg2[%50, %c0_14, %c0_15] : memref<8x4x96xf32, #tpu.memory_space<vmem>>, vector<1x4x96xf32>
    %52 = vector.shape_cast %51 : vector<1x4x96xf32> to vector<4x96xf32>
    %53 = arith.index_cast %c1_i32 : i32 to index
    %c0_16 = arith.constant 0 : index
    %c0_17 = arith.constant 0 : index
    %54 = vector.load %arg1[%53, %c0_16, %c0_17] : memref<8x4x1xf32, #tpu.memory_space<vmem>>, vector<1x4x1xf32>
    %55 = vector.shape_cast %54 : vector<1x4x1xf32> to vector<4x1xf32>
    %c0_18 = arith.constant 0 : index
    %c0_19 = arith.constant 0 : index
    %56 = vector.load %arg4[%c0_18, %c0_19] : memref<32x96xf32, #tpu.memory_space<vmem>>, vector<32x96xf32>
    %cst_20 = arith.constant dense<0.000000e+00> : vector<4x96xf32>
    %57 = tpu.matmul %44, %56, %cst_20 {dimension_numbers = #tpu.dot_dimension_numbers<[1], [0], [0], [1], [0, 0, 1, 1], [], []>} : vector<4x32xf32>, vector<32x96xf32>, vector<4x96xf32> -> vector<4x96xf32>
    %c0_21 = arith.constant 0 : index
    %c0_22 = arith.constant 0 : index
    %58 = vector.load %arg6[%c0_21, %c0_22] : memref<1x96xf32, #tpu.memory_space<vmem>>, vector<1x96xf32>
    %59 = vector.broadcast %58 : vector<1x96xf32> to vector<4x96xf32>
    %60 = arith.addf %57, %59 : vector<4x96xf32>
    %61 = vector.extract_strided_slice %52 {offsets = [0, 0], sizes = [4, 32], strides = [1, 1]} : vector<4x96xf32> to vector<4x32xf32>
    %62 = vector.extract_strided_slice %60 {offsets = [0, 0], sizes = [4, 32], strides = [1, 1]} : vector<4x96xf32> to vector<4x32xf32>
    %63 = arith.addf %61, %62 : vector<4x32xf32>
    %64 = arith.negf %63 : vector<4x32xf32>
    %65 = math.exp %64 : vector<4x32xf32>
    %cst_23 = arith.constant 1.000000e+00 : f32
    %66 = vector.broadcast %cst_23 : f32 to vector<4x32xf32>
    %67 = arith.addf %66, %65 : vector<4x32xf32>
    %68 = arith.divf %66, %67 : vector<4x32xf32>
    %69 = vector.extract_strided_slice %52 {offsets = [0, 32], sizes = [4, 32], strides = [1, 1]} : vector<4x96xf32> to vector<4x32xf32>
    %70 = vector.extract_strided_slice %60 {offsets = [0, 32], sizes = [4, 32], strides = [1, 1]} : vector<4x96xf32> to vector<4x32xf32>
    %71 = arith.addf %69, %70 : vector<4x32xf32>
    %72 = arith.negf %71 : vector<4x32xf32>
    %73 = math.exp %72 : vector<4x32xf32>
    %cst_24 = arith.constant 1.000000e+00 : f32
    %74 = vector.broadcast %cst_24 : f32 to vector<4x32xf32>
    %75 = arith.addf %74, %73 : vector<4x32xf32>
    %76 = arith.divf %74, %75 : vector<4x32xf32>
    %77 = vector.extract_strided_slice %52 {offsets = [0, 64], sizes = [4, 32], strides = [1, 1]} : vector<4x96xf32> to vector<4x32xf32>
    %78 = vector.extract_strided_slice %60 {offsets = [0, 64], sizes = [4, 32], strides = [1, 1]} : vector<4x96xf32> to vector<4x32xf32>
    %79 = arith.mulf %68, %78 : vector<4x32xf32>
    %80 = arith.addf %77, %79 : vector<4x32xf32>
    %81 = math.tanh %80 : vector<4x32xf32>
    %cst_25 = arith.constant 1.000000e+00 : f32
    %82 = vector.broadcast %cst_25 : f32 to vector<4x32xf32>
    %83 = arith.subf %82, %76 : vector<4x32xf32>
    %84 = arith.mulf %83, %81 : vector<4x32xf32>
    %85 = arith.mulf %76, %44 : vector<4x32xf32>
    %86 = arith.addf %84, %85 : vector<4x32xf32>
    %87 = vector.broadcast %55 : vector<4x1xf32> to vector<4x32xf32>
    %88 = arith.mulf %87, %86 : vector<4x32xf32>
    %cst_26 = arith.constant 1.000000e+00 : f32
    %89 = vector.broadcast %cst_26 : f32 to vector<4x1xf32>
    %90 = arith.subf %89, %55 : vector<4x1xf32>
    %91 = vector.broadcast %90 : vector<4x1xf32> to vector<4x32xf32>
    %92 = arith.mulf %91, %44 : vector<4x32xf32>
    %93 = arith.addf %88, %92 : vector<4x32xf32>
    %94 = vector.broadcast %55 : vector<4x1xf32> to vector<4x32xf32>
    %95 = arith.mulf %94, %86 : vector<4x32xf32>
    %96 = vector.shape_cast %95 : vector<4x32xf32> to vector<1x4x32xf32>
    %97 = arith.index_cast %c1_i32 : i32 to index
    %c0_27 = arith.constant 0 : index
    %c0_28 = arith.constant 0 : index
    %98 = vector.load %arg11[%97, %c0_27, %c0_28] : memref<8x4x64xf32, #tpu.memory_space<vmem>>, vector<1x4x32xf32>
    tpu.vector_store %arg11[%97, %c0_27, %c0_28], %96 {strides = array<i32>} : memref<8x4x64xf32, #tpu.memory_space<vmem>>, vector<1x4x32xf32>,
    %c2_i32 = arith.constant 2 : i32
    %99 = arith.index_cast %c2_i32 : i32 to index
    %c0_29 = arith.constant 0 : index
    %c0_30 = arith.constant 0 : index
    %100 = vector.load %arg2[%99, %c0_29, %c0_30] : memref<8x4x96xf32, #tpu.memory_space<vmem>>, vector<1x4x96xf32>
    %101 = vector.shape_cast %100 : vector<1x4x96xf32> to vector<4x96xf32>
    %102 = arith.index_cast %c2_i32 : i32 to index
    %c0_31 = arith.constant 0 : index
    %c0_32 = arith.constant 0 : index
    %103 = vector.load %arg1[%102, %c0_31, %c0_32] : memref<8x4x1xf32, #tpu.memory_space<vmem>>, vector<1x4x1xf32>
    %104 = vector.shape_cast %103 : vector<1x4x1xf32> to vector<4x1xf32>
    %c0_33 = arith.constant 0 : index
    %c0_34 = arith.constant 0 : index
    %105 = vector.load %arg4[%c0_33, %c0_34] : memref<32x96xf32, #tpu.memory_space<vmem>>, vector<32x96xf32>
    %cst_35 = arith.constant dense<0.000000e+00> : vector<4x96xf32>
    %106 = tpu.matmul %93, %105, %cst_35 {dimension_numbers = #tpu.dot_dimension_numbers<[1], [0], [0], [1], [0, 0, 1, 1], [], []>} : vector<4x32xf32>, vector<32x96xf32>, vector<4x96xf32> -> vector<4x96xf32>
    %c0_36 = arith.constant 0 : index
    %c0_37 = arith.constant 0 : index
    %107 = vector.load %arg6[%c0_36, %c0_37] : memref<1x96xf32, #tpu.memory_space<vmem>>, vector<1x96xf32>
    %108 = vector.broadcast %107 : vector<1x96xf32> to vector<4x96xf32>
    %109 = arith.addf %106, %108 : vector<4x96xf32>
    %110 = vector.extract_strided_slice %101 {offsets = [0, 0], sizes = [4, 32], strides = [1, 1]} : vector<4x96xf32> to vector<4x32xf32>
    %111 = vector.extract_strided_slice %109 {offsets = [0, 0], sizes = [4, 32], strides = [1, 1]} : vector<4x96xf32> to vector<4x32xf32>
    %112 = arith.addf %110, %111 : vector<4x32xf32>
    %113 = arith.negf %112 : vector<4x32xf32>
    %114 = math.exp %113 : vector<4x32xf32>
    %cst_38 = arith.constant 1.000000e+00 : f32
    %115 = vector.broadcast %cst_38 : f32 to vector<4x32xf32>
    %116 = arith.addf %115, %114 : vector<4x32xf32>
    %117 = arith.divf %115, %116 : vector<4x32xf32>
    %118 = vector.extract_strided_slice %101 {offsets = [0, 32], sizes = [4, 32], strides = [1, 1]} : vector<4x96xf32> to vector<4x32xf32>
    %119 = vector.extract_strided_slice %109 {offsets = [0, 32], sizes = [4, 32], strides = [1, 1]} : vector<4x96xf32> to vector<4x32xf32>
    %120 = arith.addf %118, %119 : vector<4x32xf32>
    %121 = arith.negf %120 : vector<4x32xf32>
    %122 = math.exp %121 : vector<4x32xf32>
    %cst_39 = arith.constant 1.000000e+00 : f32
    %123 = vector.broadcast %cst_39 : f32 to vector<4x32xf32>
    %124 = arith.addf %123, %122 : vector<4x32xf32>
    %125 = arith.divf %123, %124 : vector<4x32xf32>
    %126 = vector.extract_strided_slice %101 {offsets = [0, 64], sizes = [4, 32], strides = [1, 1]} : vector<4x96xf32> to vector<4x32xf32>
    %127 = vector.extract_strided_slice %109 {offsets = [0, 64], sizes = [4, 32], strides = [1, 1]} : vector<4x96xf32> to vector<4x32xf32>
    %128 = arith.mulf %117, %127 : vector<4x32xf32>
    %129 = arith.addf %126, %128 : vector<4x32xf32>
    %130 = math.tanh %129 : vector<4x32xf32>
    %cst_40 = arith.constant 1.000000e+00 : f32
    %131 = vector.broadcast %cst_40 : f32 to vector<4x32xf32>
    %132 = arith.subf %131, %125 : vector<4x32xf32>
    %133 = arith.mulf %132, %130 : vector<4x32xf32>
    %134 = arith.mulf %125, %93 : vector<4x32xf32>
    %135 = arith.addf %133, %134 : vector<4x32xf32>
    %136 = vector.broadcast %104 : vector<4x1xf32> to vector<4x32xf32>
    %137 = arith.mulf %136, %135 : vector<4x32xf32>
    %cst_41 = arith.constant 1.000000e+00 : f32
    %138 = vector.broadcast %cst_41 : f32 to vector<4x1xf32>
    %139 = arith.subf %138, %104 : vector<4x1xf32>
    %140 = vector.broadcast %139 : vector<4x1xf32> to vector<4x32xf32>
    %141 = arith.mulf %140, %93 : vector<4x32xf32>
    %142 = arith.addf %137, %141 : vector<4x32xf32>
    %143 = vector.broadcast %104 : vector<4x1xf32> to vector<4x32xf32>
    %144 = arith.mulf %143, %135 : vector<4x32xf32>
    %145 = vector.shape_cast %144 : vector<4x32xf32> to vector<1x4x32xf32>
    %146 = arith.index_cast %c2_i32 : i32 to index
    %c0_42 = arith.constant 0 : index
    %c0_43 = arith.constant 0 : index
    %147 = vector.load %arg11[%146, %c0_42, %c0_43] : memref<8x4x64xf32, #tpu.memory_space<vmem>>, vector<1x4x32xf32>
    tpu.vector_store %arg11[%146, %c0_42, %c0_43], %145 {strides = array<i32>} : memref<8x4x64xf32, #tpu.memory_space<vmem>>, vector<1x4x32xf32>,
    %c3_i32 = arith.constant 3 : i32
    %148 = arith.index_cast %c3_i32 : i32 to index
    %c0_44 = arith.constant 0 : index
    %c0_45 = arith.constant 0 : index
    %149 = vector.load %arg2[%148, %c0_44, %c0_45] : memref<8x4x96xf32, #tpu.memory_space<vmem>>, vector<1x4x96xf32>
    %150 = vector.shape_cast %149 : vector<1x4x96xf32> to vector<4x96xf32>
    %151 = arith.index_cast %c3_i32 : i32 to index
    %c0_46 = arith.constant 0 : index
    %c0_47 = arith.constant 0 : index
    %152 = vector.load %arg1[%151, %c0_46, %c0_47] : memref<8x4x1xf32, #tpu.memory_space<vmem>>, vector<1x4x1xf32>
    %153 = vector.shape_cast %152 : vector<1x4x1xf32> to vector<4x1xf32>
    %c0_48 = arith.constant 0 : index
    %c0_49 = arith.constant 0 : index
    %154 = vector.load %arg4[%c0_48, %c0_49] : memref<32x96xf32, #tpu.memory_space<vmem>>, vector<32x96xf32>
    %cst_50 = arith.constant dense<0.000000e+00> : vector<4x96xf32>
    %155 = tpu.matmul %142, %154, %cst_50 {dimension_numbers = #tpu.dot_dimension_numbers<[1], [0], [0], [1], [0, 0, 1, 1], [], []>} : vector<4x32xf32>, vector<32x96xf32>, vector<4x96xf32> -> vector<4x96xf32>
    %c0_51 = arith.constant 0 : index
    %c0_52 = arith.constant 0 : index
    %156 = vector.load %arg6[%c0_51, %c0_52] : memref<1x96xf32, #tpu.memory_space<vmem>>, vector<1x96xf32>
    %157 = vector.broadcast %156 : vector<1x96xf32> to vector<4x96xf32>
    %158 = arith.addf %155, %157 : vector<4x96xf32>
    %159 = vector.extract_strided_slice %150 {offsets = [0, 0], sizes = [4, 32], strides = [1, 1]} : vector<4x96xf32> to vector<4x32xf32>
    %160 = vector.extract_strided_slice %158 {offsets = [0, 0], sizes = [4, 32], strides = [1, 1]} : vector<4x96xf32> to vector<4x32xf32>
    %161 = arith.addf %159, %160 : vector<4x32xf32>
    %162 = arith.negf %161 : vector<4x32xf32>
    %163 = math.exp %162 : vector<4x32xf32>
    %cst_53 = arith.constant 1.000000e+00 : f32
    %164 = vector.broadcast %cst_53 : f32 to vector<4x32xf32>
    %165 = arith.addf %164, %163 : vector<4x32xf32>
    %166 = arith.divf %164, %165 : vector<4x32xf32>
    %167 = vector.extract_strided_slice %150 {offsets = [0, 32], sizes = [4, 32], strides = [1, 1]} : vector<4x96xf32> to vector<4x32xf32>
    %168 = vector.extract_strided_slice %158 {offsets = [0, 32], sizes = [4, 32], strides = [1, 1]} : vector<4x96xf32> to vector<4x32xf32>
    %169 = arith.addf %167, %168 : vector<4x32xf32>
    %170 = arith.negf %169 : vector<4x32xf32>
    %171 = math.exp %170 : vector<4x32xf32>
    %cst_54 = arith.constant 1.000000e+00 : f32
    %172 = vector.broadcast %cst_54 : f32 to vector<4x32xf32>
    %173 = arith.addf %172, %171 : vector<4x32xf32>
    %174 = arith.divf %172, %173 : vector<4x32xf32>
    %175 = vector.extract_strided_slice %150 {offsets = [0, 64], sizes = [4, 32], strides = [1, 1]} : vector<4x96xf32> to vector<4x32xf32>
    %176 = vector.extract_strided_slice %158 {offsets = [0, 64], sizes = [4, 32], strides = [1, 1]} : vector<4x96xf32> to vector<4x32xf32>
    %177 = arith.mulf %166, %176 : vector<4x32xf32>
    %178 = arith.addf %175, %177 : vector<4x32xf32>
    %179 = math.tanh %178 : vector<4x32xf32>
    %cst_55 = arith.constant 1.000000e+00 : f32
    %180 = vector.broadcast %cst_55 : f32 to vector<4x32xf32>
    %181 = arith.subf %180, %174 : vector<4x32xf32>
    %182 = arith.mulf %181, %179 : vector<4x32xf32>
    %183 = arith.mulf %174, %142 : vector<4x32xf32>
    %184 = arith.addf %182, %183 : vector<4x32xf32>
    %185 = vector.broadcast %153 : vector<4x1xf32> to vector<4x32xf32>
    %186 = arith.mulf %185, %184 : vector<4x32xf32>
    %cst_56 = arith.constant 1.000000e+00 : f32
    %187 = vector.broadcast %cst_56 : f32 to vector<4x1xf32>
    %188 = arith.subf %187, %153 : vector<4x1xf32>
    %189 = vector.broadcast %188 : vector<4x1xf32> to vector<4x32xf32>
    %190 = arith.mulf %189, %142 : vector<4x32xf32>
    %191 = arith.addf %186, %190 : vector<4x32xf32>
    %192 = vector.broadcast %153 : vector<4x1xf32> to vector<4x32xf32>
    %193 = arith.mulf %192, %184 : vector<4x32xf32>
    %194 = vector.shape_cast %193 : vector<4x32xf32> to vector<1x4x32xf32>
    %195 = arith.index_cast %c3_i32 : i32 to index
    %c0_57 = arith.constant 0 : index
    %c0_58 = arith.constant 0 : index
    %196 = vector.load %arg11[%195, %c0_57, %c0_58] : memref<8x4x64xf32, #tpu.memory_space<vmem>>, vector<1x4x32xf32>
    tpu.vector_store %arg11[%195, %c0_57, %c0_58], %194 {strides = array<i32>} : memref<8x4x64xf32, #tpu.memory_space<vmem>>, vector<1x4x32xf32>,
    %c4_i32 = arith.constant 4 : i32
    %197 = arith.index_cast %c4_i32 : i32 to index
    %c0_59 = arith.constant 0 : index
    %c0_60 = arith.constant 0 : index
    %198 = vector.load %arg2[%197, %c0_59, %c0_60] : memref<8x4x96xf32, #tpu.memory_space<vmem>>, vector<1x4x96xf32>
    %199 = vector.shape_cast %198 : vector<1x4x96xf32> to vector<4x96xf32>
    %200 = arith.index_cast %c4_i32 : i32 to index
    %c0_61 = arith.constant 0 : index
    %c0_62 = arith.constant 0 : index
    %201 = vector.load %arg1[%200, %c0_61, %c0_62] : memref<8x4x1xf32, #tpu.memory_space<vmem>>, vector<1x4x1xf32>
    %202 = vector.shape_cast %201 : vector<1x4x1xf32> to vector<4x1xf32>
    %c0_63 = arith.constant 0 : index
    %c0_64 = arith.constant 0 : index
    %203 = vector.load %arg4[%c0_63, %c0_64] : memref<32x96xf32, #tpu.memory_space<vmem>>, vector<32x96xf32>
    %cst_65 = arith.constant dense<0.000000e+00> : vector<4x96xf32>
    %204 = tpu.matmul %191, %203, %cst_65 {dimension_numbers = #tpu.dot_dimension_numbers<[1], [0], [0], [1], [0, 0, 1, 1], [], []>} : vector<4x32xf32>, vector<32x96xf32>, vector<4x96xf32> -> vector<4x96xf32>
    %c0_66 = arith.constant 0 : index
    %c0_67 = arith.constant 0 : index
    %205 = vector.load %arg6[%c0_66, %c0_67] : memref<1x96xf32, #tpu.memory_space<vmem>>, vector<1x96xf32>
    %206 = vector.broadcast %205 : vector<1x96xf32> to vector<4x96xf32>
    %207 = arith.addf %204, %206 : vector<4x96xf32>
    %208 = vector.extract_strided_slice %199 {offsets = [0, 0], sizes = [4, 32], strides = [1, 1]} : vector<4x96xf32> to vector<4x32xf32>
    %209 = vector.extract_strided_slice %207 {offsets = [0, 0], sizes = [4, 32], strides = [1, 1]} : vector<4x96xf32> to vector<4x32xf32>
    %210 = arith.addf %208, %209 : vector<4x32xf32>
    %211 = arith.negf %210 : vector<4x32xf32>
    %212 = math.exp %211 : vector<4x32xf32>
    %cst_68 = arith.constant 1.000000e+00 : f32
    %213 = vector.broadcast %cst_68 : f32 to vector<4x32xf32>
    %214 = arith.addf %213, %212 : vector<4x32xf32>
    %215 = arith.divf %213, %214 : vector<4x32xf32>
    %216 = vector.extract_strided_slice %199 {offsets = [0, 32], sizes = [4, 32], strides = [1, 1]} : vector<4x96xf32> to vector<4x32xf32>
    %217 = vector.extract_strided_slice %207 {offsets = [0, 32], sizes = [4, 32], strides = [1, 1]} : vector<4x96xf32> to vector<4x32xf32>
    %218 = arith.addf %216, %217 : vector<4x32xf32>
    %219 = arith.negf %218 : vector<4x32xf32>
    %220 = math.exp %219 : vector<4x32xf32>
    %cst_69 = arith.constant 1.000000e+00 : f32
    %221 = vector.broadcast %cst_69 : f32 to vector<4x32xf32>
    %222 = arith.addf %221, %220 : vector<4x32xf32>
    %223 = arith.divf %221, %222 : vector<4x32xf32>
    %224 = vector.extract_strided_slice %199 {offsets = [0, 64], sizes = [4, 32], strides = [1, 1]} : vector<4x96xf32> to vector<4x32xf32>
    %225 = vector.extract_strided_slice %207 {offsets = [0, 64], sizes = [4, 32], strides = [1, 1]} : vector<4x96xf32> to vector<4x32xf32>
    %226 = arith.mulf %215, %225 : vector<4x32xf32>
    %227 = arith.addf %224, %226 : vector<4x32xf32>
    %228 = math.tanh %227 : vector<4x32xf32>
    %cst_70 = arith.constant 1.000000e+00 : f32
    %229 = vector.broadcast %cst_70 : f32 to vector<4x32xf32>
    %230 = arith.subf %229, %223 : vector<4x32xf32>
    %231 = arith.mulf %230, %228 : vector<4x32xf32>
    %232 = arith.mulf %223, %191 : vector<4x32xf32>
    %233 = arith.addf %231, %232 : vector<4x32xf32>
    %234 = vector.broadcast %202 : vector<4x1xf32> to vector<4x32xf32>
    %235 = arith.mulf %234, %233 : vector<4x32xf32>
    %cst_71 = arith.constant 1.000000e+00 : f32
    %236 = vector.broadcast %cst_71 : f32 to vector<4x1xf32>
    %237 = arith.subf %236, %202 : vector<4x1xf32>
    %238 = vector.broadcast %237 : vector<4x1xf32> to vector<4x32xf32>
    %239 = arith.mulf %238, %191 : vector<4x32xf32>
    %240 = arith.addf %235, %239 : vector<4x32xf32>
    %241 = vector.broadcast %202 : vector<4x1xf32> to vector<4x32xf32>
    %242 = arith.mulf %241, %233 : vector<4x32xf32>
    %243 = vector.shape_cast %242 : vector<4x32xf32> to vector<1x4x32xf32>
    %244 = arith.index_cast %c4_i32 : i32 to index
    %c0_72 = arith.constant 0 : index
    %c0_73 = arith.constant 0 : index
    %245 = vector.load %arg11[%244, %c0_72, %c0_73] : memref<8x4x64xf32, #tpu.memory_space<vmem>>, vector<1x4x32xf32>
    tpu.vector_store %arg11[%244, %c0_72, %c0_73], %243 {strides = array<i32>} : memref<8x4x64xf32, #tpu.memory_space<vmem>>, vector<1x4x32xf32>,
    %c5_i32 = arith.constant 5 : i32
    %246 = arith.index_cast %c5_i32 : i32 to index
    %c0_74 = arith.constant 0 : index
    %c0_75 = arith.constant 0 : index
    %247 = vector.load %arg2[%246, %c0_74, %c0_75] : memref<8x4x96xf32, #tpu.memory_space<vmem>>, vector<1x4x96xf32>
    %248 = vector.shape_cast %247 : vector<1x4x96xf32> to vector<4x96xf32>
    %249 = arith.index_cast %c5_i32 : i32 to index
    %c0_76 = arith.constant 0 : index
    %c0_77 = arith.constant 0 : index
    %250 = vector.load %arg1[%249, %c0_76, %c0_77] : memref<8x4x1xf32, #tpu.memory_space<vmem>>, vector<1x4x1xf32>
    %251 = vector.shape_cast %250 : vector<1x4x1xf32> to vector<4x1xf32>
    %c0_78 = arith.constant 0 : index
    %c0_79 = arith.constant 0 : index
    %252 = vector.load %arg4[%c0_78, %c0_79] : memref<32x96xf32, #tpu.memory_space<vmem>>, vector<32x96xf32>
    %cst_80 = arith.constant dense<0.000000e+00> : vector<4x96xf32>
    %253 = tpu.matmul %240, %252, %cst_80 {dimension_numbers = #tpu.dot_dimension_numbers<[1], [0], [0], [1], [0, 0, 1, 1], [], []>} : vector<4x32xf32>, vector<32x96xf32>, vector<4x96xf32> -> vector<4x96xf32>
    %c0_81 = arith.constant 0 : index
    %c0_82 = arith.constant 0 : index
    %254 = vector.load %arg6[%c0_81, %c0_82] : memref<1x96xf32, #tpu.memory_space<vmem>>, vector<1x96xf32>
    %255 = vector.broadcast %254 : vector<1x96xf32> to vector<4x96xf32>
    %256 = arith.addf %253, %255 : vector<4x96xf32>
    %257 = vector.extract_strided_slice %248 {offsets = [0, 0], sizes = [4, 32], strides = [1, 1]} : vector<4x96xf32> to vector<4x32xf32>
    %258 = vector.extract_strided_slice %256 {offsets = [0, 0], sizes = [4, 32], strides = [1, 1]} : vector<4x96xf32> to vector<4x32xf32>
    %259 = arith.addf %257, %258 : vector<4x32xf32>
    %260 = arith.negf %259 : vector<4x32xf32>
    %261 = math.exp %260 : vector<4x32xf32>
    %cst_83 = arith.constant 1.000000e+00 : f32
    %262 = vector.broadcast %cst_83 : f32 to vector<4x32xf32>
    %263 = arith.addf %262, %261 : vector<4x32xf32>
    %264 = arith.divf %262, %263 : vector<4x32xf32>
    %265 = vector.extract_strided_slice %248 {offsets = [0, 32], sizes = [4, 32], strides = [1, 1]} : vector<4x96xf32> to vector<4x32xf32>
    %266 = vector.extract_strided_slice %256 {offsets = [0, 32], sizes = [4, 32], strides = [1, 1]} : vector<4x96xf32> to vector<4x32xf32>
    %267 = arith.addf %265, %266 : vector<4x32xf32>
    %268 = arith.negf %267 : vector<4x32xf32>
    %269 = math.exp %268 : vector<4x32xf32>
    %cst_84 = arith.constant 1.000000e+00 : f32
    %270 = vector.broadcast %cst_84 : f32 to vector<4x32xf32>
    %271 = arith.addf %270, %269 : vector<4x32xf32>
    %272 = arith.divf %270, %271 : vector<4x32xf32>
    %273 = vector.extract_strided_slice %248 {offsets = [0, 64], sizes = [4, 32], strides = [1, 1]} : vector<4x96xf32> to vector<4x32xf32>
    %274 = vector.extract_strided_slice %256 {offsets = [0, 64], sizes = [4, 32], strides = [1, 1]} : vector<4x96xf32> to vector<4x32xf32>
    %275 = arith.mulf %264, %274 : vector<4x32xf32>
    %276 = arith.addf %273, %275 : vector<4x32xf32>
    %277 = math.tanh %276 : vector<4x32xf32>
    %cst_85 = arith.constant 1.000000e+00 : f32
    %278 = vector.broadcast %cst_85 : f32 to vector<4x32xf32>
    %279 = arith.subf %278, %272 : vector<4x32xf32>
    %280 = arith.mulf %279, %277 : vector<4x32xf32>
    %281 = arith.mulf %272, %240 : vector<4x32xf32>
    %282 = arith.addf %280, %281 : vector<4x32xf32>
    %283 = vector.broadcast %251 : vector<4x1xf32> to vector<4x32xf32>
    %284 = arith.mulf %283, %282 : vector<4x32xf32>
    %cst_86 = arith.constant 1.000000e+00 : f32
    %285 = vector.broadcast %cst_86 : f32 to vector<4x1xf32>
    %286 = arith.subf %285, %251 : vector<4x1xf32>
    %287 = vector.broadcast %286 : vector<4x1xf32> to vector<4x32xf32>
    %288 = arith.mulf %287, %240 : vector<4x32xf32>
    %289 = arith.addf %284, %288 : vector<4x32xf32>
    %290 = vector.broadcast %251 : vector<4x1xf32> to vector<4x32xf32>
    %291 = arith.mulf %290, %282 : vector<4x32xf32>
    %292 = vector.shape_cast %291 : vector<4x32xf32> to vector<1x4x32xf32>
    %293 = arith.index_cast %c5_i32 : i32 to index
    %c0_87 = arith.constant 0 : index
    %c0_88 = arith.constant 0 : index
    %294 = vector.load %arg11[%293, %c0_87, %c0_88] : memref<8x4x64xf32, #tpu.memory_space<vmem>>, vector<1x4x32xf32>
    tpu.vector_store %arg11[%293, %c0_87, %c0_88], %292 {strides = array<i32>} : memref<8x4x64xf32, #tpu.memory_space<vmem>>, vector<1x4x32xf32>,
    %c6_i32 = arith.constant 6 : i32
    %295 = arith.index_cast %c6_i32 : i32 to index
    %c0_89 = arith.constant 0 : index
    %c0_90 = arith.constant 0 : index
    %296 = vector.load %arg2[%295, %c0_89, %c0_90] : memref<8x4x96xf32, #tpu.memory_space<vmem>>, vector<1x4x96xf32>
    %297 = vector.shape_cast %296 : vector<1x4x96xf32> to vector<4x96xf32>
    %298 = arith.index_cast %c6_i32 : i32 to index
    %c0_91 = arith.constant 0 : index
    %c0_92 = arith.constant 0 : index
    %299 = vector.load %arg1[%298, %c0_91, %c0_92] : memref<8x4x1xf32, #tpu.memory_space<vmem>>, vector<1x4x1xf32>
    %300 = vector.shape_cast %299 : vector<1x4x1xf32> to vector<4x1xf32>
    %c0_93 = arith.constant 0 : index
    %c0_94 = arith.constant 0 : index
    %301 = vector.load %arg4[%c0_93, %c0_94] : memref<32x96xf32, #tpu.memory_space<vmem>>, vector<32x96xf32>
    %cst_95 = arith.constant dense<0.000000e+00> : vector<4x96xf32>
    %302 = tpu.matmul %289, %301, %cst_95 {dimension_numbers = #tpu.dot_dimension_numbers<[1], [0], [0], [1], [0, 0, 1, 1], [], []>} : vector<4x32xf32>, vector<32x96xf32>, vector<4x96xf32> -> vector<4x96xf32>
    %c0_96 = arith.constant 0 : index
    %c0_97 = arith.constant 0 : index
    %303 = vector.load %arg6[%c0_96, %c0_97] : memref<1x96xf32, #tpu.memory_space<vmem>>, vector<1x96xf32>
    %304 = vector.broadcast %303 : vector<1x96xf32> to vector<4x96xf32>
    %305 = arith.addf %302, %304 : vector<4x96xf32>
    %306 = vector.extract_strided_slice %297 {offsets = [0, 0], sizes = [4, 32], strides = [1, 1]} : vector<4x96xf32> to vector<4x32xf32>
    %307 = vector.extract_strided_slice %305 {offsets = [0, 0], sizes = [4, 32], strides = [1, 1]} : vector<4x96xf32> to vector<4x32xf32>
    %308 = arith.addf %306, %307 : vector<4x32xf32>
    %309 = arith.negf %308 : vector<4x32xf32>
    %310 = math.exp %309 : vector<4x32xf32>
    %cst_98 = arith.constant 1.000000e+00 : f32
    %311 = vector.broadcast %cst_98 : f32 to vector<4x32xf32>
    %312 = arith.addf %311, %310 : vector<4x32xf32>
    %313 = arith.divf %311, %312 : vector<4x32xf32>
    %314 = vector.extract_strided_slice %297 {offsets = [0, 32], sizes = [4, 32], strides = [1, 1]} : vector<4x96xf32> to vector<4x32xf32>
    %315 = vector.extract_strided_slice %305 {offsets = [0, 32], sizes = [4, 32], strides = [1, 1]} : vector<4x96xf32> to vector<4x32xf32>
    %316 = arith.addf %314, %315 : vector<4x32xf32>
    %317 = arith.negf %316 : vector<4x32xf32>
    %318 = math.exp %317 : vector<4x32xf32>
    %cst_99 = arith.constant 1.000000e+00 : f32
    %319 = vector.broadcast %cst_99 : f32 to vector<4x32xf32>
    %320 = arith.addf %319, %318 : vector<4x32xf32>
    %321 = arith.divf %319, %320 : vector<4x32xf32>
    %322 = vector.extract_strided_slice %297 {offsets = [0, 64], sizes = [4, 32], strides = [1, 1]} : vector<4x96xf32> to vector<4x32xf32>
    %323 = vector.extract_strided_slice %305 {offsets = [0, 64], sizes = [4, 32], strides = [1, 1]} : vector<4x96xf32> to vector<4x32xf32>
    %324 = arith.mulf %313, %323 : vector<4x32xf32>
    %325 = arith.addf %322, %324 : vector<4x32xf32>
    %326 = math.tanh %325 : vector<4x32xf32>
    %cst_100 = arith.constant 1.000000e+00 : f32
    %327 = vector.broadcast %cst_100 : f32 to vector<4x32xf32>
    %328 = arith.subf %327, %321 : vector<4x32xf32>
    %329 = arith.mulf %328, %326 : vector<4x32xf32>
    %330 = arith.mulf %321, %289 : vector<4x32xf32>
    %331 = arith.addf %329, %330 : vector<4x32xf32>
    %332 = vector.broadcast %300 : vector<4x1xf32> to vector<4x32xf32>
    %333 = arith.mulf %332, %331 : vector<4x32xf32>
    %cst_101 = arith.constant 1.000000e+00 : f32
    %334 = vector.broadcast %cst_101 : f32 to vector<4x1xf32>
    %335 = arith.subf %334, %300 : vector<4x1xf32>
    %336 = vector.broadcast %335 : vector<4x1xf32> to vector<4x32xf32>
    %337 = arith.mulf %336, %289 : vector<4x32xf32>
    %338 = arith.addf %333, %337 : vector<4x32xf32>
    %339 = vector.broadcast %300 : vector<4x1xf32> to vector<4x32xf32>
    %340 = arith.mulf %339, %331 : vector<4x32xf32>
    %341 = vector.shape_cast %340 : vector<4x32xf32> to vector<1x4x32xf32>
    %342 = arith.index_cast %c6_i32 : i32 to index
    %c0_102 = arith.constant 0 : index
    %c0_103 = arith.constant 0 : index
    %343 = vector.load %arg11[%342, %c0_102, %c0_103] : memref<8x4x64xf32, #tpu.memory_space<vmem>>, vector<1x4x32xf32>
    tpu.vector_store %arg11[%342, %c0_102, %c0_103], %341 {strides = array<i32>} : memref<8x4x64xf32, #tpu.memory_space<vmem>>, vector<1x4x32xf32>,
    %c7_i32 = arith.constant 7 : i32
    %344 = arith.index_cast %c7_i32 : i32 to index
    %c0_104 = arith.constant 0 : index
    %c0_105 = arith.constant 0 : index
    %345 = vector.load %arg2[%344, %c0_104, %c0_105] : memref<8x4x96xf32, #tpu.memory_space<vmem>>, vector<1x4x96xf32>
    %346 = vector.shape_cast %345 : vector<1x4x96xf32> to vector<4x96xf32>
    %347 = arith.index_cast %c7_i32 : i32 to index
    %c0_106 = arith.constant 0 : index
    %c0_107 = arith.constant 0 : index
    %348 = vector.load %arg1[%347, %c0_106, %c0_107] : memref<8x4x1xf32, #tpu.memory_space<vmem>>, vector<1x4x1xf32>
    %349 = vector.shape_cast %348 : vector<1x4x1xf32> to vector<4x1xf32>
    %c0_108 = arith.constant 0 : index
    %c0_109 = arith.constant 0 : index
    %350 = vector.load %arg4[%c0_108, %c0_109] : memref<32x96xf32, #tpu.memory_space<vmem>>, vector<32x96xf32>
    %cst_110 = arith.constant dense<0.000000e+00> : vector<4x96xf32>
    %351 = tpu.matmul %338, %350, %cst_110 {dimension_numbers = #tpu.dot_dimension_numbers<[1], [0], [0], [1], [0, 0, 1, 1], [], []>} : vector<4x32xf32>, vector<32x96xf32>, vector<4x96xf32> -> vector<4x96xf32>
    %c0_111 = arith.constant 0 : index
    %c0_112 = arith.constant 0 : index
    %352 = vector.load %arg6[%c0_111, %c0_112] : memref<1x96xf32, #tpu.memory_space<vmem>>, vector<1x96xf32>
    %353 = vector.broadcast %352 : vector<1x96xf32> to vector<4x96xf32>
    %354 = arith.addf %351, %353 : vector<4x96xf32>
    %355 = vector.extract_strided_slice %346 {offsets = [0, 0], sizes = [4, 32], strides = [1, 1]} : vector<4x96xf32> to vector<4x32xf32>
    %356 = vector.extract_strided_slice %354 {offsets = [0, 0], sizes = [4, 32], strides = [1, 1]} : vector<4x96xf32> to vector<4x32xf32>
    %357 = arith.addf %355, %356 : vector<4x32xf32>
    %358 = arith.negf %357 : vector<4x32xf32>
    %359 = math.exp %358 : vector<4x32xf32>
    %cst_113 = arith.constant 1.000000e+00 : f32
    %360 = vector.broadcast %cst_113 : f32 to vector<4x32xf32>
    %361 = arith.addf %360, %359 : vector<4x32xf32>
    %362 = arith.divf %360, %361 : vector<4x32xf32>
    %363 = vector.extract_strided_slice %346 {offsets = [0, 32], sizes = [4, 32], strides = [1, 1]} : vector<4x96xf32> to vector<4x32xf32>
    %364 = vector.extract_strided_slice %354 {offsets = [0, 32], sizes = [4, 32], strides = [1, 1]} : vector<4x96xf32> to vector<4x32xf32>
    %365 = arith.addf %363, %364 : vector<4x32xf32>
    %366 = arith.negf %365 : vector<4x32xf32>
    %367 = math.exp %366 : vector<4x32xf32>
    %cst_114 = arith.constant 1.000000e+00 : f32
    %368 = vector.broadcast %cst_114 : f32 to vector<4x32xf32>
    %369 = arith.addf %368, %367 : vector<4x32xf32>
    %370 = arith.divf %368, %369 : vector<4x32xf32>
    %371 = vector.extract_strided_slice %346 {offsets = [0, 64], sizes = [4, 32], strides = [1, 1]} : vector<4x96xf32> to vector<4x32xf32>
    %372 = vector.extract_strided_slice %354 {offsets = [0, 64], sizes = [4, 32], strides = [1, 1]} : vector<4x96xf32> to vector<4x32xf32>
    %373 = arith.mulf %362, %372 : vector<4x32xf32>
    %374 = arith.addf %371, %373 : vector<4x32xf32>
    %375 = math.tanh %374 : vector<4x32xf32>
    %cst_115 = arith.constant 1.000000e+00 : f32
    %376 = vector.broadcast %cst_115 : f32 to vector<4x32xf32>
    %377 = arith.subf %376, %370 : vector<4x32xf32>
    %378 = arith.mulf %377, %375 : vector<4x32xf32>
    %379 = arith.mulf %370, %338 : vector<4x32xf32>
    %380 = arith.addf %378, %379 : vector<4x32xf32>
    %381 = vector.broadcast %349 : vector<4x1xf32> to vector<4x32xf32>
    %382 = arith.mulf %381, %380 : vector<4x32xf32>
    %cst_116 = arith.constant 1.000000e+00 : f32
    %383 = vector.broadcast %cst_116 : f32 to vector<4x1xf32>
    %384 = arith.subf %383, %349 : vector<4x1xf32>
    %385 = vector.broadcast %384 : vector<4x1xf32> to vector<4x32xf32>
    %386 = arith.mulf %385, %338 : vector<4x32xf32>
    %387 = arith.addf %382, %386 : vector<4x32xf32>
    %388 = vector.broadcast %349 : vector<4x1xf32> to vector<4x32xf32>
    %389 = arith.mulf %388, %380 : vector<4x32xf32>
    %390 = vector.shape_cast %389 : vector<4x32xf32> to vector<1x4x32xf32>
    %391 = arith.index_cast %c7_i32 : i32 to index
    %c0_117 = arith.constant 0 : index
    %c0_118 = arith.constant 0 : index
    %392 = vector.load %arg11[%391, %c0_117, %c0_118] : memref<8x4x64xf32, #tpu.memory_space<vmem>>, vector<1x4x32xf32>
    tpu.vector_store %arg11[%391, %c0_117, %c0_118], %390 {strides = array<i32>} : memref<8x4x64xf32, #tpu.memory_space<vmem>>, vector<1x4x32xf32>,
    %c8_i32 = arith.constant 8 : i32
    %c0_i32_119 = arith.constant 0 : i32
    %c7_i32_120 = arith.constant 7 : i32
    %393 = arith.subi %c7_i32_120, %c0_i32_119 : i32
    %394 = arith.index_cast %393 : i32 to index
    %c0_121 = arith.constant 0 : index
    %c0_122 = arith.constant 0 : index
    %395 = vector.load %arg3[%394, %c0_121, %c0_122] : memref<8x4x96xf32, #tpu.memory_space<vmem>>, vector<1x4x96xf32>
    %396 = vector.shape_cast %395 : vector<1x4x96xf32> to vector<4x96xf32>
    %397 = arith.index_cast %393 : i32 to index
    %c0_123 = arith.constant 0 : index
    %c0_124 = arith.constant 0 : index
    %398 = vector.load %arg1[%397, %c0_123, %c0_124] : memref<8x4x1xf32, #tpu.memory_space<vmem>>, vector<1x4x1xf32>
    %399 = vector.shape_cast %398 : vector<1x4x1xf32> to vector<4x1xf32>
    %c0_125 = arith.constant 0 : index
    %c0_126 = arith.constant 0 : index
    %400 = vector.load %arg5[%c0_125, %c0_126] : memref<32x96xf32, #tpu.memory_space<vmem>>, vector<32x96xf32>
    %cst_127 = arith.constant dense<0.000000e+00> : vector<4x96xf32>
    %401 = tpu.matmul %0, %400, %cst_127 {dimension_numbers = #tpu.dot_dimension_numbers<[1], [0], [0], [1], [0, 0, 1, 1], [], []>} : vector<4x32xf32>, vector<32x96xf32>, vector<4x96xf32> -> vector<4x96xf32>
    %c0_128 = arith.constant 0 : index
    %c0_129 = arith.constant 0 : index
    %402 = vector.load %arg7[%c0_128, %c0_129] : memref<1x96xf32, #tpu.memory_space<vmem>>, vector<1x96xf32>
    %403 = vector.broadcast %402 : vector<1x96xf32> to vector<4x96xf32>
    %404 = arith.addf %401, %403 : vector<4x96xf32>
    %405 = vector.extract_strided_slice %396 {offsets = [0, 0], sizes = [4, 32], strides = [1, 1]} : vector<4x96xf32> to vector<4x32xf32>
    %406 = vector.extract_strided_slice %404 {offsets = [0, 0], sizes = [4, 32], strides = [1, 1]} : vector<4x96xf32> to vector<4x32xf32>
    %407 = arith.addf %405, %406 : vector<4x32xf32>
    %408 = arith.negf %407 : vector<4x32xf32>
    %409 = math.exp %408 : vector<4x32xf32>
    %cst_130 = arith.constant 1.000000e+00 : f32
    %410 = vector.broadcast %cst_130 : f32 to vector<4x32xf32>
    %411 = arith.addf %410, %409 : vector<4x32xf32>
    %412 = arith.divf %410, %411 : vector<4x32xf32>
    %413 = vector.extract_strided_slice %396 {offsets = [0, 32], sizes = [4, 32], strides = [1, 1]} : vector<4x96xf32> to vector<4x32xf32>
    %414 = vector.extract_strided_slice %404 {offsets = [0, 32], sizes = [4, 32], strides = [1, 1]} : vector<4x96xf32> to vector<4x32xf32>
    %415 = arith.addf %413, %414 : vector<4x32xf32>
    %416 = arith.negf %415 : vector<4x32xf32>
    %417 = math.exp %416 : vector<4x32xf32>
    %cst_131 = arith.constant 1.000000e+00 : f32
    %418 = vector.broadcast %cst_131 : f32 to vector<4x32xf32>
    %419 = arith.addf %418, %417 : vector<4x32xf32>
    %420 = arith.divf %418, %419 : vector<4x32xf32>
    %421 = vector.extract_strided_slice %396 {offsets = [0, 64], sizes = [4, 32], strides = [1, 1]} : vector<4x96xf32> to vector<4x32xf32>
    %422 = vector.extract_strided_slice %404 {offsets = [0, 64], sizes = [4, 32], strides = [1, 1]} : vector<4x96xf32> to vector<4x32xf32>
    %423 = arith.mulf %412, %422 : vector<4x32xf32>
    %424 = arith.addf %421, %423 : vector<4x32xf32>
    %425 = math.tanh %424 : vector<4x32xf32>
    %cst_132 = arith.constant 1.000000e+00 : f32
    %426 = vector.broadcast %cst_132 : f32 to vector<4x32xf32>
    %427 = arith.subf %426, %420 : vector<4x32xf32>
    %428 = arith.mulf %427, %425 : vector<4x32xf32>
    %429 = arith.mulf %420, %0 : vector<4x32xf32>
    %430 = arith.addf %428, %429 : vector<4x32xf32>
    %431 = vector.broadcast %399 : vector<4x1xf32> to vector<4x32xf32>
    %432 = arith.mulf %431, %430 : vector<4x32xf32>
    %cst_133 = arith.constant 1.000000e+00 : f32
    %433 = vector.broadcast %cst_133 : f32 to vector<4x1xf32>
    %434 = arith.subf %433, %399 : vector<4x1xf32>
    %435 = vector.broadcast %434 : vector<4x1xf32> to vector<4x32xf32>
    %436 = arith.mulf %435, %0 : vector<4x32xf32>
    %437 = arith.addf %432, %436 : vector<4x32xf32>
    %438 = vector.broadcast %399 : vector<4x1xf32> to vector<4x32xf32>
    %439 = arith.mulf %438, %430 : vector<4x32xf32>
    %440 = vector.shape_cast %439 : vector<4x32xf32> to vector<1x4x32xf32>
    %441 = arith.index_cast %393 : i32 to index
    %c0_134 = arith.constant 0 : index
    %c32 = arith.constant 32 : index
    %442 = vector.load %arg11[%441, %c0_134, %c32] : memref<8x4x64xf32, #tpu.memory_space<vmem>>, vector<1x4x32xf32>
    tpu.vector_store %arg11[%441, %c0_134, %c32], %440 {strides = array<i32>} : memref<8x4x64xf32, #tpu.memory_space<vmem>>, vector<1x4x32xf32>,
    %c1_i32_135 = arith.constant 1 : i32
    %c7_i32_136 = arith.constant 7 : i32
    %443 = arith.subi %c7_i32_136, %c1_i32_135 : i32
    %444 = arith.index_cast %443 : i32 to index
    %c0_137 = arith.constant 0 : index
    %c0_138 = arith.constant 0 : index
    %445 = vector.load %arg3[%444, %c0_137, %c0_138] : memref<8x4x96xf32, #tpu.memory_space<vmem>>, vector<1x4x96xf32>
    %446 = vector.shape_cast %445 : vector<1x4x96xf32> to vector<4x96xf32>
    %447 = arith.index_cast %443 : i32 to index
    %c0_139 = arith.constant 0 : index
    %c0_140 = arith.constant 0 : index
    %448 = vector.load %arg1[%447, %c0_139, %c0_140] : memref<8x4x1xf32, #tpu.memory_space<vmem>>, vector<1x4x1xf32>
    %449 = vector.shape_cast %448 : vector<1x4x1xf32> to vector<4x1xf32>
    %c0_141 = arith.constant 0 : index
    %c0_142 = arith.constant 0 : index
    %450 = vector.load %arg5[%c0_141, %c0_142] : memref<32x96xf32, #tpu.memory_space<vmem>>, vector<32x96xf32>
    %cst_143 = arith.constant dense<0.000000e+00> : vector<4x96xf32>
    %451 = tpu.matmul %437, %450, %cst_143 {dimension_numbers = #tpu.dot_dimension_numbers<[1], [0], [0], [1], [0, 0, 1, 1], [], []>} : vector<4x32xf32>, vector<32x96xf32>, vector<4x96xf32> -> vector<4x96xf32>
    %c0_144 = arith.constant 0 : index
    %c0_145 = arith.constant 0 : index
    %452 = vector.load %arg7[%c0_144, %c0_145] : memref<1x96xf32, #tpu.memory_space<vmem>>, vector<1x96xf32>
    %453 = vector.broadcast %452 : vector<1x96xf32> to vector<4x96xf32>
    %454 = arith.addf %451, %453 : vector<4x96xf32>
    %455 = vector.extract_strided_slice %446 {offsets = [0, 0], sizes = [4, 32], strides = [1, 1]} : vector<4x96xf32> to vector<4x32xf32>
    %456 = vector.extract_strided_slice %454 {offsets = [0, 0], sizes = [4, 32], strides = [1, 1]} : vector<4x96xf32> to vector<4x32xf32>
    %457 = arith.addf %455, %456 : vector<4x32xf32>
    %458 = arith.negf %457 : vector<4x32xf32>
    %459 = math.exp %458 : vector<4x32xf32>
    %cst_146 = arith.constant 1.000000e+00 : f32
    %460 = vector.broadcast %cst_146 : f32 to vector<4x32xf32>
    %461 = arith.addf %460, %459 : vector<4x32xf32>
    %462 = arith.divf %460, %461 : vector<4x32xf32>
    %463 = vector.extract_strided_slice %446 {offsets = [0, 32], sizes = [4, 32], strides = [1, 1]} : vector<4x96xf32> to vector<4x32xf32>
    %464 = vector.extract_strided_slice %454 {offsets = [0, 32], sizes = [4, 32], strides = [1, 1]} : vector<4x96xf32> to vector<4x32xf32>
    %465 = arith.addf %463, %464 : vector<4x32xf32>
    %466 = arith.negf %465 : vector<4x32xf32>
    %467 = math.exp %466 : vector<4x32xf32>
    %cst_147 = arith.constant 1.000000e+00 : f32
    %468 = vector.broadcast %cst_147 : f32 to vector<4x32xf32>
    %469 = arith.addf %468, %467 : vector<4x32xf32>
    %470 = arith.divf %468, %469 : vector<4x32xf32>
    %471 = vector.extract_strided_slice %446 {offsets = [0, 64], sizes = [4, 32], strides = [1, 1]} : vector<4x96xf32> to vector<4x32xf32>
    %472 = vector.extract_strided_slice %454 {offsets = [0, 64], sizes = [4, 32], strides = [1, 1]} : vector<4x96xf32> to vector<4x32xf32>
    %473 = arith.mulf %462, %472 : vector<4x32xf32>
    %474 = arith.addf %471, %473 : vector<4x32xf32>
    %475 = math.tanh %474 : vector<4x32xf32>
    %cst_148 = arith.constant 1.000000e+00 : f32
    %476 = vector.broadcast %cst_148 : f32 to vector<4x32xf32>
    %477 = arith.subf %476, %470 : vector<4x32xf32>
    %478 = arith.mulf %477, %475 : vector<4x32xf32>
    %479 = arith.mulf %470, %437 : vector<4x32xf32>
    %480 = arith.addf %478, %479 : vector<4x32xf32>
    %481 = vector.broadcast %449 : vector<4x1xf32> to vector<4x32xf32>
    %482 = arith.mulf %481, %480 : vector<4x32xf32>
    %cst_149 = arith.constant 1.000000e+00 : f32
    %483 = vector.broadcast %cst_149 : f32 to vector<4x1xf32>
    %484 = arith.subf %483, %449 : vector<4x1xf32>
    %485 = vector.broadcast %484 : vector<4x1xf32> to vector<4x32xf32>
    %486 = arith.mulf %485, %437 : vector<4x32xf32>
    %487 = arith.addf %482, %486 : vector<4x32xf32>
    %488 = vector.broadcast %449 : vector<4x1xf32> to vector<4x32xf32>
    %489 = arith.mulf %488, %480 : vector<4x32xf32>
    %490 = vector.shape_cast %489 : vector<4x32xf32> to vector<1x4x32xf32>
    %491 = arith.index_cast %443 : i32 to index
    %c0_150 = arith.constant 0 : index
    %c32_151 = arith.constant 32 : index
    %492 = vector.load %arg11[%491, %c0_150, %c32_151] : memref<8x4x64xf32, #tpu.memory_space<vmem>>, vector<1x4x32xf32>
    tpu.vector_store %arg11[%491, %c0_150, %c32_151], %490 {strides = array<i32>} : memref<8x4x64xf32, #tpu.memory_space<vmem>>, vector<1x4x32xf32>,
    %c2_i32_152 = arith.constant 2 : i32
    %c7_i32_153 = arith.constant 7 : i32
    %493 = arith.subi %c7_i32_153, %c2_i32_152 : i32
    %494 = arith.index_cast %493 : i32 to index
    %c0_154 = arith.constant 0 : index
    %c0_155 = arith.constant 0 : index
    %495 = vector.load %arg3[%494, %c0_154, %c0_155] : memref<8x4x96xf32, #tpu.memory_space<vmem>>, vector<1x4x96xf32>
    %496 = vector.shape_cast %495 : vector<1x4x96xf32> to vector<4x96xf32>
    %497 = arith.index_cast %493 : i32 to index
    %c0_156 = arith.constant 0 : index
    %c0_157 = arith.constant 0 : index
    %498 = vector.load %arg1[%497, %c0_156, %c0_157] : memref<8x4x1xf32, #tpu.memory_space<vmem>>, vector<1x4x1xf32>
    %499 = vector.shape_cast %498 : vector<1x4x1xf32> to vector<4x1xf32>
    %c0_158 = arith.constant 0 : index
    %c0_159 = arith.constant 0 : index
    %500 = vector.load %arg5[%c0_158, %c0_159] : memref<32x96xf32, #tpu.memory_space<vmem>>, vector<32x96xf32>
    %cst_160 = arith.constant dense<0.000000e+00> : vector<4x96xf32>
    %501 = tpu.matmul %487, %500, %cst_160 {dimension_numbers = #tpu.dot_dimension_numbers<[1], [0], [0], [1], [0, 0, 1, 1], [], []>} : vector<4x32xf32>, vector<32x96xf32>, vector<4x96xf32> -> vector<4x96xf32>
    %c0_161 = arith.constant 0 : index
    %c0_162 = arith.constant 0 : index
    %502 = vector.load %arg7[%c0_161, %c0_162] : memref<1x96xf32, #tpu.memory_space<vmem>>, vector<1x96xf32>
    %503 = vector.broadcast %502 : vector<1x96xf32> to vector<4x96xf32>
    %504 = arith.addf %501, %503 : vector<4x96xf32>
    %505 = vector.extract_strided_slice %496 {offsets = [0, 0], sizes = [4, 32], strides = [1, 1]} : vector<4x96xf32> to vector<4x32xf32>
    %506 = vector.extract_strided_slice %504 {offsets = [0, 0], sizes = [4, 32], strides = [1, 1]} : vector<4x96xf32> to vector<4x32xf32>
    %507 = arith.addf %505, %506 : vector<4x32xf32>
    %508 = arith.negf %507 : vector<4x32xf32>
    %509 = math.exp %508 : vector<4x32xf32>
    %cst_163 = arith.constant 1.000000e+00 : f32
    %510 = vector.broadcast %cst_163 : f32 to vector<4x32xf32>
    %511 = arith.addf %510, %509 : vector<4x32xf32>
    %512 = arith.divf %510, %511 : vector<4x32xf32>
    %513 = vector.extract_strided_slice %496 {offsets = [0, 32], sizes = [4, 32], strides = [1, 1]} : vector<4x96xf32> to vector<4x32xf32>
    %514 = vector.extract_strided_slice %504 {offsets = [0, 32], sizes = [4, 32], strides = [1, 1]} : vector<4x96xf32> to vector<4x32xf32>
    %515 = arith.addf %513, %514 : vector<4x32xf32>
    %516 = arith.negf %515 : vector<4x32xf32>
    %517 = math.exp %516 : vector<4x32xf32>
    %cst_164 = arith.constant 1.000000e+00 : f32
    %518 = vector.broadcast %cst_164 : f32 to vector<4x32xf32>
    %519 = arith.addf %518, %517 : vector<4x32xf32>
    %520 = arith.divf %518, %519 : vector<4x32xf32>
    %521 = vector.extract_strided_slice %496 {offsets = [0, 64], sizes = [4, 32], strides = [1, 1]} : vector<4x96xf32> to vector<4x32xf32>
    %522 = vector.extract_strided_slice %504 {offsets = [0, 64], sizes = [4, 32], strides = [1, 1]} : vector<4x96xf32> to vector<4x32xf32>
    %523 = arith.mulf %512, %522 : vector<4x32xf32>
    %524 = arith.addf %521, %523 : vector<4x32xf32>
    %525 = math.tanh %524 : vector<4x32xf32>
    %cst_165 = arith.constant 1.000000e+00 : f32
    %526 = vector.broadcast %cst_165 : f32 to vector<4x32xf32>
    %527 = arith.subf %526, %520 : vector<4x32xf32>
    %528 = arith.mulf %527, %525 : vector<4x32xf32>
    %529 = arith.mulf %520, %487 : vector<4x32xf32>
    %530 = arith.addf %528, %529 : vector<4x32xf32>
    %531 = vector.broadcast %499 : vector<4x1xf32> to vector<4x32xf32>
    %532 = arith.mulf %531, %530 : vector<4x32xf32>
    %cst_166 = arith.constant 1.000000e+00 : f32
    %533 = vector.broadcast %cst_166 : f32 to vector<4x1xf32>
    %534 = arith.subf %533, %499 : vector<4x1xf32>
    %535 = vector.broadcast %534 : vector<4x1xf32> to vector<4x32xf32>
    %536 = arith.mulf %535, %487 : vector<4x32xf32>
    %537 = arith.addf %532, %536 : vector<4x32xf32>
    %538 = vector.broadcast %499 : vector<4x1xf32> to vector<4x32xf32>
    %539 = arith.mulf %538, %530 : vector<4x32xf32>
    %540 = vector.shape_cast %539 : vector<4x32xf32> to vector<1x4x32xf32>
    %541 = arith.index_cast %493 : i32 to index
    %c0_167 = arith.constant 0 : index
    %c32_168 = arith.constant 32 : index
    %542 = vector.load %arg11[%541, %c0_167, %c32_168] : memref<8x4x64xf32, #tpu.memory_space<vmem>>, vector<1x4x32xf32>
    tpu.vector_store %arg11[%541, %c0_167, %c32_168], %540 {strides = array<i32>} : memref<8x4x64xf32, #tpu.memory_space<vmem>>, vector<1x4x32xf32>,
    %c3_i32_169 = arith.constant 3 : i32
    %c7_i32_170 = arith.constant 7 : i32
    %543 = arith.subi %c7_i32_170, %c3_i32_169 : i32
    %544 = arith.index_cast %543 : i32 to index
    %c0_171 = arith.constant 0 : index
    %c0_172 = arith.constant 0 : index
    %545 = vector.load %arg3[%544, %c0_171, %c0_172] : memref<8x4x96xf32, #tpu.memory_space<vmem>>, vector<1x4x96xf32>
    %546 = vector.shape_cast %545 : vector<1x4x96xf32> to vector<4x96xf32>
    %547 = arith.index_cast %543 : i32 to index
    %c0_173 = arith.constant 0 : index
    %c0_174 = arith.constant 0 : index
    %548 = vector.load %arg1[%547, %c0_173, %c0_174] : memref<8x4x1xf32, #tpu.memory_space<vmem>>, vector<1x4x1xf32>
    %549 = vector.shape_cast %548 : vector<1x4x1xf32> to vector<4x1xf32>
    %c0_175 = arith.constant 0 : index
    %c0_176 = arith.constant 0 : index
    %550 = vector.load %arg5[%c0_175, %c0_176] : memref<32x96xf32, #tpu.memory_space<vmem>>, vector<32x96xf32>
    %cst_177 = arith.constant dense<0.000000e+00> : vector<4x96xf32>
    %551 = tpu.matmul %537, %550, %cst_177 {dimension_numbers = #tpu.dot_dimension_numbers<[1], [0], [0], [1], [0, 0, 1, 1], [], []>} : vector<4x32xf32>, vector<32x96xf32>, vector<4x96xf32> -> vector<4x96xf32>
    %c0_178 = arith.constant 0 : index
    %c0_179 = arith.constant 0 : index
    %552 = vector.load %arg7[%c0_178, %c0_179] : memref<1x96xf32, #tpu.memory_space<vmem>>, vector<1x96xf32>
    %553 = vector.broadcast %552 : vector<1x96xf32> to vector<4x96xf32>
    %554 = arith.addf %551, %553 : vector<4x96xf32>
    %555 = vector.extract_strided_slice %546 {offsets = [0, 0], sizes = [4, 32], strides = [1, 1]} : vector<4x96xf32> to vector<4x32xf32>
    %556 = vector.extract_strided_slice %554 {offsets = [0, 0], sizes = [4, 32], strides = [1, 1]} : vector<4x96xf32> to vector<4x32xf32>
    %557 = arith.addf %555, %556 : vector<4x32xf32>
    %558 = arith.negf %557 : vector<4x32xf32>
    %559 = math.exp %558 : vector<4x32xf32>
    %cst_180 = arith.constant 1.000000e+00 : f32
    %560 = vector.broadcast %cst_180 : f32 to vector<4x32xf32>
    %561 = arith.addf %560, %559 : vector<4x32xf32>
    %562 = arith.divf %560, %561 : vector<4x32xf32>
    %563 = vector.extract_strided_slice %546 {offsets = [0, 32], sizes = [4, 32], strides = [1, 1]} : vector<4x96xf32> to vector<4x32xf32>
    %564 = vector.extract_strided_slice %554 {offsets = [0, 32], sizes = [4, 32], strides = [1, 1]} : vector<4x96xf32> to vector<4x32xf32>
    %565 = arith.addf %563, %564 : vector<4x32xf32>
    %566 = arith.negf %565 : vector<4x32xf32>
    %567 = math.exp %566 : vector<4x32xf32>
    %cst_181 = arith.constant 1.000000e+00 : f32
    %568 = vector.broadcast %cst_181 : f32 to vector<4x32xf32>
    %569 = arith.addf %568, %567 : vector<4x32xf32>
    %570 = arith.divf %568, %569 : vector<4x32xf32>
    %571 = vector.extract_strided_slice %546 {offsets = [0, 64], sizes = [4, 32], strides = [1, 1]} : vector<4x96xf32> to vector<4x32xf32>
    %572 = vector.extract_strided_slice %554 {offsets = [0, 64], sizes = [4, 32], strides = [1, 1]} : vector<4x96xf32> to vector<4x32xf32>
    %573 = arith.mulf %562, %572 : vector<4x32xf32>
    %574 = arith.addf %571, %573 : vector<4x32xf32>
    %575 = math.tanh %574 : vector<4x32xf32>
    %cst_182 = arith.constant 1.000000e+00 : f32
    %576 = vector.broadcast %cst_182 : f32 to vector<4x32xf32>
    %577 = arith.subf %576, %570 : vector<4x32xf32>
    %578 = arith.mulf %577, %575 : vector<4x32xf32>
    %579 = arith.mulf %570, %537 : vector<4x32xf32>
    %580 = arith.addf %578, %579 : vector<4x32xf32>
    %581 = vector.broadcast %549 : vector<4x1xf32> to vector<4x32xf32>
    %582 = arith.mulf %581, %580 : vector<4x32xf32>
    %cst_183 = arith.constant 1.000000e+00 : f32
    %583 = vector.broadcast %cst_183 : f32 to vector<4x1xf32>
    %584 = arith.subf %583, %549 : vector<4x1xf32>
    %585 = vector.broadcast %584 : vector<4x1xf32> to vector<4x32xf32>
    %586 = arith.mulf %585, %537 : vector<4x32xf32>
    %587 = arith.addf %582, %586 : vector<4x32xf32>
    %588 = vector.broadcast %549 : vector<4x1xf32> to vector<4x32xf32>
    %589 = arith.mulf %588, %580 : vector<4x32xf32>
    %590 = vector.shape_cast %589 : vector<4x32xf32> to vector<1x4x32xf32>
    %591 = arith.index_cast %543 : i32 to index
    %c0_184 = arith.constant 0 : index
    %c32_185 = arith.constant 32 : index
    %592 = vector.load %arg11[%591, %c0_184, %c32_185] : memref<8x4x64xf32, #tpu.memory_space<vmem>>, vector<1x4x32xf32>
    tpu.vector_store %arg11[%591, %c0_184, %c32_185], %590 {strides = array<i32>} : memref<8x4x64xf32, #tpu.memory_space<vmem>>, vector<1x4x32xf32>,
    %c4_i32_186 = arith.constant 4 : i32
    %c7_i32_187 = arith.constant 7 : i32
    %593 = arith.subi %c7_i32_187, %c4_i32_186 : i32
    %594 = arith.index_cast %593 : i32 to index
    %c0_188 = arith.constant 0 : index
    %c0_189 = arith.constant 0 : index
    %595 = vector.load %arg3[%594, %c0_188, %c0_189] : memref<8x4x96xf32, #tpu.memory_space<vmem>>, vector<1x4x96xf32>
    %596 = vector.shape_cast %595 : vector<1x4x96xf32> to vector<4x96xf32>
    %597 = arith.index_cast %593 : i32 to index
    %c0_190 = arith.constant 0 : index
    %c0_191 = arith.constant 0 : index
    %598 = vector.load %arg1[%597, %c0_190, %c0_191] : memref<8x4x1xf32, #tpu.memory_space<vmem>>, vector<1x4x1xf32>
    %599 = vector.shape_cast %598 : vector<1x4x1xf32> to vector<4x1xf32>
    %c0_192 = arith.constant 0 : index
    %c0_193 = arith.constant 0 : index
    %600 = vector.load %arg5[%c0_192, %c0_193] : memref<32x96xf32, #tpu.memory_space<vmem>>, vector<32x96xf32>
    %cst_194 = arith.constant dense<0.000000e+00> : vector<4x96xf32>
    %601 = tpu.matmul %587, %600, %cst_194 {dimension_numbers = #tpu.dot_dimension_numbers<[1], [0], [0], [1], [0, 0, 1, 1], [], []>} : vector<4x32xf32>, vector<32x96xf32>, vector<4x96xf32> -> vector<4x96xf32>
    %c0_195 = arith.constant 0 : index
    %c0_196 = arith.constant 0 : index
    %602 = vector.load %arg7[%c0_195, %c0_196] : memref<1x96xf32, #tpu.memory_space<vmem>>, vector<1x96xf32>
    %603 = vector.broadcast %602 : vector<1x96xf32> to vector<4x96xf32>
    %604 = arith.addf %601, %603 : vector<4x96xf32>
    %605 = vector.extract_strided_slice %596 {offsets = [0, 0], sizes = [4, 32], strides = [1, 1]} : vector<4x96xf32> to vector<4x32xf32>
    %606 = vector.extract_strided_slice %604 {offsets = [0, 0], sizes = [4, 32], strides = [1, 1]} : vector<4x96xf32> to vector<4x32xf32>
    %607 = arith.addf %605, %606 : vector<4x32xf32>
    %608 = arith.negf %607 : vector<4x32xf32>
    %609 = math.exp %608 : vector<4x32xf32>
    %cst_197 = arith.constant 1.000000e+00 : f32
    %610 = vector.broadcast %cst_197 : f32 to vector<4x32xf32>
    %611 = arith.addf %610, %609 : vector<4x32xf32>
    %612 = arith.divf %610, %611 : vector<4x32xf32>
    %613 = vector.extract_strided_slice %596 {offsets = [0, 32], sizes = [4, 32], strides = [1, 1]} : vector<4x96xf32> to vector<4x32xf32>
    %614 = vector.extract_strided_slice %604 {offsets = [0, 32], sizes = [4, 32], strides = [1, 1]} : vector<4x96xf32> to vector<4x32xf32>
    %615 = arith.addf %613, %614 : vector<4x32xf32>
    %616 = arith.negf %615 : vector<4x32xf32>
    %617 = math.exp %616 : vector<4x32xf32>
    %cst_198 = arith.constant 1.000000e+00 : f32
    %618 = vector.broadcast %cst_198 : f32 to vector<4x32xf32>
    %619 = arith.addf %618, %617 : vector<4x32xf32>
    %620 = arith.divf %618, %619 : vector<4x32xf32>
    %621 = vector.extract_strided_slice %596 {offsets = [0, 64], sizes = [4, 32], strides = [1, 1]} : vector<4x96xf32> to vector<4x32xf32>
    %622 = vector.extract_strided_slice %604 {offsets = [0, 64], sizes = [4, 32], strides = [1, 1]} : vector<4x96xf32> to vector<4x32xf32>
    %623 = arith.mulf %612, %622 : vector<4x32xf32>
    %624 = arith.addf %621, %623 : vector<4x32xf32>
    %625 = math.tanh %624 : vector<4x32xf32>
    %cst_199 = arith.constant 1.000000e+00 : f32
    %626 = vector.broadcast %cst_199 : f32 to vector<4x32xf32>
    %627 = arith.subf %626, %620 : vector<4x32xf32>
    %628 = arith.mulf %627, %625 : vector<4x32xf32>
    %629 = arith.mulf %620, %587 : vector<4x32xf32>
    %630 = arith.addf %628, %629 : vector<4x32xf32>
    %631 = vector.broadcast %599 : vector<4x1xf32> to vector<4x32xf32>
    %632 = arith.mulf %631, %630 : vector<4x32xf32>
    %cst_200 = arith.constant 1.000000e+00 : f32
    %633 = vector.broadcast %cst_200 : f32 to vector<4x1xf32>
    %634 = arith.subf %633, %599 : vector<4x1xf32>
    %635 = vector.broadcast %634 : vector<4x1xf32> to vector<4x32xf32>
    %636 = arith.mulf %635, %587 : vector<4x32xf32>
    %637 = arith.addf %632, %636 : vector<4x32xf32>
    %638 = vector.broadcast %599 : vector<4x1xf32> to vector<4x32xf32>
    %639 = arith.mulf %638, %630 : vector<4x32xf32>
    %640 = vector.shape_cast %639 : vector<4x32xf32> to vector<1x4x32xf32>
    %641 = arith.index_cast %593 : i32 to index
    %c0_201 = arith.constant 0 : index
    %c32_202 = arith.constant 32 : index
    %642 = vector.load %arg11[%641, %c0_201, %c32_202] : memref<8x4x64xf32, #tpu.memory_space<vmem>>, vector<1x4x32xf32>
    tpu.vector_store %arg11[%641, %c0_201, %c32_202], %640 {strides = array<i32>} : memref<8x4x64xf32, #tpu.memory_space<vmem>>, vector<1x4x32xf32>,
    %c5_i32_203 = arith.constant 5 : i32
    %c7_i32_204 = arith.constant 7 : i32
    %643 = arith.subi %c7_i32_204, %c5_i32_203 : i32
    %644 = arith.index_cast %643 : i32 to index
    %c0_205 = arith.constant 0 : index
    %c0_206 = arith.constant 0 : index
    %645 = vector.load %arg3[%644, %c0_205, %c0_206] : memref<8x4x96xf32, #tpu.memory_space<vmem>>, vector<1x4x96xf32>
    %646 = vector.shape_cast %645 : vector<1x4x96xf32> to vector<4x96xf32>
    %647 = arith.index_cast %643 : i32 to index
    %c0_207 = arith.constant 0 : index
    %c0_208 = arith.constant 0 : index
    %648 = vector.load %arg1[%647, %c0_207, %c0_208] : memref<8x4x1xf32, #tpu.memory_space<vmem>>, vector<1x4x1xf32>
    %649 = vector.shape_cast %648 : vector<1x4x1xf32> to vector<4x1xf32>
    %c0_209 = arith.constant 0 : index
    %c0_210 = arith.constant 0 : index
    %650 = vector.load %arg5[%c0_209, %c0_210] : memref<32x96xf32, #tpu.memory_space<vmem>>, vector<32x96xf32>
    %cst_211 = arith.constant dense<0.000000e+00> : vector<4x96xf32>
    %651 = tpu.matmul %637, %650, %cst_211 {dimension_numbers = #tpu.dot_dimension_numbers<[1], [0], [0], [1], [0, 0, 1, 1], [], []>} : vector<4x32xf32>, vector<32x96xf32>, vector<4x96xf32> -> vector<4x96xf32>
    %c0_212 = arith.constant 0 : index
    %c0_213 = arith.constant 0 : index
    %652 = vector.load %arg7[%c0_212, %c0_213] : memref<1x96xf32, #tpu.memory_space<vmem>>, vector<1x96xf32>
    %653 = vector.broadcast %652 : vector<1x96xf32> to vector<4x96xf32>
    %654 = arith.addf %651, %653 : vector<4x96xf32>
    %655 = vector.extract_strided_slice %646 {offsets = [0, 0], sizes = [4, 32], strides = [1, 1]} : vector<4x96xf32> to vector<4x32xf32>
    %656 = vector.extract_strided_slice %654 {offsets = [0, 0], sizes = [4, 32], strides = [1, 1]} : vector<4x96xf32> to vector<4x32xf32>
    %657 = arith.addf %655, %656 : vector<4x32xf32>
    %658 = arith.negf %657 : vector<4x32xf32>
    %659 = math.exp %658 : vector<4x32xf32>
    %cst_214 = arith.constant 1.000000e+00 : f32
    %660 = vector.broadcast %cst_214 : f32 to vector<4x32xf32>
    %661 = arith.addf %660, %659 : vector<4x32xf32>
    %662 = arith.divf %660, %661 : vector<4x32xf32>
    %663 = vector.extract_strided_slice %646 {offsets = [0, 32], sizes = [4, 32], strides = [1, 1]} : vector<4x96xf32> to vector<4x32xf32>
    %664 = vector.extract_strided_slice %654 {offsets = [0, 32], sizes = [4, 32], strides = [1, 1]} : vector<4x96xf32> to vector<4x32xf32>
    %665 = arith.addf %663, %664 : vector<4x32xf32>
    %666 = arith.negf %665 : vector<4x32xf32>
    %667 = math.exp %666 : vector<4x32xf32>
    %cst_215 = arith.constant 1.000000e+00 : f32
    %668 = vector.broadcast %cst_215 : f32 to vector<4x32xf32>
    %669 = arith.addf %668, %667 : vector<4x32xf32>
    %670 = arith.divf %668, %669 : vector<4x32xf32>
    %671 = vector.extract_strided_slice %646 {offsets = [0, 64], sizes = [4, 32], strides = [1, 1]} : vector<4x96xf32> to vector<4x32xf32>
    %672 = vector.extract_strided_slice %654 {offsets = [0, 64], sizes = [4, 32], strides = [1, 1]} : vector<4x96xf32> to vector<4x32xf32>
    %673 = arith.mulf %662, %672 : vector<4x32xf32>
    %674 = arith.addf %671, %673 : vector<4x32xf32>
    %675 = math.tanh %674 : vector<4x32xf32>
    %cst_216 = arith.constant 1.000000e+00 : f32
    %676 = vector.broadcast %cst_216 : f32 to vector<4x32xf32>
    %677 = arith.subf %676, %670 : vector<4x32xf32>
    %678 = arith.mulf %677, %675 : vector<4x32xf32>
    %679 = arith.mulf %670, %637 : vector<4x32xf32>
    %680 = arith.addf %678, %679 : vector<4x32xf32>
    %681 = vector.broadcast %649 : vector<4x1xf32> to vector<4x32xf32>
    %682 = arith.mulf %681, %680 : vector<4x32xf32>
    %cst_217 = arith.constant 1.000000e+00 : f32
    %683 = vector.broadcast %cst_217 : f32 to vector<4x1xf32>
    %684 = arith.subf %683, %649 : vector<4x1xf32>
    %685 = vector.broadcast %684 : vector<4x1xf32> to vector<4x32xf32>
    %686 = arith.mulf %685, %637 : vector<4x32xf32>
    %687 = arith.addf %682, %686 : vector<4x32xf32>
    %688 = vector.broadcast %649 : vector<4x1xf32> to vector<4x32xf32>
    %689 = arith.mulf %688, %680 : vector<4x32xf32>
    %690 = vector.shape_cast %689 : vector<4x32xf32> to vector<1x4x32xf32>
    %691 = arith.index_cast %643 : i32 to index
    %c0_218 = arith.constant 0 : index
    %c32_219 = arith.constant 32 : index
    %692 = vector.load %arg11[%691, %c0_218, %c32_219] : memref<8x4x64xf32, #tpu.memory_space<vmem>>, vector<1x4x32xf32>
    tpu.vector_store %arg11[%691, %c0_218, %c32_219], %690 {strides = array<i32>} : memref<8x4x64xf32, #tpu.memory_space<vmem>>, vector<1x4x32xf32>,
    %c6_i32_220 = arith.constant 6 : i32
    %c7_i32_221 = arith.constant 7 : i32
    %693 = arith.subi %c7_i32_221, %c6_i32_220 : i32
    %694 = arith.index_cast %693 : i32 to index
    %c0_222 = arith.constant 0 : index
    %c0_223 = arith.constant 0 : index
    %695 = vector.load %arg3[%694, %c0_222, %c0_223] : memref<8x4x96xf32, #tpu.memory_space<vmem>>, vector<1x4x96xf32>
    %696 = vector.shape_cast %695 : vector<1x4x96xf32> to vector<4x96xf32>
    %697 = arith.index_cast %693 : i32 to index
    %c0_224 = arith.constant 0 : index
    %c0_225 = arith.constant 0 : index
    %698 = vector.load %arg1[%697, %c0_224, %c0_225] : memref<8x4x1xf32, #tpu.memory_space<vmem>>, vector<1x4x1xf32>
    %699 = vector.shape_cast %698 : vector<1x4x1xf32> to vector<4x1xf32>
    %c0_226 = arith.constant 0 : index
    %c0_227 = arith.constant 0 : index
    %700 = vector.load %arg5[%c0_226, %c0_227] : memref<32x96xf32, #tpu.memory_space<vmem>>, vector<32x96xf32>
    %cst_228 = arith.constant dense<0.000000e+00> : vector<4x96xf32>
    %701 = tpu.matmul %687, %700, %cst_228 {dimension_numbers = #tpu.dot_dimension_numbers<[1], [0], [0], [1], [0, 0, 1, 1], [], []>} : vector<4x32xf32>, vector<32x96xf32>, vector<4x96xf32> -> vector<4x96xf32>
    %c0_229 = arith.constant 0 : index
    %c0_230 = arith.constant 0 : index
    %702 = vector.load %arg7[%c0_229, %c0_230] : memref<1x96xf32, #tpu.memory_space<vmem>>, vector<1x96xf32>
    %703 = vector.broadcast %702 : vector<1x96xf32> to vector<4x96xf32>
    %704 = arith.addf %701, %703 : vector<4x96xf32>
    %705 = vector.extract_strided_slice %696 {offsets = [0, 0], sizes = [4, 32], strides = [1, 1]} : vector<4x96xf32> to vector<4x32xf32>
    %706 = vector.extract_strided_slice %704 {offsets = [0, 0], sizes = [4, 32], strides = [1, 1]} : vector<4x96xf32> to vector<4x32xf32>
    %707 = arith.addf %705, %706 : vector<4x32xf32>
    %708 = arith.negf %707 : vector<4x32xf32>
    %709 = math.exp %708 : vector<4x32xf32>
    %cst_231 = arith.constant 1.000000e+00 : f32
    %710 = vector.broadcast %cst_231 : f32 to vector<4x32xf32>
    %711 = arith.addf %710, %709 : vector<4x32xf32>
    %712 = arith.divf %710, %711 : vector<4x32xf32>
    %713 = vector.extract_strided_slice %696 {offsets = [0, 32], sizes = [4, 32], strides = [1, 1]} : vector<4x96xf32> to vector<4x32xf32>
    %714 = vector.extract_strided_slice %704 {offsets = [0, 32], sizes = [4, 32], strides = [1, 1]} : vector<4x96xf32> to vector<4x32xf32>
    %715 = arith.addf %713, %714 : vector<4x32xf32>
    %716 = arith.negf %715 : vector<4x32xf32>
    %717 = math.exp %716 : vector<4x32xf32>
    %cst_232 = arith.constant 1.000000e+00 : f32
    %718 = vector.broadcast %cst_232 : f32 to vector<4x32xf32>
    %719 = arith.addf %718, %717 : vector<4x32xf32>
    %720 = arith.divf %718, %719 : vector<4x32xf32>
    %721 = vector.extract_strided_slice %696 {offsets = [0, 64], sizes = [4, 32], strides = [1, 1]} : vector<4x96xf32> to vector<4x32xf32>
    %722 = vector.extract_strided_slice %704 {offsets = [0, 64], sizes = [4, 32], strides = [1, 1]} : vector<4x96xf32> to vector<4x32xf32>
    %723 = arith.mulf %712, %722 : vector<4x32xf32>
    %724 = arith.addf %721, %723 : vector<4x32xf32>
    %725 = math.tanh %724 : vector<4x32xf32>
    %cst_233 = arith.constant 1.000000e+00 : f32
    %726 = vector.broadcast %cst_233 : f32 to vector<4x32xf32>
    %727 = arith.subf %726, %720 : vector<4x32xf32>
    %728 = arith.mulf %727, %725 : vector<4x32xf32>
    %729 = arith.mulf %720, %687 : vector<4x32xf32>
    %730 = arith.addf %728, %729 : vector<4x32xf32>
    %731 = vector.broadcast %699 : vector<4x1xf32> to vector<4x32xf32>
    %732 = arith.mulf %731, %730 : vector<4x32xf32>
    %cst_234 = arith.constant 1.000000e+00 : f32
    %733 = vector.broadcast %cst_234 : f32 to vector<4x1xf32>
    %734 = arith.subf %733, %699 : vector<4x1xf32>
    %735 = vector.broadcast %734 : vector<4x1xf32> to vector<4x32xf32>
    %736 = arith.mulf %735, %687 : vector<4x32xf32>
    %737 = arith.addf %732, %736 : vector<4x32xf32>
    %738 = vector.broadcast %699 : vector<4x1xf32> to vector<4x32xf32>
    %739 = arith.mulf %738, %730 : vector<4x32xf32>
    %740 = vector.shape_cast %739 : vector<4x32xf32> to vector<1x4x32xf32>
    %741 = arith.index_cast %693 : i32 to index
    %c0_235 = arith.constant 0 : index
    %c32_236 = arith.constant 32 : index
    %742 = vector.load %arg11[%741, %c0_235, %c32_236] : memref<8x4x64xf32, #tpu.memory_space<vmem>>, vector<1x4x32xf32>
    tpu.vector_store %arg11[%741, %c0_235, %c32_236], %740 {strides = array<i32>} : memref<8x4x64xf32, #tpu.memory_space<vmem>>, vector<1x4x32xf32>,
    %c7_i32_237 = arith.constant 7 : i32
    %c7_i32_238 = arith.constant 7 : i32
    %743 = arith.subi %c7_i32_238, %c7_i32_237 : i32
    %744 = arith.index_cast %743 : i32 to index
    %c0_239 = arith.constant 0 : index
    %c0_240 = arith.constant 0 : index
    %745 = vector.load %arg3[%744, %c0_239, %c0_240] : memref<8x4x96xf32, #tpu.memory_space<vmem>>, vector<1x4x96xf32>
    %746 = vector.shape_cast %745 : vector<1x4x96xf32> to vector<4x96xf32>
    %747 = arith.index_cast %743 : i32 to index
    %c0_241 = arith.constant 0 : index
    %c0_242 = arith.constant 0 : index
    %748 = vector.load %arg1[%747, %c0_241, %c0_242] : memref<8x4x1xf32, #tpu.memory_space<vmem>>, vector<1x4x1xf32>
    %749 = vector.shape_cast %748 : vector<1x4x1xf32> to vector<4x1xf32>
    %c0_243 = arith.constant 0 : index
    %c0_244 = arith.constant 0 : index
    %750 = vector.load %arg5[%c0_243, %c0_244] : memref<32x96xf32, #tpu.memory_space<vmem>>, vector<32x96xf32>
    %cst_245 = arith.constant dense<0.000000e+00> : vector<4x96xf32>
    %751 = tpu.matmul %737, %750, %cst_245 {dimension_numbers = #tpu.dot_dimension_numbers<[1], [0], [0], [1], [0, 0, 1, 1], [], []>} : vector<4x32xf32>, vector<32x96xf32>, vector<4x96xf32> -> vector<4x96xf32>
    %c0_246 = arith.constant 0 : index
    %c0_247 = arith.constant 0 : index
    %752 = vector.load %arg7[%c0_246, %c0_247] : memref<1x96xf32, #tpu.memory_space<vmem>>, vector<1x96xf32>
    %753 = vector.broadcast %752 : vector<1x96xf32> to vector<4x96xf32>
    %754 = arith.addf %751, %753 : vector<4x96xf32>
    %755 = vector.extract_strided_slice %746 {offsets = [0, 0], sizes = [4, 32], strides = [1, 1]} : vector<4x96xf32> to vector<4x32xf32>
    %756 = vector.extract_strided_slice %754 {offsets = [0, 0], sizes = [4, 32], strides = [1, 1]} : vector<4x96xf32> to vector<4x32xf32>
    %757 = arith.addf %755, %756 : vector<4x32xf32>
    %758 = arith.negf %757 : vector<4x32xf32>
    %759 = math.exp %758 : vector<4x32xf32>
    %cst_248 = arith.constant 1.000000e+00 : f32
    %760 = vector.broadcast %cst_248 : f32 to vector<4x32xf32>
    %761 = arith.addf %760, %759 : vector<4x32xf32>
    %762 = arith.divf %760, %761 : vector<4x32xf32>
    %763 = vector.extract_strided_slice %746 {offsets = [0, 32], sizes = [4, 32], strides = [1, 1]} : vector<4x96xf32> to vector<4x32xf32>
    %764 = vector.extract_strided_slice %754 {offsets = [0, 32], sizes = [4, 32], strides = [1, 1]} : vector<4x96xf32> to vector<4x32xf32>
    %765 = arith.addf %763, %764 : vector<4x32xf32>
    %766 = arith.negf %765 : vector<4x32xf32>
    %767 = math.exp %766 : vector<4x32xf32>
    %cst_249 = arith.constant 1.000000e+00 : f32
    %768 = vector.broadcast %cst_249 : f32 to vector<4x32xf32>
    %769 = arith.addf %768, %767 : vector<4x32xf32>
    %770 = arith.divf %768, %769 : vector<4x32xf32>
    %771 = vector.extract_strided_slice %746 {offsets = [0, 64], sizes = [4, 32], strides = [1, 1]} : vector<4x96xf32> to vector<4x32xf32>
    %772 = vector.extract_strided_slice %754 {offsets = [0, 64], sizes = [4, 32], strides = [1, 1]} : vector<4x96xf32> to vector<4x32xf32>
    %773 = arith.mulf %762, %772 : vector<4x32xf32>
    %774 = arith.addf %771, %773 : vector<4x32xf32>
    %775 = math.tanh %774 : vector<4x32xf32>
    %cst_250 = arith.constant 1.000000e+00 : f32
    %776 = vector.broadcast %cst_250 : f32 to vector<4x32xf32>
    %777 = arith.subf %776, %770 : vector<4x32xf32>
    %778 = arith.mulf %777, %775 : vector<4x32xf32>
    %779 = arith.mulf %770, %737 : vector<4x32xf32>
    %780 = arith.addf %778, %779 : vector<4x32xf32>
    %781 = vector.broadcast %749 : vector<4x1xf32> to vector<4x32xf32>
    %782 = arith.mulf %781, %780 : vector<4x32xf32>
    %cst_251 = arith.constant 1.000000e+00 : f32
    %783 = vector.broadcast %cst_251 : f32 to vector<4x1xf32>
    %784 = arith.subf %783, %749 : vector<4x1xf32>
    %785 = vector.broadcast %784 : vector<4x1xf32> to vector<4x32xf32>
    %786 = arith.mulf %785, %737 : vector<4x32xf32>
    %787 = arith.addf %782, %786 : vector<4x32xf32>
    %788 = vector.broadcast %749 : vector<4x1xf32> to vector<4x32xf32>
    %789 = arith.mulf %788, %780 : vector<4x32xf32>
    %790 = vector.shape_cast %789 : vector<4x32xf32> to vector<1x4x32xf32>
    %791 = arith.index_cast %743 : i32 to index
    %c0_252 = arith.constant 0 : index
    %c32_253 = arith.constant 32 : index
    %792 = vector.load %arg11[%791, %c0_252, %c32_253] : memref<8x4x64xf32, #tpu.memory_space<vmem>>, vector<1x4x32xf32>
    tpu.vector_store %arg11[%791, %c0_252, %c32_253], %790 {strides = array<i32>} : memref<8x4x64xf32, #tpu.memory_space<vmem>>, vector<1x4x32xf32>,
    %c8_i32_254 = arith.constant 8 : i32
    %c0_255 = arith.constant 0 : index
    %c0_256 = arith.constant 0 : index
    %793 = vector.load %arg8[%c0_255, %c0_256] : memref<32x32xf32, #tpu.memory_space<vmem>>, vector<32x32xf32>
    %cst_257 = arith.constant dense<0.000000e+00> : vector<4x32xf32>
    %794 = tpu.matmul %387, %793, %cst_257 {dimension_numbers = #tpu.dot_dimension_numbers<[1], [0], [0], [1], [0, 0, 1, 1], [], []>} : vector<4x32xf32>, vector<32x32xf32>, vector<4x32xf32> -> vector<4x32xf32>
    %c0_258 = arith.constant 0 : index
    %c0_259 = arith.constant 0 : index
    %795 = vector.load %arg9[%c0_258, %c0_259] : memref<32x32xf32, #tpu.memory_space<vmem>>, vector<32x32xf32>
    %cst_260 = arith.constant dense<0.000000e+00> : vector<4x32xf32>
    %796 = tpu.matmul %787, %795, %cst_260 {dimension_numbers = #tpu.dot_dimension_numbers<[1], [0], [0], [1], [0, 0, 1, 1], [], []>} : vector<4x32xf32>, vector<32x32xf32>, vector<4x32xf32> -> vector<4x32xf32>
    %797 = arith.addf %794, %796 : vector<4x32xf32>
    %c0_261 = arith.constant 0 : index
    %c0_262 = arith.constant 0 : index
    %798 = vector.load %arg10[%c0_261, %c0_262] : memref<1x32xf32, #tpu.memory_space<vmem>>, vector<1x32xf32>
    %799 = vector.broadcast %798 : vector<1x32xf32> to vector<4x32xf32>
    %800 = arith.addf %797, %799 : vector<4x32xf32>
    %801 = math.tanh %800 : vector<4x32xf32>
    %c0_263 = arith.constant 0 : index
    %c0_264 = arith.constant 0 : index
    %802 = vector.load %arg12[%c0_263, %c0_264] : memref<4x32xf32, #tpu.memory_space<vmem>>, vector<4x32xf32>
    tpu.vector_store %arg12[%c0_263, %c0_264], %801 {strides = array<i32>} : memref<4x32xf32, #tpu.memory_space<vmem>>, vector<4x32xf32>,
    return
  }
  func.func @transform_0(%arg0: i32) -> (i32, i32, i32) {
    %c0_i32 = arith.constant 0 : i32
    %c0_i32_0 = arith.constant 0 : i32
    %c0_i32_1 = arith.constant 0 : i32
    %c0_i32_2 = arith.constant 0 : i32
    return %c0_i32, %c0_i32_0, %c0_i32_1 : i32, i32, i32
  }
  func.func @transform_1(%arg0: i32) -> (i32, i32, i32) {
    %c0_i32 = arith.constant 0 : i32
    %c0_i32_0 = arith.constant 0 : i32
    %c0_i32_1 = arith.constant 0 : i32
    %c0_i32_2 = arith.constant 0 : i32
    return %c0_i32, %c0_i32_0, %c0_i32_1 : i32, i32, i32
  }
  func.func @transform_2(%arg0: i32) -> (i32, i32, i32) {
    %c0_i32 = arith.constant 0 : i32
    %c0_i32_0 = arith.constant 0 : i32
    %c0_i32_1 = arith.constant 0 : i32
    %c0_i32_2 = arith.constant 0 : i32
    return %c0_i32, %c0_i32_0, %c0_i32_1 : i32, i32, i32
  }
  func.func @transform_3(%arg0: i32) -> (i32, i32) {
    %c0_i32 = arith.constant 0 : i32
    %c0_i32_0 = arith.constant 0 : i32
    %c0_i32_1 = arith.constant 0 : i32
    return %c0_i32, %c0_i32_0 : i32, i32
  }
  func.func @transform_4(%arg0: i32) -> (i32, i32) {
    %c0_i32 = arith.constant 0 : i32
    %c0_i32_0 = arith.constant 0 : i32
    %c0_i32_1 = arith.constant 0 : i32
    return %c0_i32, %c0_i32_0 : i32, i32
  }
  func.func @transform_5(%arg0: i32) -> (i32, i32) {
    %c0_i32 = arith.constant 0 : i32
    %c0_i32_0 = arith.constant 0 : i32
    %c0_i32_1 = arith.constant 0 : i32
    return %c0_i32, %c0_i32_0 : i32, i32
  }
  func.func @transform_6(%arg0: i32) -> (i32, i32) {
    %c0_i32 = arith.constant 0 : i32
    %c0_i32_0 = arith.constant 0 : i32
    %c0_i32_1 = arith.constant 0 : i32
    return %c0_i32, %c0_i32_0 : i32, i32
  }
  func.func @transform_7(%arg0: i32) -> (i32, i32) {
    %c0_i32 = arith.constant 0 : i32
    %c0_i32_0 = arith.constant 0 : i32
    %c0_i32_1 = arith.constant 0 : i32
    return %c0_i32, %c0_i32_0 : i32, i32
  }
  func.func @transform_8(%arg0: i32) -> (i32, i32) {
    %c0_i32 = arith.constant 0 : i32
    %c0_i32_0 = arith.constant 0 : i32
    %c0_i32_1 = arith.constant 0 : i32
    return %c0_i32, %c0_i32_0 : i32, i32
  }
  func.func @transform_9(%arg0: i32) -> (i32, i32) {
    %c0_i32 = arith.constant 0 : i32
    %c0_i32_0 = arith.constant 0 : i32
    %c0_i32_1 = arith.constant 0 : i32
    return %c0_i32, %c0_i32_0 : i32, i32
  }
  func.func @transform_10(%arg0: i32) -> (i32, i32, i32) {
    %c0_i32 = arith.constant 0 : i32
    %c0_i32_0 = arith.constant 0 : i32
    %c0_i32_1 = arith.constant 0 : i32
    %c0_i32_2 = arith.constant 0 : i32
    return %c0_i32, %c0_i32_0, %c0_i32_1 : i32, i32, i32
  }
  func.func @transform_11(%arg0: i32) -> (i32, i32) {
    %c0_i32 = arith.constant 0 : i32
    %c0_i32_0 = arith.constant 0 : i32
    %c0_i32_1 = arith.constant 0 : i32
    return %c0_i32, %c0_i32_0 : i32, i32
  }
}

</mosaic_0001>

<bundles_post_ra>
// kernel: encoder_forward.2
= control target key start
LH: loop header
LB: loop body
LE: loop exit
PB: predicated region body
PF: predicated region fallthrough
CT: control target
= control target key end

     0   :  { %v1685_v4 = vmov 0.0   ;;  %s1686_s11 = smov 64   ;;  %v1687_v25 = vmov 0   ;;  %s1688_s16 = smov 96   ;;  %vm36_vm4 = vcmask 261120   ;;  %s2203_s3 = inlined_call_operand.vmem [shape: f32[32,96], index: 3, kind: input, shape index: {}]   ;;  %s2204_s5 = inlined_call_operand.vmem [shape: f32[1,96], index: 5, kind: input, shape index: {}]   ;;  %s2205_s1 = inlined_call_operand.vmem [shape: f32[8,4,96], index: 1, kind: input, shape index: {}]   ;;  %s2206_s0 = inlined_call_operand.vmem [shape: f32[8,4,1], index: 0, kind: input, shape index: {}]   ;;  %s2207_s4 = inlined_call_operand.vmem [shape: f32[32,96], index: 4, kind: input, shape index: {}]   ;;  %s2208_s6 = inlined_call_operand.vmem [shape: f32[1,96], index: 6, kind: input, shape index: {}]   ;;  %s2209_s2 = inlined_call_operand.vmem [shape: f32[8,4,96], index: 2, kind: input, shape index: {}]   ;;  %s2210_s7 = inlined_call_operand.vmem [shape: f32[8,4,64], index: 7, kind: output, shape index: {}]  }
   0x1   :  { %v31_v0 = vld [vmem:[%s2203_s3 + $0x18] sm:$0xff]  ;;  %v30_v1 = vld [vmem:[%s2203_s3 + $0x10] sm:$0xff]  ;;  %v29_v2 = vld [vmem:[%s2203_s3 + $0x8] sm:$0xff]  ;;  %1570 = vset.pattern.permute.xlu1 %v1687_v25  ;;  %1571 = vset.pattern.permute.xlu2 %v1687_v25 }
   0x2   :  { %52 = vmatpush.msra.mxu0 %v31_v0  ;;  %148 = vmatpush.msra.mxu1 %v31_v0  ;;  %v28_v3 = vld [vmem:[%s2203_s3] sm:$0xff] }
   0x3   :  { %244 = vmatpush.msra.mxu2 %v31_v0  ;;  %340 = vmatpush.msra.mxu3 %v31_v0  ;;  %v1573_v5 = vld [vmem:[%s2204_s5] ss:$0 sm:$0xff]  ;;  %v1495_v45 = vld [vmem:[%s2205_s1 + $0x4] sm:$0xf] }
   0x4   :  { %53 = vmatpush.msra.mxu0 %v30_v1  ;;  %149 = vmatpush.msra.mxu1 %v30_v1  ;;  %v26_v8 = vld [vmem:[%s2205_s1] sm:$0xf]  ;;  %v1496_v50 = vld [vmem:[%s2206_s0 + $0x4] sm:$0xf] }
   0x5   :  { %245 = vmatpush.msra.mxu2 %v30_v1  ;;  %341 = vmatpush.msra.mxu3 %v30_v1  ;;  %v27_v26 = vld [vmem:[%s2206_s0] sm:$0xf]  ;;  %v201_v63 = vsub.f32 1.0, %v1496_v50 }
   0x6   :  { %54 = vmatpush.msra.mxu0 %v29_v2  ;;  %150 = vmatpush.msra.mxu1 %v29_v2  ;;  %v105_v27 = vsub.f32 1.0, %v27_v26  ;;  %v1574_v42 = vld [vmem:[%s2204_s5] ss:$0 sm:$0xff] }
   0x7   :  { %246 = vmatpush.msra.mxu2 %v29_v2  ;;  %342 = vmatpush.msra.mxu3 %v29_v2 }
   0x8   :  { %55 = vmatpush.msra.mxu0 %v28_v3  ;;  %151 = vmatpush.msra.mxu1 %v28_v3 }
   0x9   :  { %56 = vmatmul.f32.vlgmr.msra.gmra.mxu0 %v1685_v4  ;;  %247 = vmatpush.msra.mxu2 %v28_v3 }
   0xa   :  { %343 = vmatpush.msra.mxu3 %v28_v3  ;;  %436 = vmatpush.msrb.mxu0 %v31_v0 }
   0xb   :  { %532 = vmatpush.msrb.mxu1 %v31_v0  ;;  %628 = vmatpush.msrb.mxu2 %v31_v0 }
   0xc   :  { %437 = vmatpush.msrb.mxu0 %v30_v1  ;;  %1572 = vset.pattern.permute.xlu0 %v1687_v25 }
   0xd   :  { %533 = vmatpush.msrb.mxu1 %v30_v1  ;;  %629 = vmatpush.msrb.mxu2 %v30_v1 }
   0xe   :  { %438 = vmatpush.msrb.mxu0 %v29_v2  ;;  %108 = vperm.xlu2 %1571, %v105_v27  }
   0xf   :  { %534 = vmatpush.msrb.mxu1 %v29_v2  ;;  %630 = vmatpush.msrb.mxu2 %v29_v2 }
  0x10   :  { %439 = vmatpush.msrb.mxu0 %v28_v3 }
  0x11   :  { %535 = vmatpush.msrb.mxu1 %v28_v3  ;;  %631 = vmatpush.msrb.mxu2 %v28_v3 }
  0x68   :  { %v109_v34 = vpop.permute.xlu2 %108 }
  0x69   :  { %v111_v37 = vmul.f32 0.0, %v109_v34 }
  0x86   :  { %v57_v6 = vpop.f32.mrf.mxu0 }
  0x87   :  { %v58_v7 = vadd.f32 %v1573_v5, %v57_v6 }
  0x89   :  { %81 = vrot.lane.b32.xlu0 %v58_v7, %s1686_s11  ;;  %v60_v9 = vadd.f32 %v58_v7, %v26_v8 }
  0x8b   :  { %v1494_v10 = vmul.f32 -1.442695, %v60_v9 }
  0x8d   :  { %1589 = vpow2.f32 %v1494_v10 }
  0x93   :  { %v1590_v11 = vpop.eup %1589 }
  0x94   :  { %v64_v12 = vadd.f32 1.0, %v1590_v11 }
  0x96   :  { %1591 = vrcp.f32 %v64_v12  ;;  %v76_v18 = vand.u32 2147483648, %v64_v12  ;;  %vm70_vm1 = vweird.f32 %v64_v12  ;;  %v74_v19 = vand.u32 2147483647, %v64_v12 }
  0x98   :  { %v77_v21 = vor.u32 1.1754944e-38, %v76_v18  ;;  %vm75_vm3 = vcmp.eq.f32.partialorder %v74_v19, 8.507059e+37  ;;  %v1501_v18 = vld [vmem:[%s2206_s0 + $0x8] sm:$0xf] }
  0x99   :  { %v1500_v19 = vld [vmem:[%s2205_s1 + $0x8] sm:$0xf] }
  0x9c   :  { %v1592_v13 = vpop.eup %1591 }
  0x9d   :  { %v66_v14 = vmul.f32 %v1592_v13, %v64_v12  ;;  %vm71_vm0 = vweird.f32 %v1592_v13 }
  0x9e   :  { %vm72_vm2 = vmor %vm70_vm1, %vm71_vm0 }
  0x9f   :  { %v67_v15 = vsub.f32 1.0, %v66_v14 }
  0xa1   :  { %v68_v16 = vmul.f32 %v1592_v13, %v67_v15  ;;  %v1575_v15 = vld [vmem:[%s2204_s5] ss:$0 sm:$0xff] }
  0xa3   :  { %v69_v17 = vadd.f32 %v1592_v13, %v68_v16 }
  0xa5   :  { %v73_v20 = vsel %vm72_vm2, %v1592_v13, %v69_v17 }
  0xa6   :  { %v78_v23 = vsel %vm75_vm3, %v77_v21, %v73_v20 }
  0xa7   :  { %v91_v32 = vsub.f32 1.0, %v78_v23  ;;  %v97_v35 = vmul.f32 0.0, %v78_v23 }
  0xfb   :  { %v82_v22 = vpop.permute.xlu0 %81 }
  0xfc   :  { %v84_v24 = vmul.f32 %v82_v22, %v78_v23 }
  0xfe   :  { %86 = vrot.lane.b32.xlu0 %v84_v24, %s1686_s11 }
 0x170   :  { %v87_v28 = vpop.permute.xlu0 %86 }
 0x171   :  { %v89_v29 = vadd.f32 %v87_v28, %v26_v8 }
 0x173   :  { %1593 = vtanh.f32 %v89_v29 }
 0x179   :  { %v1594_v30 = vpop.eup %1593 }
 0x17a   :  { %93 = vrot.lane.b32.xlu1 %v1594_v30, %s1688_s16 }
 0x182   :  { %101 = vperm.xlu1 %1570, %v27_v26  }
 0x1ec   :  { %v94_v31 = vpop.permute.xlu1 %93 }
 0x1ed   :  { %v96_v33 = vmul.f32 %v94_v31, %v91_v32 }
 0x1ef   :  { %v98_v36 = vadd.f32 %v97_v35, %v96_v33 }
 0x1f4   :  { %v102_v38 = vpop.permute.xlu1 %101 }
 0x1f5   :  { %v1754_v39 = vmul.f32 %v102_v38, %v98_v36  ;;  %v297_v36 = vsub.f32 1.0, %v1501_v18 }
 0x1f7   :  { %v112_v40 = vadd.f32 %v111_v37, %v1754_v39 }
 0x1f9   :  { %132 = vrot.lane.b32.xlu2 %v112_v40, %s1688_s16 }
 0x253   :  { %v133_v41 = vpop.permute.xlu2 %132 }
 0x254   :  { %1497 = vmatmul.msk.f32.vlgmr.msra.gmra.mxu1 %vm36_vm4, %v133_v41 }
 0x2d1   :  { %v153_v43 = vpop.f32.mrf.mxu1 }
 0x2d2   :  { %v154_v44 = vadd.f32 %v1574_v42, %v153_v43 }
 0x2d4   :  { %177 = vrot.lane.b32.xlu0 %v154_v44, %s1686_s11  ;;  %v156_v46 = vadd.f32 %v1495_v45, %v154_v44 }
 0x2d6   :  { %v1498_v47 = vmul.f32 -1.442695, %v156_v46 }
 0x2d8   :  { %1595 = vpow2.f32 %v1498_v47 }
 0x2dc   :  { %197 = vperm.xlu0 %1572, %v1496_v50  }
 0x2de   :  { %v1596_v48 = vpop.eup %1595 }
 0x2df   :  { %v160_v49 = vadd.f32 1.0, %v1596_v48 }
 0x2e1   :  { %1597 = vrcp.f32 %v160_v49  ;;  %v172_v56 = vand.u32 2147483648, %v160_v49  ;;  %vm166_vm6 = vweird.f32 %v160_v49  ;;  %v170_v57 = vand.u32 2147483647, %v160_v49 }
 0x2e3   :  { %v173_v59 = vor.u32 1.1754944e-38, %v172_v56  ;;  %vm171_vm8 = vcmp.eq.f32.partialorder %v170_v57, 8.507059e+37  ;;  %v1505_v56 = vld [vmem:[%s2205_s1 + $0xc] sm:$0xf] }
 0x2e7   :  { %v1598_v51 = vpop.eup %1597 }
 0x2e8   :  { %v162_v52 = vmul.f32 %v1598_v51, %v160_v49  ;;  %vm167_vm5 = vweird.f32 %v1598_v51 }
 0x2e9   :  { %vm168_vm7 = vmor %vm166_vm6, %vm167_vm5 }
 0x2ea   :  { %v163_v53 = vsub.f32 1.0, %v162_v52  ;;  %v1576_v52 = vld [vmem:[%s2204_s5] ss:$0 sm:$0xff] }
 0x2ec   :  { %v164_v54 = vmul.f32 %v1598_v51, %v163_v53 }
 0x2ee   :  { %v165_v55 = vadd.f32 %v1598_v51, %v164_v54 }
 0x2f0   :  { %v169_v58 = vsel %vm168_vm7, %v1598_v51, %v165_v55  ;;  %v1506_v55 = vld [vmem:[%s2206_s0 + $0xc] sm:$0xf] }
 0x2f1   :  { %v174_v61 = vsel %vm171_vm8, %v173_v59, %v169_v58 }
 0x2f2   :  { %v187_v3 = vsub.f32 1.0, %v174_v61  ;;  %v193_v7 = vmul.f32 %v174_v61, %v112_v40 }
 0x346   :  { %v178_v60 = vpop.permute.xlu0 %177 }
 0x347   :  { %v180_v62 = vmul.f32 %v178_v60, %v174_v61 }
 0x349   :  { %182 = vrot.lane.b32.xlu1 %v180_v62, %s1686_s11 }
 0x34e   :  { %v198_v9 = vpop.permute.xlu0 %197 }
 0x351   :  { %204 = vperm.xlu1 %1570, %v201_v63  }
 0x3bb   :  { %v183_v0 = vpop.permute.xlu1 %182 }
 0x3bc   :  { %v185_v1 = vadd.f32 %v1495_v45, %v183_v0 }
 0x3be   :  { %1599 = vtanh.f32 %v185_v1 }
 0x3c3   :  { %v205_v8 = vpop.permute.xlu1 %204 }
 0x3c4   :  { %v1600_v2 = vpop.eup %1599  ;;  %v207_v11 = vmul.f32 %v205_v8, %v112_v40 }
 0x3c5   :  { %189 = vrot.lane.b32.xlu2 %v1600_v2, %s1688_s16 }
 0x41f   :  { %v190_v5 = vpop.permute.xlu2 %189 }
 0x420   :  { %v192_v6 = vmul.f32 %v190_v5, %v187_v3 }
 0x422   :  { %v194_v10 = vadd.f32 %v193_v7, %v192_v6 }
 0x424   :  { %v1771_v12 = vmul.f32 %v198_v9, %v194_v10  ;;  %v393_v10 = vsub.f32 1.0, %v1506_v55 }
 0x426   :  { %v208_v13 = vadd.f32 %v207_v11, %v1771_v12 }
 0x428   :  { %228 = vrot.lane.b32.xlu2 %v208_v13, %s1688_s16 }
 0x482   :  { %v229_v14 = vpop.permute.xlu2 %228 }
 0x483   :  { %1502 = vmatmul.msk.f32.vlgmr.msra.gmra.mxu2 %vm36_vm4, %v229_v14 }
 0x506   :  { %v249_v16 = vpop.f32.mrf.mxu2 }
 0x507   :  { %v250_v17 = vadd.f32 %v1575_v15, %v249_v16 }
 0x509   :  { %273 = vrot.lane.b32.xlu1 %v250_v17, %s1686_s11  ;;  %v252_v20 = vadd.f32 %v1500_v19, %v250_v17 }
 0x50b   :  { %v1503_v21 = vmul.f32 -1.442695, %v252_v20 }
 0x50d   :  { %1601 = vpow2.f32 %v1503_v21 }
 0x511   :  { %293 = vperm.xlu1 %1570, %v1501_v18  }
 0x513   :  { %v1602_v22 = vpop.eup %1601 }
 0x514   :  { %v256_v23 = vadd.f32 1.0, %v1602_v22 }
 0x516   :  { %1603 = vrcp.f32 %v256_v23  ;;  %v268_v29 = vand.u32 2147483648, %v256_v23  ;;  %vm262_vm10 = vweird.f32 %v256_v23  ;;  %v266_v30 = vand.u32 2147483647, %v256_v23 }
 0x518   :  { %v269_v32 = vor.u32 1.1754944e-38, %v268_v29  ;;  %vm267_vm12 = vcmp.eq.f32.partialorder %v266_v30, 8.507059e+37  ;;  %v1577_v30 = vld [vmem:[%s2204_s5] ss:$0 sm:$0xff] }
 0x51c   :  { %v1604_v24 = vpop.eup %1603 }
 0x51d   :  { %v258_v25 = vmul.f32 %v1604_v24, %v256_v23  ;;  %vm263_vm9 = vweird.f32 %v1604_v24 }
 0x51e   :  { %vm264_vm11 = vmor %vm262_vm10, %vm263_vm9 }
 0x51f   :  { %v259_v26 = vsub.f32 1.0, %v258_v25  ;;  %v1815_v25 = vld [vmem:[%s2207_s4 + $0x18] sm:$0xff] }
 0x520   :  { %806 = vmatpush.msra.mxu0 %v1815_v25  ;;  %897 = vmatpush.msra.mxu1 %v1815_v25 }
 0x521   :  { %v260_v27 = vmul.f32 %v1604_v24, %v259_v26  ;;  %v1820_v26 = vld [vmem:[%s2207_s4 + $0x10] sm:$0xff]  ;;  %987 = vmatpush.msra.mxu2 %v1815_v25 }
 0x522   :  { %807 = vmatpush.msra.mxu0 %v1820_v26  ;;  %898 = vmatpush.msra.mxu1 %v1820_v26 }
 0x523   :  { %v261_v28 = vadd.f32 %v1604_v24, %v260_v27  ;;  %v1827_v27 = vld [vmem:[%s2207_s4 + $0x8] sm:$0xff]  ;;  %988 = vmatpush.msra.mxu2 %v1820_v26 }
 0x524   :  { %808 = vmatpush.msra.mxu0 %v1827_v27  ;;  %899 = vmatpush.msra.mxu1 %v1827_v27 }
 0x525   :  { %v265_v31 = vsel %vm264_vm11, %v1604_v24, %v261_v28  ;;  %v1835_v28 = vld [vmem:[%s2207_s4] sm:$0xff]  ;;  %989 = vmatpush.msra.mxu2 %v1827_v27 }
 0x526   :  { %v270_v34 = vsel %vm267_vm12, %v269_v32, %v265_v31  ;;  %809 = vmatpush.msra.mxu0 %v1835_v28  ;;  %900 = vmatpush.msra.mxu1 %v1835_v28 }
 0x527   :  { %v283_v41 = vsub.f32 1.0, %v270_v34  ;;  %v289_v43 = vmul.f32 %v270_v34, %v208_v13  ;;  %990 = vmatpush.msra.mxu2 %v1835_v28 }
 0x57b   :  { %v274_v33 = vpop.permute.xlu1 %273 }
 0x57c   :  { %v276_v35 = vmul.f32 %v274_v33, %v270_v34  ;;  %v1578_v33 = vld [vmem:[%s2208_s6] ss:$0 sm:$0xff] }
 0x57e   :  { %278 = vrot.lane.b32.xlu2 %v276_v35, %s1686_s11 }
 0x583   :  { %v294_v47 = vpop.permute.xlu1 %293 }
 0x586   :  { %300 = vperm.xlu2 %1571, %v297_v36  }
 0x5d8   :  { %v279_v37 = vpop.permute.xlu2 %278 }
 0x5d9   :  { %v281_v38 = vadd.f32 %v1500_v19, %v279_v37 }
 0x5db   :  { %1605 = vtanh.f32 %v281_v38  ;;  %v1510_v38 = vld [vmem:[%s2205_s1 + $0x10] sm:$0xf] }
 0x5e0   :  { %v301_v45 = vpop.permute.xlu2 %300 }
 0x5e1   :  { %v1606_v40 = vpop.eup %1605  ;;  %v303_v48 = vmul.f32 %v301_v45, %v208_v13 }
 0x5e2   :  { %285 = vrot.lane.b32.xlu0 %v1606_v40, %s1688_s16 }
 0x654   :  { %v286_v42 = vpop.permute.xlu0 %285 }
 0x655   :  { %v288_v44 = vmul.f32 %v286_v42, %v283_v41 }
 0x657   :  { %v290_v46 = vadd.f32 %v289_v43, %v288_v44 }
 0x659   :  { %v1788_v49 = vmul.f32 %v294_v47, %v290_v46 }
 0x65b   :  { %v304_v50 = vadd.f32 %v303_v48, %v1788_v49 }
 0x65d   :  { %324 = vrot.lane.b32.xlu0 %v304_v50, %s1688_s16 }
 0x6cf   :  { %v325_v51 = vpop.permute.xlu0 %324 }
 0x6d0   :  { %1507 = vmatmul.msk.f32.vlgmr.msra.gmra.mxu3 %vm36_vm4, %v325_v51 }
 0x753   :  { %v345_v53 = vpop.f32.mrf.mxu3 }
 0x754   :  { %v346_v54 = vadd.f32 %v1576_v52, %v345_v53 }
 0x756   :  { %369 = vrot.lane.b32.xlu1 %v346_v54, %s1686_s11  ;;  %v348_v57 = vadd.f32 %v1505_v56, %v346_v54 }
 0x758   :  { %v1508_v58 = vmul.f32 -1.442695, %v348_v57 }
 0x75a   :  { %1607 = vpow2.f32 %v1508_v58 }
 0x75e   :  { %389 = vperm.xlu1 %1570, %v1506_v55  }
 0x760   :  { %v1608_v59 = vpop.eup %1607 }
 0x761   :  { %v352_v60 = vadd.f32 1.0, %v1608_v59 }
 0x763   :  { %1609 = vrcp.f32 %v352_v60  ;;  %v364_v2 = vand.u32 2147483648, %v352_v60  ;;  %vm358_vm14 = vweird.f32 %v352_v60  ;;  %v362_v3 = vand.u32 2147483647, %v352_v60 }
 0x765   :  { %v365_v6 = vor.u32 1.1754944e-38, %v364_v2  ;;  %vm363_vm0 = vcmp.eq.f32.partialorder %v362_v3, 8.507059e+37 }
 0x769   :  { %v1610_v61 = vpop.eup %1609 }
 0x76a   :  { %v354_v62 = vmul.f32 %v1610_v61, %v352_v60  ;;  %vm359_vm13 = vweird.f32 %v1610_v61 }
 0x76b   :  { %vm360_vm15 = vmor %vm358_vm14, %vm359_vm13 }
 0x76c   :  { %v355_v63 = vsub.f32 1.0, %v354_v62  ;;  %v1511_v62 = vld [vmem:[%s2206_s0 + $0x10] sm:$0xf] }
 0x76e   :  { %v356_v0 = vmul.f32 %v1610_v61, %v355_v63 }
 0x770   :  { %v357_v1 = vadd.f32 %v1610_v61, %v356_v0  ;;  %v489_v0 = vsub.f32 1.0, %v1511_v62 }
 0x772   :  { %v361_v5 = vsel %vm360_vm15, %v1610_v61, %v357_v1 }
 0x773   :  { %v366_v8 = vsel %vm363_vm0, %v365_v6, %v361_v5  ;;  %v1531_v5 = vld [vmem:[%s2206_s0 + $0x1c] sm:$0xf] }
 0x774   :  { %v379_v15 = vsub.f32 1.0, %v366_v8  ;;  %v385_v17 = vmul.f32 %v366_v8, %v304_v50 }
 0x7c8   :  { %v370_v7 = vpop.permute.xlu1 %369 }
 0x7c9   :  { %v372_v9 = vmul.f32 %v370_v7, %v366_v8  ;;  %v859_v8 = vsub.f32 1.0, %v1531_v5 }
 0x7cb   :  { %374 = vrot.lane.b32.xlu2 %v372_v9, %s1686_s11 }
 0x7d0   :  { %v390_v21 = vpop.permute.xlu1 %389 }
 0x7d3   :  { %396 = vperm.xlu2 %1571, %v393_v10  }
 0x825   :  { %v375_v11 = vpop.permute.xlu2 %374 }
 0x826   :  { %v377_v13 = vadd.f32 %v1505_v56, %v375_v11 }
 0x828   :  { %1611 = vtanh.f32 %v377_v13 }
 0x82d   :  { %v397_v19 = vpop.permute.xlu2 %396 }
 0x82e   :  { %v1612_v14 = vpop.eup %1611  ;;  %v399_v22 = vmul.f32 %v397_v19, %v304_v50 }
 0x82f   :  { %381 = vrot.lane.b32.xlu0 %v1612_v14, %s1688_s16 }
 0x8a1   :  { %v382_v16 = vpop.permute.xlu0 %381 }
 0x8a2   :  { %v384_v18 = vmul.f32 %v382_v16, %v379_v15 }
 0x8a4   :  { %v386_v20 = vadd.f32 %v385_v17, %v384_v18 }
 0x8a6   :  { %v1805_v23 = vmul.f32 %v390_v21, %v386_v20 }
 0x8a8   :  { %v1808_v24 = vadd.f32 %v399_v22, %v1805_v23 }
 0x8aa   :  { %420 = vrot.lane.b32.xlu0 %v1808_v24, %s1688_s16 }
 0x91c   :  { %v421_v29 = vpop.permute.xlu0 %420 }
 0x91d   :  { %1512 = vmatmul.msk.f32.vlgmr.msrb.gmra.mxu0 %vm36_vm4, %v421_v29 }
 0x91e   :  { %1167 = vmatpush.msrb.mxu0 %v1815_v25 }
 0x920   :  { %1168 = vmatpush.msrb.mxu0 %v1820_v26 }
 0x922   :  { %1169 = vmatpush.msrb.mxu0 %v1827_v27 }
 0x924   :  { %1170 = vmatpush.msrb.mxu0 %v1835_v28 }
 0x925   :  { %810 = vmatmul.f32.vlgmr.msra.gmra.mxu0 %v1685_v4  ;;  %v1530_v4 = vld [vmem:[%s2209_s2 + $0x1c] sm:$0xf] }
 0x99a   :  { %v441_v31 = vpop.f32.mrf.mxu0 }
 0x99b   :  { %v442_v32 = vadd.f32 %v1577_v30, %v441_v31 }
 0x99d   :  { %465 = vrot.lane.b32.xlu1 %v442_v32, %s1686_s11  ;;  %v444_v41 = vadd.f32 %v1510_v38, %v442_v32 }
 0x99f   :  { %v1513_v43 = vmul.f32 -1.442695, %v444_v41 }
 0x9a2   :  { %v811_v34 = vpop.f32.mrf.mxu0 }
 0x9a3   :  { %v812_v35 = vadd.f32 %v1578_v33, %v811_v34 }
 0x9a5   :  { %835 = vrot.lane.b32.xlu2 %v812_v35, %s1686_s11  ;;  %v814_v36 = vadd.f32 %v1530_v4, %v812_v35 }
 0x9a7   :  { %v1532_v37 = vmul.f32 -1.442695, %v814_v36 }
 0x9a9   :  { %1613 = vpow2.f32 %v1532_v37 }
 0x9af   :  { %v1614_v40 = vpop.eup %1613 }
 0x9b0   :  { %v818_v42 = vadd.f32 1.0, %v1614_v40 }
 0x9b2   :  { %1615 = vrcp.f32 %v818_v42  ;;  %vm824_vm1 = vweird.f32 %v818_v42  ;;  %v830_v51 = vand.u32 2147483648, %v818_v42  ;;  %v828_v53 = vand.u32 2147483647, %v818_v42 }
 0x9b3   :  { %1617 = vpow2.f32 %v1513_v43 }
 0x9b4   :  { %v831_v55 = vor.u32 1.1754944e-38, %v830_v51  ;;  %vm829_vm5 = vcmp.eq.f32.partialorder %v828_v53, 8.507059e+37  ;;  %v1515_v53 = vld [vmem:[%s2205_s1 + $0x14] sm:$0xf] }
 0x9b8   :  { %v1616_v44 = vpop.eup %1615 }
 0x9b9   :  { %v1618_v45 = vpop.eup %1617  ;;  %v820_v46 = vmul.f32 %v1616_v44, %v818_v42  ;;  %vm825_vm2 = vweird.f32 %v1616_v44 }
 0x9ba   :  { %v448_v47 = vadd.f32 1.0, %v1618_v45  ;;  %vm826_vm3 = vmor %vm824_vm1, %vm825_vm2 }
 0x9bb   :  { %v821_v48 = vsub.f32 1.0, %v820_v46  ;;  %v1579_v46 = vld [vmem:[%s2204_s5] ss:$0 sm:$0xff] }
 0x9bc   :  { %1619 = vrcp.f32 %v448_v47  ;;  %v460_v2 = vand.u32 2147483648, %v448_v47  ;;  %vm454_vm7 = vweird.f32 %v448_v47  ;;  %v458_v3 = vand.u32 2147483647, %v448_v47 }
 0x9bd   :  { %v822_v50 = vmul.f32 %v1616_v44, %v821_v48 }
 0x9be   :  { %v461_v7 = vor.u32 1.1754944e-38, %v460_v2  ;;  %vm459_vm9 = vcmp.eq.f32.partialorder %v458_v3, 8.507059e+37 }
 0x9bf   :  { %v823_v52 = vadd.f32 %v1616_v44, %v822_v50  ;;  %v1580_v50 = vld [vmem:[%s2208_s6] ss:$0 sm:$0xff] }
 0x9c1   :  { %v827_v56 = vsel %vm826_vm3, %v1616_v44, %v823_v52 }
 0x9c2   :  { %v1620_v54 = vpop.eup %1619  ;;  %v832_v59 = vsel %vm829_vm5, %v831_v55, %v827_v56  ;;  %v1534_v56 = vld [vmem:[%s2209_s2 + $0x18] sm:$0xf] }
 0x9c3   :  { %v450_v57 = vmul.f32 %v1620_v54, %v448_v47  ;;  %vm455_vm6 = vweird.f32 %v1620_v54  ;;  %v845_v34 = vsub.f32 1.0, %v832_v59  ;;  %v851_v36 = vmul.f32 0.0, %v832_v59 }
 0x9c4   :  { %vm456_vm8 = vmor %vm454_vm7, %vm455_vm6 }
 0x9c5   :  { %v451_v61 = vsub.f32 1.0, %v450_v57 }
 0x9c7   :  { %v452_v63 = vmul.f32 %v1620_v54, %v451_v61 }
 0x9c9   :  { %v453_v1 = vadd.f32 %v1620_v54, %v452_v63 }
 0x9cb   :  { %v457_v6 = vsel %vm456_vm8, %v1620_v54, %v453_v1 }
 0x9cc   :  { %v462_v10 = vsel %vm459_vm9, %v461_v7, %v457_v6 }
 0x9cd   :  { %v475_v19 = vsub.f32 1.0, %v462_v10  ;;  %v481_v22 = vmul.f32 %v462_v10, %v1808_v24 }
 0x9ff   :  { %v836_v58 = vpop.permute.xlu2 %835 }
 0xa00   :  { %v838_v60 = vmul.f32 %v836_v58, %v832_v59 }
 0xa02   :  { %840 = vrot.lane.b32.xlu1 %v838_v60, %s1686_s11 }
 0xa0a   :  { %492 = vperm.xlu1 %1570, %v489_v0  }
 0xa0f   :  { %v466_v9 = vpop.permute.xlu1 %465 }
 0xa10   :  { %v468_v11 = vmul.f32 %v466_v9, %v462_v10 }
 0xa12   :  { %862 = vperm.xlu1 %1570, %v859_v8   ;;  %470 = vrot.lane.b32.xlu0 %v468_v11, %s1686_s11 }
 0xa1a   :  { %485 = vperm.xlu0 %1572, %v1511_v62  }
 0xa22   :  { %855 = vperm.xlu0 %1572, %v1531_v5  }
 0xa74   :  { %v841_v15 = vpop.permute.xlu1 %840 }
 0xa75   :  { %v843_v16 = vadd.f32 %v1530_v4, %v841_v15 }
 0xa7c   :  { %v493_v20 = vpop.permute.xlu1 %492 }
 0xa7d   :  { %v495_v32 = vmul.f32 %v493_v20, %v1808_v24 }
 0xa84   :  { %v471_v13 = vpop.permute.xlu0 %470 }
 0xa85   :  { %v473_v14 = vadd.f32 %v1510_v38, %v471_v13  ;;  %v863_v38 = vpop.permute.xlu1 %862 }
 0xa86   :  { %v865_v42 = vmul.f32 0.0, %v863_v38 }
 0xa87   :  { %1621 = vtanh.f32 %v473_v14 }
 0xa88   :  { %1623 = vtanh.f32 %v843_v16 }
 0xa8c   :  { %v486_v30 = vpop.permute.xlu0 %485 }
 0xa8d   :  { %v1622_v17 = vpop.eup %1621 }
 0xa8e   :  { %477 = vrot.lane.b32.xlu2 %v1622_v17, %s1688_s16  ;;  %v1624_v18 = vpop.eup %1623 }
 0xa94   :  { %v856_v41 = vpop.permute.xlu0 %855 }
 0xa96   :  { %847 = vrot.lane.b32.xlu2 %v1624_v18, %s1688_s16 }
 0xae8   :  { %v478_v21 = vpop.permute.xlu2 %477 }
 0xae9   :  { %v480_v29 = vmul.f32 %v478_v21, %v475_v19 }
 0xaeb   :  { %v482_v31 = vadd.f32 %v481_v22, %v480_v29 }
 0xaed   :  { %v1876_v33 = vmul.f32 %v486_v30, %v482_v31  ;;  %v1516_v30 = vld [vmem:[%s2206_s0 + $0x14] sm:$0xf] }
 0xaef   :  { %v1879_v35 = vadd.f32 %v495_v32, %v1876_v33  ;;  %v585_v32 = vsub.f32 1.0, %v1516_v30 }
 0xaf0   :  { %v848_v4 = vpop.permute.xlu2 %847 }
 0xaf1   :  { %v850_v37 = vmul.f32 %v848_v4, %v845_v34  ;;  %516 = vrot.lane.b32.xlu2 %v1879_v35, %s1688_s16  ;;  %v1535_v34 = vld [vmem:[%s2206_s0 + $0x18] sm:$0xf] }
 0xaf2   :  { %v950_v4 = vsub.f32 1.0, %v1535_v34 }
 0xaf3   :  { %v852_v40 = vadd.f32 %v851_v36, %v850_v37 }
 0xaf5   :  { %v1883_v43 = vmul.f32 %v856_v41, %v852_v40 }
 0xaf7   :  { %v1886_v24 = vadd.f32 %v865_v42, %v1883_v43 }
 0xaf9   :  { %881 = vrot.lane.b32.xlu0 %v1886_v24, %s1688_s16 }
 0xb4b   :  { %v517_v44 = vpop.permute.xlu2 %516 }
 0xb4c   :  { %1517 = vmatmul.msk.f32.vlgmr.msrb.gmra.mxu1 %vm36_vm4, %v517_v44 }
 0xb4d   :  { %1257 = vmatpush.msrb.mxu1 %v1815_v25 }
 0xb4f   :  { %1258 = vmatpush.msrb.mxu1 %v1820_v26 }
 0xb51   :  { %1259 = vmatpush.msrb.mxu1 %v1827_v27 }
 0xb53   :  { %1260 = vmatpush.msrb.mxu1 %v1835_v28 }
 0xb6b   :  { %v882_v45 = vpop.permute.xlu0 %881 }
 0xb6c   :  { %1536 = vmatmul.msk.f32.vlgmr.msra.gmra.mxu1 %vm36_vm4, %v882_v45 }
 0xbc9   :  { %v537_v47 = vpop.f32.mrf.mxu1 }
 0xbca   :  { %v538_v48 = vadd.f32 %v1579_v46, %v537_v47 }
 0xbcc   :  { %561 = vrot.lane.b32.xlu1 %v538_v48, %s1686_s11  ;;  %v540_v54 = vadd.f32 %v1515_v53, %v538_v48 }
 0xbce   :  { %v1518_v55 = vmul.f32 -1.442695, %v540_v54 }
 0xbd0   :  { %1625 = vpow2.f32 %v1518_v55 }
 0xbd6   :  { %v1626_v59 = vpop.eup %1625 }
 0xbd7   :  { %v544_v60 = vadd.f32 1.0, %v1626_v59 }
 0xbd9   :  { %v556_v8 = vand.u32 2147483648, %v544_v60  ;;  %vm550_vm11 = vweird.f32 %v544_v60  ;;  %v554_v9 = vand.u32 2147483647, %v544_v60 }
 0xbdb   :  { %v557_v13 = vor.u32 1.1754944e-38, %v556_v8  ;;  %vm555_vm13 = vcmp.eq.f32.partialorder %v554_v9, 8.507059e+37  ;;  %v1520_v8 = vld [vmem:[%s2205_s1 + $0x18] sm:$0xf] }
 0xbe9   :  { %v902_v51 = vpop.f32.mrf.mxu1 }
 0xbea   :  { %v903_v52 = vadd.f32 %v1580_v50, %v902_v51 }
 0xbec   :  { %926 = vrot.lane.b32.xlu2 %v903_v52, %s1686_s11  ;;  %v905_v57 = vadd.f32 %v1534_v56, %v903_v52 }
 0xbee   :  { %v1537_v58 = vmul.f32 -1.442695, %v905_v57 }
 0xbf0   :  { %1627 = vpow2.f32 %v1537_v58 }
 0xbf1   :  { %1629 = vrcp.f32 %v544_v60 }
 0xbf6   :  { %v1628_v61 = vpop.eup %1627 }
 0xbf7   :  { %v909_v62 = vadd.f32 1.0, %v1628_v61  ;;  %v1630_v63 = vpop.eup %1629 }
 0xbf8   :  { %v546_v0 = vmul.f32 %v1630_v63, %v544_v60  ;;  %vm551_vm10 = vweird.f32 %v1630_v63 }
 0xbf9   :  { %1631 = vrcp.f32 %v909_v62  ;;  %vm552_vm12 = vmor %vm550_vm11, %vm551_vm10  ;;  %v921_v18 = vand.u32 2147483648, %v909_v62  ;;  %vm915_vm15 = vweird.f32 %v909_v62  ;;  %v919_v19 = vand.u32 2147483647, %v909_v62 }
 0xbfa   :  { %v547_v1 = vsub.f32 1.0, %v546_v0 }
 0xbfb   :  { %v922_v21 = vor.u32 1.1754944e-38, %v921_v18  ;;  %vm920_vm1 = vcmp.eq.f32.partialorder %v919_v19, 8.507059e+37 }
 0xbfc   :  { %v548_v3 = vmul.f32 %v1630_v63, %v547_v1 }
 0xbfe   :  { %v549_v6 = vadd.f32 %v1630_v63, %v548_v3 }
 0xbff   :  { %v1632_v2 = vpop.eup %1631 }
 0xc00   :  { %v911_v5 = vmul.f32 %v1632_v2, %v909_v62  ;;  %v553_v10 = vsel %vm552_vm12, %v1630_v63, %v549_v6  ;;  %vm916_vm14 = vweird.f32 %v1632_v2 }
 0xc01   :  { %v558_v15 = vsel %vm555_vm13, %v557_v13, %v553_v10  ;;  %vm917_vm0 = vmor %vm915_vm15, %vm916_vm14 }
 0xc02   :  { %v912_v7 = vsub.f32 1.0, %v911_v5  ;;  %v571_v44 = vsub.f32 1.0, %v558_v15  ;;  %v577_v47 = vmul.f32 %v558_v15, %v1879_v35  ;;  %v1582_v5 = vld [vmem:[%s2208_s6] ss:$0 sm:$0xff] }
 0xc04   :  { %v913_v11 = vmul.f32 %v1632_v2, %v912_v7 }
 0xc06   :  { %v914_v17 = vadd.f32 %v1632_v2, %v913_v11  ;;  %v1539_v11 = vld [vmem:[%s2209_s2 + $0x14] sm:$0xf] }
 0xc08   :  { %v918_v20 = vsel %vm917_vm0, %v1632_v2, %v914_v17  ;;  %v1581_v2 = vld [vmem:[%s2204_s5] ss:$0 sm:$0xff] }
 0xc09   :  { %v923_v29 = vsel %vm920_vm1, %v922_v21, %v918_v20 }
 0xc0a   :  { %v936_v54 = vsub.f32 1.0, %v923_v29  ;;  %v942_v57 = vmul.f32 %v923_v29, %v1886_v24 }
 0xc3e   :  { %v562_v14 = vpop.permute.xlu1 %561 }
 0xc3f   :  { %v564_v16 = vmul.f32 %v562_v14, %v558_v15 }
 0xc41   :  { %566 = vrot.lane.b32.xlu0 %v564_v16, %s1686_s11 }
 0xc46   :  { %v927_v22 = vpop.permute.xlu2 %926 }
 0xc47   :  { %v929_v31 = vmul.f32 %v927_v22, %v923_v29 }
 0xc49   :  { %581 = vperm.xlu0 %1572, %v1516_v30   ;;  %931 = vrot.lane.b32.xlu1 %v929_v31, %s1686_s11 }
 0xc51   :  { %946 = vperm.xlu0 %1572, %v1535_v34   ;;  %588 = vperm.xlu1 %1570, %v585_v32  }
 0xc59   :  { %953 = vperm.xlu1 %1570, %v950_v4  }
 0xcb3   :  { %v567_v36 = vpop.permute.xlu0 %566 }
 0xcb4   :  { %v569_v37 = vadd.f32 %v1515_v53, %v567_v36 }
 0xcb6   :  { %1633 = vtanh.f32 %v569_v37 }
 0xcbb   :  { %v932_v38 = vpop.permute.xlu1 %931  ;;  %v582_v50 = vpop.permute.xlu0 %581 }
 0xcbc   :  { %v1634_v40 = vpop.eup %1633  ;;  %v934_v41 = vadd.f32 %v1534_v56, %v932_v38 }
 0xcbd   :  { %573 = vrot.lane.b32.xlu2 %v1634_v40, %s1688_s16 }
 0xcbe   :  { %1635 = vtanh.f32 %v934_v41 }
 0xcc3   :  { %v589_v45 = vpop.permute.xlu1 %588  ;;  %v947_v61 = vpop.permute.xlu0 %946 }
 0xcc4   :  { %v1636_v42 = vpop.eup %1635  ;;  %v591_v52 = vmul.f32 %v589_v45, %v1879_v35 }
 0xcc5   :  { %938 = vrot.lane.b32.xlu2 %v1636_v42, %s1688_s16 }
 0xccb   :  { %v954_v59 = vpop.permute.xlu1 %953 }
 0xccc   :  { %v956_v62 = vmul.f32 %v954_v59, %v1886_v24 }
 0xd17   :  { %v574_v46 = vpop.permute.xlu2 %573 }
 0xd18   :  { %v576_v48 = vmul.f32 %v574_v46, %v571_v44 }
 0xd1a   :  { %v578_v51 = vadd.f32 %v577_v47, %v576_v48 }
 0xd1c   :  { %v1922_v53 = vmul.f32 %v582_v50, %v578_v51 }
 0xd1e   :  { %v1925_v55 = vadd.f32 %v591_v52, %v1922_v53  ;;  %v1521_v52 = vld [vmem:[%s2206_s0 + $0x18] sm:$0xf] }
 0xd1f   :  { %v939_v56 = vpop.permute.xlu2 %938 }
 0xd20   :  { %v941_v58 = vmul.f32 %v939_v56, %v936_v54  ;;  %612 = vrot.lane.b32.xlu2 %v1925_v55, %s1688_s16  ;;  %v681_v56 = vsub.f32 1.0, %v1521_v52 }
 0xd22   :  { %v943_v60 = vadd.f32 %v942_v57, %v941_v58  ;;  %v1540_v57 = vld [vmem:[%s2206_s0 + $0x14] sm:$0xf] }
 0xd23   :  { %v1040_v58 = vsub.f32 1.0, %v1540_v57 }
 0xd24   :  { %v1931_v63 = vmul.f32 %v947_v61, %v943_v60 }
 0xd26   :  { %v1934_v35 = vadd.f32 %v956_v62, %v1931_v63 }
 0xd28   :  { %971 = vrot.lane.b32.xlu0 %v1934_v35, %s1688_s16 }
 0xd7a   :  { %v613_v0 = vpop.permute.xlu2 %612 }
 0xd7b   :  { %1522 = vmatmul.msk.f32.vlgmr.msrb.gmra.mxu2 %vm36_vm4, %v613_v0 }
 0xd9a   :  { %v972_v1 = vpop.permute.xlu0 %971 }
 0xd9b   :  { %1541 = vmatmul.msk.f32.vlgmr.msra.gmra.mxu2 %vm36_vm4, %v972_v1 }
 0xdfe   :  { %v633_v3 = vpop.f32.mrf.mxu2 }
 0xdff   :  { %v634_v24 = vadd.f32 %v1581_v2, %v633_v3  ;;  %v702_v2 = vld [vmem:[%s2203_s3 + $0x18] sm:$0xff]  ;;  %v701_v3 = vld [vmem:[%s2203_s3 + $0x10] sm:$0xff] }
 0xe00   :  { %724 = vmatpush.msrb.mxu3 %v702_v2 }
 0xe01   :  { %657 = vrot.lane.b32.xlu1 %v634_v24, %s1686_s11  ;;  %v636_v9 = vadd.f32 %v1520_v8, %v634_v24  ;;  %v700_v24 = vld [vmem:[%s2203_s3 + $0x8] sm:$0xff] }
 0xe02   :  { %725 = vmatpush.msrb.mxu3 %v701_v3 }
 0xe03   :  { %v1523_v10 = vmul.f32 -1.442695, %v636_v9 }
 0xe04   :  { %726 = vmatpush.msrb.mxu3 %v700_v24 }
 0xe05   :  { %1637 = vpow2.f32 %v1523_v10 }
 0xe0b   :  { %v1638_v15 = vpop.eup %1637 }
 0xe0c   :  { %v640_v16 = vadd.f32 1.0, %v1638_v15 }
 0xe0e   :  { %v652_v34 = vand.u32 2147483648, %v640_v16  ;;  %vm646_vm3 = vweird.f32 %v640_v16  ;;  %v650_v4 = vand.u32 2147483647, %v640_v16 }
 0xe10   :  { %v653_v38 = vor.u32 1.1754944e-38, %v652_v34  ;;  %vm651_vm6 = vcmp.eq.f32.partialorder %v650_v4, 8.507059e+37  ;;  %v1545_v34 = vld [vmem:[%s2206_s0 + $0x10] sm:$0xf] }
 0xe11   :  { %v1544_v4 = vld [vmem:[%s2209_s2 + $0x10] sm:$0xf] }
 0xe1e   :  { %v992_v6 = vpop.f32.mrf.mxu2 }
 0xe1f   :  { %v993_v7 = vadd.f32 %v1582_v5, %v992_v6  ;;  %v699_v5 = vld [vmem:[%s2203_s3] sm:$0xff] }
 0xe20   :  { %727 = vmatpush.msrb.mxu3 %v699_v5 }
 0xe21   :  { %1016 = vrot.lane.b32.xlu2 %v993_v7, %s1686_s11  ;;  %v995_v13 = vadd.f32 %v1539_v11, %v993_v7 }
 0xe22   :  { %1077 = vmatpush.msra.mxu3 %v1815_v25 }
 0xe23   :  { %v1542_v14 = vmul.f32 -1.442695, %v995_v13 }
 0xe24   :  { %1078 = vmatpush.msra.mxu3 %v1820_v26 }
 0xe25   :  { %1639 = vpow2.f32 %v1542_v14 }
 0xe26   :  { %1641 = vrcp.f32 %v640_v16  ;;  %1079 = vmatpush.msra.mxu3 %v1827_v27 }
 0xe28   :  { %1080 = vmatpush.msra.mxu3 %v1835_v28 }
 0xe2b   :  { %v1640_v17 = vpop.eup %1639 }
 0xe2c   :  { %v999_v18 = vadd.f32 1.0, %v1640_v17  ;;  %v1642_v19 = vpop.eup %1641 }
 0xe2d   :  { %v642_v20 = vmul.f32 %v1642_v19, %v640_v16  ;;  %vm647_vm2 = vweird.f32 %v1642_v19 }
 0xe2e   :  { %1643 = vrcp.f32 %v999_v18  ;;  %vm648_vm5 = vmor %vm646_vm3, %vm647_vm2  ;;  %v1011_v45 = vand.u32 2147483648, %v999_v18  ;;  %vm1005_vm8 = vweird.f32 %v999_v18  ;;  %v1009_v46 = vand.u32 2147483647, %v999_v18 }
 0xe2f   :  { %v643_v21 = vsub.f32 1.0, %v642_v20 }
 0xe30   :  { %v1012_v48 = vor.u32 1.1754944e-38, %v1011_v45  ;;  %vm1010_vm10 = vcmp.eq.f32.partialorder %v1009_v46, 8.507059e+37 }
 0xe31   :  { %v644_v29 = vmul.f32 %v1642_v19, %v643_v21 }
 0xe33   :  { %v645_v31 = vadd.f32 %v1642_v19, %v644_v29 }
 0xe34   :  { %v1644_v22 = vpop.eup %1643 }
 0xe35   :  { %v1001_v30 = vmul.f32 %v1644_v22, %v999_v18  ;;  %v649_v36 = vsel %vm648_vm5, %v1642_v19, %v645_v31  ;;  %vm1006_vm7 = vweird.f32 %v1644_v22  ;;  %v1584_v31 = vld [vmem:[%s2208_s6] ss:$0 sm:$0xff] }
 0xe36   :  { %v654_v41 = vsel %vm651_vm6, %v653_v38, %v649_v36  ;;  %vm1007_vm9 = vmor %vm1005_vm8, %vm1006_vm7 }
 0xe37   :  { %v1002_v32 = vsub.f32 1.0, %v1001_v30  ;;  %v667_v6 = vsub.f32 1.0, %v654_v41  ;;  %v673_v9 = vmul.f32 %v654_v41, %v1925_v55 }
 0xe39   :  { %v1003_v37 = vmul.f32 %v1644_v22, %v1002_v32 }
 0xe3b   :  { %v1004_v44 = vadd.f32 %v1644_v22, %v1003_v37 }
 0xe3d   :  { %v1008_v47 = vsel %vm1007_vm9, %v1644_v22, %v1004_v44 }
 0xe3e   :  { %v1013_v51 = vsel %vm1010_vm10, %v1012_v48, %v1008_v47 }
 0xe3f   :  { %v1026_v16 = vsub.f32 1.0, %v1013_v51  ;;  %v1032_v27 = vmul.f32 %v1013_v51, %v1934_v35 }
 0xe73   :  { %v658_v40 = vpop.permute.xlu1 %657 }
 0xe74   :  { %v660_v42 = vmul.f32 %v658_v40, %v654_v41 }
 0xe76   :  { %662 = vrot.lane.b32.xlu0 %v660_v42, %s1686_s11 }
 0xe7b   :  { %v1017_v50 = vpop.permute.xlu2 %1016 }
 0xe7c   :  { %v1019_v54 = vmul.f32 %v1017_v50, %v1013_v51 }
 0xe7e   :  { %677 = vperm.xlu0 %1572, %v1521_v52   ;;  %1021 = vrot.lane.b32.xlu1 %v1019_v54, %s1686_s11 }
 0xe86   :  { %1036 = vperm.xlu0 %1572, %v1540_v57   ;;  %684 = vperm.xlu1 %1570, %v681_v56   ;;  %v1130_v57 = vsub.f32 1.0, %v1545_v34 }
 0xe8e   :  { %1043 = vperm.xlu1 %1570, %v1040_v58  }
 0xee8   :  { %v663_v59 = vpop.permute.xlu0 %662 }
 0xee9   :  { %v665_v60 = vadd.f32 %v1520_v8, %v663_v59 }
 0xeeb   :  { %1645 = vtanh.f32 %v665_v60 }
 0xef0   :  { %v1022_v61 = vpop.permute.xlu1 %1021 }
 0xef1   :  { %v1646_v62 = vpop.eup %1645  ;;  %v1024_v0 = vadd.f32 %v1539_v11, %v1022_v61  ;;  %v678_v11 = vpop.permute.xlu0 %677 }
 0xef2   :  { %669 = vrot.lane.b32.xlu2 %v1646_v62, %s1688_s16 }
 0xef3   :  { %1647 = vtanh.f32 %v1024_v0 }
 0xef8   :  { %v685_v7 = vpop.permute.xlu1 %684 }
 0xef9   :  { %v1648_v1 = vpop.eup %1647  ;;  %v687_v14 = vmul.f32 %v685_v7, %v1925_v55  ;;  %v1037_v19 = vpop.permute.xlu0 %1036 }
 0xefa   :  { %1028 = vrot.lane.b32.xlu2 %v1648_v1, %s1688_s16 }
 0xf00   :  { %v1044_v28 = vpop.permute.xlu1 %1043 }
 0xf01   :  { %v1046_v20 = vmul.f32 %v1044_v28, %v1934_v35 }
 0xf4c   :  { %v670_v8 = vpop.permute.xlu2 %669 }
 0xf4d   :  { %v672_v10 = vmul.f32 %v670_v8, %v667_v6 }
 0xf4f   :  { %v674_v13 = vadd.f32 %v673_v9, %v672_v10  ;;  %v1585_v9 = vld [vmem:[%s2208_s6] ss:$0 sm:$0xff] }
 0xf51   :  { %v1982_v15 = vmul.f32 %v678_v11, %v674_v13  ;;  %v1550_v13 = vld [vmem:[%s2206_s0 + $0xc] sm:$0xf] }
 0xf53   :  { %v1985_v25 = vadd.f32 %v687_v14, %v1982_v15  ;;  %v1549_v14 = vld [vmem:[%s2209_s2 + $0xc] sm:$0xf] }
 0xf54   :  { %v1029_v26 = vpop.permute.xlu2 %1028 }
 0xf55   :  { %v1031_v17 = vmul.f32 %v1029_v26, %v1026_v16  ;;  %708 = vrot.lane.b32.xlu2 %v1985_v25, %s1688_s16 }
 0xf57   :  { %v1033_v18 = vadd.f32 %v1032_v27, %v1031_v17 }
 0xf59   :  { %v1991_v21 = vmul.f32 %v1037_v19, %v1033_v18 }
 0xf5b   :  { %v1047_v55 = vadd.f32 %v1046_v20, %v1991_v21 }
 0xf5d   :  { %1061 = vrot.lane.b32.xlu0 %v1047_v55, %s1688_s16 }
 0xfaf   :  { %v709_v22 = vpop.permute.xlu2 %708 }
 0xfb0   :  { %1527 = vmatmul.msk.f32.vlgmr.msrb.gmra.mxu3 %vm36_vm4, %v709_v22 }
 0xfcf   :  { %v1062_v29 = vpop.permute.xlu0 %1061 }
 0xfd0   :  { %1546 = vmatmul.msk.f32.vlgmr.msra.gmra.mxu3 %vm36_vm4, %v1062_v29 }
0x1033   :  { %v1997_v30 = vpop.f32.mrf.mxu3 }
0x1053   :  { %v1082_v32 = vpop.f32.mrf.mxu3 }
0x1054   :  { %v1083_v35 = vadd.f32 %v1584_v31, %v1082_v32 }
0x1056   :  { %1106 = vrot.lane.b32.xlu1 %v1083_v35, %s1686_s11  ;;  %v1085_v36 = vadd.f32 %v1544_v4, %v1083_v35 }
0x1058   :  { %v1547_v37 = vmul.f32 -1.442695, %v1085_v36  ;;  %v1220_v36 = vsub.f32 1.0, %v1550_v13 }
0x105a   :  { %1649 = vpow2.f32 %v1547_v37 }
0x105e   :  { %1126 = vperm.xlu1 %1570, %v1545_v34  }
0x1060   :  { %v1650_v38 = vpop.eup %1649 }
0x1061   :  { %v1089_v40 = vadd.f32 1.0, %v1650_v38 }
0x1063   :  { %1651 = vrcp.f32 %v1089_v40  ;;  %v1101_v47 = vand.u32 2147483648, %v1089_v40  ;;  %vm1095_vm12 = vweird.f32 %v1089_v40  ;;  %v1099_v48 = vand.u32 2147483647, %v1089_v40 }
0x1065   :  { %v1102_v51 = vor.u32 1.1754944e-38, %v1101_v47  ;;  %vm1100_vm14 = vcmp.eq.f32.partialorder %v1099_v48, 8.507059e+37 }
0x1069   :  { %v1652_v41 = vpop.eup %1651 }
0x106a   :  { %v1091_v42 = vmul.f32 %v1652_v41, %v1089_v40  ;;  %vm1096_vm11 = vweird.f32 %v1652_v41 }
0x106b   :  { %vm1097_vm13 = vmor %vm1095_vm12, %vm1096_vm11 }
0x106c   :  { %v1092_v44 = vsub.f32 1.0, %v1091_v42 }
0x106e   :  { %v1093_v45 = vmul.f32 %v1652_v41, %v1092_v44 }
0x1070   :  { %v1094_v46 = vadd.f32 %v1652_v41, %v1093_v45 }
0x1072   :  { %v1098_v50 = vsel %vm1097_vm13, %v1652_v41, %v1094_v46 }
0x1073   :  { %v1103_v54 = vsel %vm1100_vm14, %v1102_v51, %v1098_v50 }
0x1074   :  { %v1116_v61 = vsub.f32 1.0, %v1103_v54  ;;  %v1122_v0 = vmul.f32 %v1103_v54, %v1047_v55 }
0x10c8   :  { %v1107_v52 = vpop.permute.xlu1 %1106 }
0x10c9   :  { %v1109_v56 = vmul.f32 %v1107_v52, %v1103_v54 }
0x10cb   :  { %1111 = vrot.lane.b32.xlu2 %v1109_v56, %s1686_s11  ;;  %v1586_v56 = vld [vmem:[%s2208_s6] ss:$0 sm:$0xff] }
0x10d0   :  { %v1127_v24 = vpop.permute.xlu1 %1126 }
0x10d3   :  { %1133 = vperm.xlu2 %1571, %v1130_v57  }
0x1125   :  { %v1112_v58 = vpop.permute.xlu2 %1111 }
0x1126   :  { %v1114_v59 = vadd.f32 %v1544_v4, %v1112_v58 }
0x1128   :  { %1653 = vtanh.f32 %v1114_v59  ;;  %v1555_v59 = vld [vmem:[%s2206_s0 + $0x8] sm:$0xf] }
0x112d   :  { %v1134_v2 = vpop.permute.xlu2 %1133 }
0x112e   :  { %v1654_v60 = vpop.eup %1653  ;;  %v1136_v5 = vmul.f32 %v1134_v2, %v1047_v55 }
0x112f   :  { %1118 = vrot.lane.b32.xlu0 %v1654_v60, %s1688_s16  ;;  %v1554_v60 = vld [vmem:[%s2209_s2 + $0x8] sm:$0xf] }
0x11a1   :  { %v1119_v62 = vpop.permute.xlu0 %1118 }
0x11a2   :  { %v1121_v1 = vmul.f32 %v1119_v62, %v1116_v61 }
0x11a4   :  { %v1123_v3 = vadd.f32 %v1122_v0, %v1121_v1 }
0x11a6   :  { %v2011_v6 = vmul.f32 %v1127_v24, %v1123_v3 }
0x11a8   :  { %v1137_v7 = vadd.f32 %v1136_v5, %v2011_v6 }
0x11aa   :  { %1151 = vrot.lane.b32.xlu0 %v1137_v7, %s1688_s16 }
0x121c   :  { %v1152_v8 = vpop.permute.xlu0 %1151 }
0x121d   :  { %1551 = vmatmul.msk.f32.vlgmr.msrb.gmra.mxu0 %vm36_vm4, %v1152_v8 }
0x129a   :  { %v1172_v10 = vpop.f32.mrf.mxu0 }
0x129b   :  { %v1173_v11 = vadd.f32 %v1585_v9, %v1172_v10 }
0x129d   :  { %1196 = vrot.lane.b32.xlu1 %v1173_v11, %s1686_s11  ;;  %v1175_v16 = vadd.f32 %v1549_v14, %v1173_v11 }
0x129f   :  { %v1552_v26 = vmul.f32 -1.442695, %v1175_v16 }
0x12a1   :  { %1655 = vpow2.f32 %v1552_v26  ;;  %v1310_v26 = vsub.f32 1.0, %v1555_v59 }
0x12a5   :  { %1216 = vperm.xlu1 %1570, %v1550_v13  }
0x12a7   :  { %v1656_v27 = vpop.eup %1655 }
0x12a8   :  { %v1179_v17 = vadd.f32 1.0, %v1656_v27 }
0x12aa   :  { %1657 = vrcp.f32 %v1179_v17  ;;  %v1191_v22 = vand.u32 2147483648, %v1179_v17  ;;  %vm1185_vm0 = vweird.f32 %v1179_v17  ;;  %v1189_v29 = vand.u32 2147483647, %v1179_v17 }
0x12ac   :  { %v1192_v32 = vor.u32 1.1754944e-38, %v1191_v22  ;;  %vm1190_vm2 = vcmp.eq.f32.partialorder %v1189_v29, 8.507059e+37 }
0x12b0   :  { %v1658_v28 = vpop.eup %1657 }
0x12b1   :  { %v1181_v18 = vmul.f32 %v1658_v28, %v1179_v17  ;;  %vm1186_vm15 = vweird.f32 %v1658_v28 }
0x12b2   :  { %vm1187_vm1 = vmor %vm1185_vm0, %vm1186_vm15  ;;  %vm117_vm0 = vcmask 257024  }
0x12b3   :  { %v1182_v19 = vsub.f32 1.0, %v1181_v18  ;;  %v1325_v18 = vld [vmem:[%s2207_s4 + $0x18] sm:$0xff] }
0x12b4   :  { %1347 = vmatpush.msrb.mxu2 %v1325_v18  ;;  %1436 = vmatpush.msrb.mxu3 %v1325_v18 }
0x12b5   :  { %v1183_v20 = vmul.f32 %v1658_v28, %v1182_v19  ;;  %v1324_v19 = vld [vmem:[%s2207_s4 + $0x10] sm:$0xff] }
0x12b6   :  { %1348 = vmatpush.msrb.mxu2 %v1324_v19  ;;  %1437 = vmatpush.msrb.mxu3 %v1324_v19 }
0x12b7   :  { %v1184_v55 = vadd.f32 %v1658_v28, %v1183_v20  ;;  %v1323_v20 = vld [vmem:[%s2207_s4 + $0x8] sm:$0xff] }
0x12b8   :  { %1349 = vmatpush.msrb.mxu2 %v1323_v20  ;;  %1438 = vmatpush.msrb.mxu3 %v1323_v20 }
0x12b9   :  { %v1188_v31 = vsel %vm1187_vm1, %v1658_v28, %v1184_v55  ;;  %v1322_v55 = vld [vmem:[%s2207_s4] sm:$0xff]  ;;  %vm867_vm1 = vcmask 519424  }
0x12ba   :  { %v1193_v34 = vsel %vm1190_vm2, %v1192_v32, %v1188_v31  ;;  %1350 = vmatpush.msrb.mxu2 %v1322_v55  ;;  %1439 = vmatpush.msrb.mxu3 %v1322_v55 }
0x12bb   :  { %v1206_v41 = vsub.f32 1.0, %v1193_v34  ;;  %v1212_v44 = vmul.f32 %v1193_v34, %v1137_v7 }
0x130f   :  { %v1197_v35 = vpop.permute.xlu1 %1196 }
0x1310   :  { %v1199_v4 = vmul.f32 %v1197_v35, %v1193_v34 }
0x1312   :  { %1201 = vrot.lane.b32.xlu2 %v1199_v4, %s1686_s11 }
0x1317   :  { %v1217_v48 = vpop.permute.xlu1 %1216 }
0x131a   :  { %1223 = vperm.xlu2 %1571, %v1220_v36  }
0x136c   :  { %v1202_v37 = vpop.permute.xlu2 %1201 }
0x136d   :  { %v1204_v38 = vadd.f32 %v1549_v14, %v1202_v37 }
0x136f   :  { %1659 = vtanh.f32 %v1204_v38 }
0x1374   :  { %v1224_v46 = vpop.permute.xlu2 %1223 }
0x1375   :  { %v1660_v40 = vpop.eup %1659  ;;  %v1226_v50 = vmul.f32 %v1224_v46, %v1137_v7  ;;  %v1583_v46 = vld [vmem:[%s2204_s5] ss:$0 sm:$0xff] }
0x1376   :  { %1208 = vrot.lane.b32.xlu0 %v1660_v40, %s1688_s16 }
0x13e8   :  { %v1209_v42 = vpop.permute.xlu0 %1208 }
0x13e9   :  { %v1211_v45 = vmul.f32 %v1209_v42, %v1206_v41  ;;  %v1587_v41 = vld [vmem:[%s2208_s6] ss:$0 sm:$0xff] }
0x13eb   :  { %v1213_v47 = vadd.f32 %v1212_v44, %v1211_v45  ;;  %v1560_v45 = vld [vmem:[%s2206_s0 + $0x4] sm:$0xf] }
0x13ed   :  { %v2028_v51 = vmul.f32 %v1217_v48, %v1213_v47  ;;  %v730_v47 = vadd.f32 %v1583_v46, %v1997_v30  ;;  %v1559_v48 = vld [vmem:[%s2209_s2 + $0x4] sm:$0xf]  ;;  %v1526_v46 = vld [vmem:[%s2206_s0 + $0x1c] sm:$0xf] }
0x13ef   :  { %v1227_v52 = vadd.f32 %v1226_v50, %v2028_v51 }
0x13f1   :  { %1241 = vrot.lane.b32.xlu0 %v1227_v52, %s1688_s16 }
0x1463   :  { %v1242_v54 = vpop.permute.xlu0 %1241 }
0x1464   :  { %1556 = vmatmul.msk.f32.vlgmr.msrb.gmra.mxu1 %vm36_vm4, %v1242_v54 }
0x14e1   :  { %v1262_v57 = vpop.f32.mrf.mxu1 }
0x14e2   :  { %v1263_v58 = vadd.f32 %v1586_v56, %v1262_v57 }
0x14e4   :  { %1286 = vrot.lane.b32.xlu1 %v1263_v58, %s1686_s11  ;;  %v1265_v61 = vadd.f32 %v1554_v60, %v1263_v58 }
0x14e6   :  { %v1557_v62 = vmul.f32 -1.442695, %v1265_v61 }
0x14e8   :  { %1661 = vpow2.f32 %v1557_v62 }
0x14ec   :  { %1306 = vperm.xlu1 %1570, %v1555_v59  }
0x14ee   :  { %v1662_v0 = vpop.eup %1661 }
0x14ef   :  { %v1269_v1 = vadd.f32 1.0, %v1662_v0 }
0x14f1   :  { %1663 = vrcp.f32 %v1269_v1  ;;  %v1281_v8 = vand.u32 2147483648, %v1269_v1  ;;  %vm1275_vm5 = vweird.f32 %v1269_v1  ;;  %v1279_v9 = vand.u32 2147483647, %v1269_v1 }
0x14f3   :  { %v1282_v11 = vor.u32 1.1754944e-38, %v1281_v8  ;;  %vm1280_vm7 = vcmp.eq.f32.partialorder %v1279_v9, 8.507059e+37 }
0x14f7   :  { %v1664_v2 = vpop.eup %1663 }
0x14f8   :  { %v1271_v3 = vmul.f32 %v1664_v2, %v1269_v1  ;;  %vm1276_vm3 = vweird.f32 %v1664_v2 }
0x14f9   :  { %vm1277_vm6 = vmor %vm1275_vm5, %vm1276_vm3 }
0x14fa   :  { %v1272_v24 = vsub.f32 1.0, %v1271_v3 }
0x14fc   :  { %v1273_v5 = vmul.f32 %v1664_v2, %v1272_v24 }
0x14fe   :  { %v1274_v7 = vadd.f32 %v1664_v2, %v1273_v5  ;;  %v1400_v5 = vsub.f32 1.0, %v1560_v45 }
0x1500   :  { %v1278_v10 = vsel %vm1277_vm6, %v1664_v2, %v1274_v7 }
0x1501   :  { %v1283_v14 = vsel %vm1280_vm7, %v1282_v11, %v1278_v10  ;;  %v1525_v10 = vld [vmem:[%s2205_s1 + $0x1c] sm:$0xf] }
0x1502   :  { %v1296_v22 = vsub.f32 1.0, %v1283_v14  ;;  %v1302_v31 = vmul.f32 %v1283_v14, %v1227_v52  ;;  %v732_v11 = vadd.f32 %v1525_v10, %v730_v47 }
0x1556   :  { %v1287_v13 = vpop.permute.xlu1 %1286 }
0x1557   :  { %v1289_v16 = vmul.f32 %v1287_v13, %v1283_v14  ;;  %v1528_v13 = vmul.f32 -1.442695, %v732_v11 }
0x1559   :  { %1291 = vrot.lane.b32.xlu2 %v1289_v16, %s1686_s11 }
0x155e   :  { %v1307_v4 = vpop.permute.xlu1 %1306 }
0x1561   :  { %1313 = vperm.xlu2 %1571, %v1310_v26  }
0x15b3   :  { %v1292_v27 = vpop.permute.xlu2 %1291 }
0x15b4   :  { %v1294_v17 = vadd.f32 %v1554_v60, %v1292_v27 }
0x15b6   :  { %1665 = vtanh.f32 %v1294_v17 }
0x15bb   :  { %v1314_v35 = vpop.permute.xlu2 %1313 }
0x15bc   :  { %v1666_v28 = vpop.eup %1665  ;;  %v1316_v36 = vmul.f32 %v1314_v35, %v1227_v52 }
0x15bd   :  { %1298 = vrot.lane.b32.xlu0 %v1666_v28, %s1688_s16 }
0x162f   :  { %v1299_v29 = vpop.permute.xlu0 %1298 }
0x1630   :  { %v1301_v32 = vmul.f32 %v1299_v29, %v1296_v22 }
0x1632   :  { %v1303_v34 = vadd.f32 %v1302_v31, %v1301_v32 }
0x1634   :  { %v2057_v37 = vmul.f32 %v1307_v4, %v1303_v34 }
0x1636   :  { %v1317_v38 = vadd.f32 %v1316_v36, %v2057_v37 }
0x1638   :  { %1331 = vrot.lane.b32.xlu0 %v1317_v38, %s1688_s16 }
0x16aa   :  { %v1332_v40 = vpop.permute.xlu0 %1331 }
0x16ab   :  { %1561 = vmatmul.msk.f32.vlgmr.msrb.gmra.mxu2 %vm36_vm4, %v1332_v40 }
0x172e   :  { %v1352_v42 = vpop.f32.mrf.mxu2 }
0x172f   :  { %v1353_v44 = vadd.f32 %v1587_v41, %v1352_v42 }
0x1731   :  { %1376 = vrot.lane.b32.xlu1 %v1353_v44, %s1686_s11  ;;  %v1355_v50 = vadd.f32 %v1559_v48, %v1353_v44 }
0x1733   :  { %v1562_v52 = vmul.f32 -1.442695, %v1355_v50 }
0x1735   :  { %1667 = vpow2.f32 %v1562_v52 }
0x1739   :  { %1396 = vperm.xlu1 %1570, %v1560_v45  }
0x173b   :  { %v1668_v54 = vpop.eup %1667 }
0x173c   :  { %v1359_v56 = vadd.f32 1.0, %v1668_v54 }
0x173e   :  { %1669 = vrcp.f32 %v1359_v56  ;;  %v1371_v62 = vand.u32 2147483648, %v1359_v56  ;;  %vm1365_vm9 = vweird.f32 %v1359_v56  ;;  %v1369_v30 = vand.u32 2147483647, %v1359_v56 }
0x1740   :  { %v1372_v1 = vor.u32 1.1754944e-38, %v1371_v62  ;;  %vm1370_vm11 = vcmp.eq.f32.partialorder %v1369_v30, 8.507059e+37 }
0x1741   :  { %753 = vrot.lane.b32.xlu1 %v730_v47, %s1686_s11 }
0x1744   :  { %v1670_v57 = vpop.eup %1669 }
0x1745   :  { %v1361_v58 = vmul.f32 %v1670_v57, %v1359_v56  ;;  %vm1366_vm8 = vweird.f32 %v1670_v57 }
0x1746   :  { %vm1367_vm10 = vmor %vm1365_vm9, %vm1366_vm8 }
0x1747   :  { %v1362_v59 = vsub.f32 1.0, %v1361_v58  ;;  %v1410_v58 = vld [vmem:[%s2206_s0] sm:$0xf] }
0x1749   :  { %v1363_v60 = vmul.f32 %v1670_v57, %v1362_v59 }
0x174b   :  { %v1364_v61 = vadd.f32 %v1670_v57, %v1363_v60 }
0x174d   :  { %v1368_v0 = vsel %vm1367_vm10, %v1670_v57, %v1364_v61 }
0x174e   :  { %v1373_v3 = vsel %vm1370_vm11, %v1372_v1, %v1368_v0 }
0x174f   :  { %v1386_v28 = vsub.f32 1.0, %v1373_v3  ;;  %v1392_v19 = vmul.f32 %v1373_v3, %v1317_v38 }
0x17a3   :  { %v1377_v2 = vpop.permute.xlu1 %1376 }
0x17a4   :  { %v1379_v24 = vmul.f32 %v1377_v2, %v1373_v3 }
0x17a6   :  { %1381 = vrot.lane.b32.xlu2 %v1379_v24, %s1686_s11 }
0x17ab   :  { %v1397_v55 = vpop.permute.xlu1 %1396 }
0x17ae   :  { %1403 = vperm.xlu2 %1571, %v1400_v5  }
0x17b3   :  { %v754_v44 = vpop.permute.xlu1 %753 }
0x1800   :  { %v1382_v7 = vpop.permute.xlu2 %1381 }
0x1801   :  { %v1384_v8 = vadd.f32 %v1559_v48, %v1382_v7 }
0x1803   :  { %1671 = vtanh.f32 %v1384_v8 }
0x1804   :  { %1673 = vpow2.f32 %v1528_v13 }
0x1808   :  { %v1404_v22 = vpop.permute.xlu2 %1403 }
0x1809   :  { %v1672_v9 = vpop.eup %1671  ;;  %v1406_v32 = vmul.f32 %v1404_v22, %v1317_v38 }
0x180a   :  { %1388 = vrot.lane.b32.xlu0 %v1672_v9, %s1688_s16  ;;  %v1674_v14 = vpop.eup %1673 }
0x180b   :  { %v736_v16 = vadd.f32 1.0, %v1674_v14 }
0x180d   :  { %1675 = vrcp.f32 %v736_v16  ;;  %v748_v36 = vand.u32 2147483648, %v736_v16  ;;  %vm742_vm13 = vweird.f32 %v736_v16  ;;  %v746_v40 = vand.u32 2147483647, %v736_v16 }
0x180f   :  { %v749_v42 = vor.u32 1.1754944e-38, %v748_v36  ;;  %vm747_vm15 = vcmp.eq.f32.partialorder %v746_v40, 8.507059e+37 }
0x1813   :  { %v1676_v26 = vpop.eup %1675 }
0x1814   :  { %v738_v27 = vmul.f32 %v1676_v26, %v736_v16  ;;  %vm743_vm12 = vweird.f32 %v1676_v26 }
0x1815   :  { %vm744_vm14 = vmor %vm742_vm13, %vm743_vm12 }
0x1816   :  { %v739_v17 = vsub.f32 1.0, %v738_v27 }
0x1818   :  { %v740_v29 = vmul.f32 %v1676_v26, %v739_v17 }
0x181a   :  { %v741_v34 = vadd.f32 %v1676_v26, %v740_v29 }
0x181c   :  { %v745_v41 = vsel %vm744_vm14, %v1676_v26, %v741_v34 }
0x181d   :  { %v2089_v45 = vsel %vm747_vm15, %v749_v42, %v745_v41 }
0x181e   :  { %v756_v38 = vmul.f32 %v754_v44, %v2089_v45  ;;  %v763_v16 = vsub.f32 1.0, %v2089_v45  ;;  %v769_v17 = vmul.f32 %v2089_v45, %v1985_v25 }
0x187c   :  { %v1389_v18 = vpop.permute.xlu0 %1388 }
0x187d   :  { %v1391_v20 = vmul.f32 %v1389_v18, %v1386_v28 }
0x187f   :  { %v1393_v31 = vadd.f32 %v1392_v19, %v1391_v20 }
0x1881   :  { %v2082_v35 = vmul.f32 %v1397_v55, %v1393_v31 }
0x1883   :  { %v2085_v4 = vadd.f32 %v1406_v32, %v2082_v35 }
0x1885   :  { %1420 = vrot.lane.b32.xlu0 %v2085_v4, %s1688_s16 }
0x188d   :  { %758 = vrot.lane.b32.xlu0 %v756_v38, %s1686_s11 }
0x1895   :  { %773 = vperm.xlu0 %1572, %v1526_v46  }
0x189d   :  { %114 = vrot.lane.b32.xlu0 %v1754_v39, %s1688_s16 }
0x18a5   :  { %402 = vrot.lane.b32.xlu0 %v1805_v23, %s1688_s16 }
0x18ad   :  { %690 = vrot.lane.b32.xlu0 %v1982_v15, %s1688_s16  ;;  %v1588_v15 = vld [vmem:[%s2208_s6] ss:$0 sm:$0xff] }
0x18f7   :  { %v1421_v47 = vpop.permute.xlu0 %1420 }
0x18f8   :  { %1564 = vmatmul.msk.f32.vlgmr.msrb.gmra.mxu3 %vm36_vm4, %v1421_v47 }
0x18ff   :  { %v759_v48 = vpop.permute.xlu0 %758 }
0x1900   :  { %v761_v54 = vadd.f32 %v1525_v10, %v759_v48 }
0x1902   :  { %1677 = vtanh.f32 %v761_v54 }
0x1907   :  { %v2103_v50 = vpop.permute.xlu0 %773 }
0x190f   :  { %v115_v52 = vpop.permute.xlu0 %114 }
0x1910   :  { %118 = vst.msk [vmem:[%s2210_s7] sm:$0xf] %vm117_vm0, %v115_v52 }
0x1917   :  { %v403_v39 = vpop.permute.xlu0 %402 }
0x1918   :  { %1509 = vst.msk [vmem:[%s2210_s7 + $0xc] sm:$0xf] %vm117_vm0, %v403_v39 }
0x1919   :  { %1553 = vst.msk [vmem:[%s2210_s7 + $0xc] sm:$0xf] %vm867_vm1, %v2028_v51  ;;  %v1678_v51 = vpop.eup %1677 }
0x191f   :  { %v691_v23 = vpop.permute.xlu0 %690 }
0x1920   :  { %1524 = vst.msk [vmem:[%s2210_s7 + $0x18] sm:$0xf] %vm117_vm0, %v691_v23 }
0x1921   :  { %1538 = vst.msk [vmem:[%s2210_s7 + $0x18] sm:$0xf] %vm867_vm1, %v1931_v63  ;;  %v1409_v63 = vld [vmem:[%s2209_s2] sm:$0xf] }
0x197b   :  { %v1441_v56 = vpop.f32.mrf.mxu3 }
0x197c   :  { %v1442_v57 = vadd.f32 %v1588_v15, %v1441_v56 }
0x197e   :  { %1465 = vrot.lane.b32.xlu2 %v1442_v57, %s1686_s11  ;;  %v1444_v59 = vadd.f32 %v1442_v57, %v1409_v63 }
0x1980   :  { %v1565_v60 = vmul.f32 -1.442695, %v1444_v59 }
0x1982   :  { %1679 = vpow2.f32 %v1565_v60 }
0x1986   :  { %765 = vrot.lane.b32.xlu2 %v1678_v51, %s1688_s16 }
0x1988   :  { %v1680_v61 = vpop.eup %1679 }
0x1989   :  { %v1448_v62 = vadd.f32 1.0, %v1680_v61 }
0x198b   :  { %1681 = vrcp.f32 %v1448_v62  ;;  %vm1454_vm2 = vweird.f32 %v1448_v62  ;;  %v1458_v24 = vand.u32 2147483647, %v1448_v62 }
0x198d   :  { %vm1459_vm5 = vcmp.eq.f32.partialorder %v1458_v24, 8.507059e+37 }
0x198e   :  { %1485 = vperm.xlu2 %1571, %v1410_v58  }
0x1991   :  { %v1682_v30 = vpop.eup %1681 }
0x1992   :  { %v1450_v0 = vmul.f32 %v1682_v30, %v1448_v62  ;;  %vm1455_vm4 = vweird.f32 %v1682_v30 }
0x1993   :  { %vm1456_vm3 = vmor %vm1454_vm2, %vm1455_vm4 }
0x1994   :  { %v1451_v1 = vsub.f32 1.0, %v1450_v0 }
0x1996   :  { %306 = vrot.lane.b32.xlu2 %v1788_v49, %s1688_s16  ;;  %v1452_v2 = vmul.f32 %v1682_v30, %v1451_v1  ;;  %v1460_v49 = vand.u32 2147483648, %v1448_v62 }
0x1998   :  { %v1453_v3 = vadd.f32 %v1682_v30, %v1452_v2  ;;  %v1461_v5 = vor.u32 1.1754944e-38, %v1460_v49 }
0x199e   :  { %594 = vrot.lane.b32.xlu2 %v1922_v53, %s1688_s16  ;;  %v1457_v53 = vsel %vm1456_vm3, %v1682_v30, %v1453_v3 }
0x199f   :  { %v1462_v8 = vsel %vm1459_vm5, %v1461_v5, %v1457_v53 }
0x19a0   :  { %v1475_v25 = vsub.f32 1.0, %v1462_v8  ;;  %v1481_v20 = vmul.f32 %v1462_v8, %v2085_v4 }
0x19d8   :  { %v1466_v7 = vpop.permute.xlu2 %1465 }
0x19d9   :  { %v1468_v9 = vmul.f32 %v1466_v7, %v1462_v8 }
0x19db   :  { %1470 = vrot.lane.b32.xlu1 %v1468_v9, %s1686_s11 }
0x19e0   :  { %v766_v10 = vpop.permute.xlu2 %765 }
0x19e1   :  { %v768_v26 = vmul.f32 %v766_v10, %v763_v16 }
0x19e3   :  { %210 = vrot.lane.b32.xlu1 %v1771_v12, %s1688_s16 }
0x19e8   :  { %v1486_v11 = vpop.permute.xlu2 %1485 }
0x19eb   :  { %498 = vrot.lane.b32.xlu1 %v1876_v33, %s1688_s16 }
0x19f0   :  { %v307_v13 = vpop.permute.xlu2 %306 }
0x19f1   :  { %1504 = vst.msk [vmem:[%s2210_s7 + $0x8] sm:$0xf] %vm117_vm0, %v307_v13 }
0x19f2   :  { %1558 = vst.msk [vmem:[%s2210_s7 + $0x8] sm:$0xf] %vm867_vm1, %v2057_v37 }
0x19f8   :  { %v595_v14 = vpop.permute.xlu2 %594 }
0x19f9   :  { %1519 = vst.msk [vmem:[%s2210_s7 + $0x14] sm:$0xf] %vm117_vm0, %v595_v14 }
0x19fa   :  { %1543 = vst.msk [vmem:[%s2210_s7 + $0x14] sm:$0xf] %vm867_vm1, %v1991_v21  ;;  %v770_v21 = vadd.f32 %v769_v17, %v768_v26 }
0x19fc   :  { %v776_v18 = vmul.f32 %v2103_v50, %v770_v21 }
0x1a4d   :  { %v1471_v12 = vpop.permute.xlu1 %1470 }
0x1a4e   :  { %v1473_v33 = vadd.f32 %v1471_v12, %v1409_v63 }
0x1a50   :  { %1683 = vtanh.f32 %v1473_v33 }
0x1a55   :  { %v211_v27 = vpop.permute.xlu1 %210 }
0x1a56   :  { %v1684_v37 = vpop.eup %1683  ;;  %1499 = vst.msk [vmem:[%s2210_s7 + $0x4] sm:$0xf] %vm117_vm0, %v211_v27 }
0x1a57   :  { %1563 = vst.msk [vmem:[%s2210_s7 + $0x4] sm:$0xf] %vm867_vm1, %v2082_v35  ;;  %1477 = vrot.lane.b32.xlu1 %v1684_v37, %s1688_s16 }
0x1a5d   :  { %v499_v28 = vpop.permute.xlu1 %498 }
0x1a5e   :  { %1514 = vst.msk [vmem:[%s2210_s7 + $0x10] sm:$0xf] %vm117_vm0, %v499_v28 }
0x1a5f   :  { %1548 = vst.msk [vmem:[%s2210_s7 + $0x10] sm:$0xf] %vm867_vm1, %v2011_v6  ;;  %778 = vrot.lane.b32.xlu1 %v776_v18, %s1688_s16 }
0x1ac9   :  { %v1478_v19 = vpop.permute.xlu1 %1477 }
0x1aca   :  { %v1480_v55 = vmul.f32 %v1478_v19, %v1475_v25 }
0x1acc   :  { %v1482_v22 = vadd.f32 %v1481_v20, %v1480_v55 }
0x1ace   :  { %v1488_v29 = vmul.f32 %v1486_v11, %v1482_v22 }
0x1ad0   :  { %1489 = vst.msk [vmem:[%s2210_s7] sm:$0xf] %vm867_vm1, %v1488_v29 }
0x1ad1   :  { %v779_v31 = vpop.permute.xlu1 %778 }
0x1ad2   :  { %1529 = vst.msk [vmem:[%s2210_s7 + $0x1c] sm:$0xf] %vm117_vm0, %v779_v31 }
0x1ad3   :  { %1533 = vst.msk [vmem:[%s2210_s7 + $0x1c] sm:$0xf] %vm867_vm1, %v1883_v43 }

// kernel: encoder_forward.3
= control target key start
LH: loop header
LB: loop body
LE: loop exit
PB: predicated region body
PF: predicated region fallthrough
CT: control target
= control target key end

     0   :  { %17 = vsyncpa [#allocation3], 0  ;;  %v1855_v4 = vmov 0.0   ;;  %s2382_s0 = inlined_call_operand.vmem [shape: f32[8,4,1], index: 0, kind: input, shape index: {}]   ;;  %s2383_s1 = inlined_call_operand.vmem [shape: f32[8,4,96], index: 1, kind: input, shape index: {}]   ;;  %s2384_s2 = inlined_call_operand.vmem [shape: f32[8,4,96], index: 2, kind: input, shape index: {}]   ;;  %s2385_s3 = inlined_call_operand.vmem [shape: f32[32,96], index: 3, kind: input, shape index: {}]   ;;  %s2386_s4 = inlined_call_operand.vmem [shape: f32[32,96], index: 4, kind: input, shape index: {}]   ;;  %s2387_s5 = inlined_call_operand.vmem [shape: f32[1,96], index: 5, kind: input, shape index: {}]   ;;  %s2388_s6 = inlined_call_operand.vmem [shape: f32[1,96], index: 6, kind: input, shape index: {}]   ;;  %s2389_s7 = inlined_call_operand.vmem [shape: f32[32,32], index: 7, kind: input, shape index: {}]   ;;  %s2390_s8 = inlined_call_operand.vmem [shape: f32[32,32], index: 8, kind: input, shape index: {}]   ;;  %s2391_s9 = inlined_call_operand.vmem [shape: f32[1,32], index: 9, kind: input, shape index: {}]   ;;  %s2392_s10 = inlined_call_operand.hbm [shape: f32[8,4,64], index: 10, kind: output, shape index: {0}]   ;;  %s2393_s11 = inlined_call_operand.hbm [shape: f32[4,32], index: 11, kind: output, shape index: {1}]  }
   0x1   :  { %v44_v0 = vld [vmem:[%s2385_s3 + $0x18] sm:$0xff]  ;;  %v43_v1 = vld [vmem:[%s2385_s3 + $0x10] sm:$0xff]  ;;  %v42_v2 = vld [vmem:[%s2385_s3 + $0x8] sm:$0xff] }
   0x2   :  { %65 = vmatpush.msra.mxu0 %v44_v0  ;;  %161 = vmatpush.msra.mxu1 %v44_v0  ;;  %v41_v3 = vld [vmem:[%s2385_s3] sm:$0xff] }
   0x3   :  { %257 = vmatpush.msra.mxu2 %v44_v0  ;;  %353 = vmatpush.msra.mxu3 %v44_v0 }
   0x4   :  { %66 = vmatpush.msra.mxu0 %v43_v1  ;;  %162 = vmatpush.msra.mxu1 %v43_v1 }
   0x5   :  { %258 = vmatpush.msra.mxu2 %v43_v1  ;;  %354 = vmatpush.msra.mxu3 %v43_v1 }
   0x6   :  { %67 = vmatpush.msra.mxu0 %v42_v2  ;;  %163 = vmatpush.msra.mxu1 %v42_v2 }
   0x7   :  { %259 = vmatpush.msra.mxu2 %v42_v2  ;;  %355 = vmatpush.msra.mxu3 %v42_v2 }
   0x8   :  { %68 = vmatpush.msra.mxu0 %v41_v3  ;;  %164 = vmatpush.msra.mxu1 %v41_v3 }
   0x9   :  { %69 = vmatmul.f32.vlgmr.msra.gmra.mxu0 %v1855_v4  ;;  %260 = vmatpush.msra.mxu2 %v41_v3 }
   0xa   :  { %18 = vsyncpa [#allocation5], 0  ;;  %356 = vmatpush.msra.mxu3 %v41_v3  ;;  %449 = vmatpush.msrb.mxu0 %v44_v0  ;;  %v1688_v5 = vld [vmem:[%s2387_s5] ss:$0 sm:$0xff]  ;;  %s1856_s27 = smov 64   ;;  %v1857_v25 = vmov 0  }
   0xb   :  { %545 = vmatpush.msrb.mxu1 %v44_v0  ;;  %641 = vmatpush.msrb.mxu2 %v44_v0  ;;  %v39_v8 = vld [vmem:[%s2383_s1] sm:$0xf]  ;;  %s1858_s13 = smov 96   ;;  %vm49_vm4 = vcmask 261120   ;;  %v1619_v45 = vld [vmem:[%s2383_s1 + $0x4] sm:$0xf] }
   0xc   :  { %450 = vmatpush.msrb.mxu0 %v43_v1  ;;  %1685 = vset.pattern.permute.xlu1 %v1857_v25  ;;  %v40_v26 = vld [vmem:[%s2382_s0] sm:$0xf]  ;;  %v1620_v50 = vld [vmem:[%s2382_s0 + $0x4] sm:$0xf]  ;;  %s1860_s15 = smov 4  }
   0xd   :  { %546 = vmatpush.msrb.mxu1 %v43_v1  ;;  %642 = vmatpush.msrb.mxu2 %v43_v1  ;;  %v118_v27 = vsub.f32 1.0, %v40_v26  ;;  %v1689_v42 = vld [vmem:[%s2387_s5] ss:$0 sm:$0xff]  ;;  %v214_v63 = vsub.f32 1.0, %v1620_v50 }
   0xe   :  { %451 = vmatpush.msrb.mxu0 %v42_v2  ;;  %1686 = vset.pattern.permute.xlu2 %v1857_v25 }
   0xf   :  { %547 = vmatpush.msrb.mxu1 %v42_v2  ;;  %643 = vmatpush.msrb.mxu2 %v42_v2 }
  0x10   :  { %452 = vmatpush.msrb.mxu0 %v41_v3  ;;  %1687 = vset.pattern.permute.xlu0 %v1857_v25 }
  0x11   :  { %548 = vmatpush.msrb.mxu1 %v41_v3  ;;  %644 = vmatpush.msrb.mxu2 %v41_v3 }
  0x12   :  { %121 = vperm.xlu2 %1686, %v118_v27  }
  0x6c   :  { %v122_v34 = vpop.permute.xlu2 %121 }
  0x6d   :  { %v124_v36 = vmul.f32 0.0, %v122_v34 }
  0x86   :  { %v70_v6 = vpop.f32.mrf.mxu0 }
  0x87   :  { %v71_v7 = vadd.f32 %v1688_v5, %v70_v6 }
  0x89   :  { %94 = vrot.lane.b32.xlu0 %v71_v7, %s1856_s27  ;;  %v73_v9 = vadd.f32 %v71_v7, %v39_v8 }
  0x8b   :  { %v1618_v10 = vmul.f32 -1.442695, %v73_v9 }
  0x8d   :  { %1705 = vpow2.f32 %v1618_v10 }
  0x93   :  { %v1706_v11 = vpop.eup %1705 }
  0x94   :  { %v77_v12 = vadd.f32 1.0, %v1706_v11 }
  0x96   :  { %1707 = vrcp.f32 %v77_v12  ;;  %v89_v18 = vand.u32 2147483648, %v77_v12  ;;  %vm83_vm1 = vweird.f32 %v77_v12  ;;  %v87_v19 = vand.u32 2147483647, %v77_v12 }
  0x98   :  { %v90_v21 = vor.u32 1.1754944e-38, %v89_v18  ;;  %vm88_vm3 = vcmp.eq.f32.partialorder %v87_v19, 8.507059e+37  ;;  %v1624_v18 = vld [vmem:[%s2382_s0 + $0x8] sm:$0xf] }
  0x99   :  { %v1623_v19 = vld [vmem:[%s2383_s1 + $0x8] sm:$0xf] }
  0x9c   :  { %v1708_v13 = vpop.eup %1707 }
  0x9d   :  { %v79_v14 = vmul.f32 %v1708_v13, %v77_v12  ;;  %vm84_vm0 = vweird.f32 %v1708_v13 }
  0x9e   :  { %vm85_vm2 = vmor %vm83_vm1, %vm84_vm0 }
  0x9f   :  { %v80_v15 = vsub.f32 1.0, %v79_v14 }
  0xa1   :  { %v81_v16 = vmul.f32 %v1708_v13, %v80_v15  ;;  %v1690_v15 = vld [vmem:[%s2387_s5] ss:$0 sm:$0xff] }
  0xa3   :  { %v82_v17 = vadd.f32 %v1708_v13, %v81_v16 }
  0xa5   :  { %v86_v20 = vsel %vm85_vm2, %v1708_v13, %v82_v17 }
  0xa6   :  { %v91_v23 = vsel %vm88_vm3, %v90_v21, %v86_v20 }
  0xa7   :  { %v104_v32 = vsub.f32 1.0, %v91_v23  ;;  %v110_v35 = vmul.f32 0.0, %v91_v23 }
  0xfb   :  { %v95_v22 = vpop.permute.xlu0 %94 }
  0xfc   :  { %v97_v24 = vmul.f32 %v95_v22, %v91_v23 }
  0xfe   :  { %99 = vrot.lane.b32.xlu0 %v97_v24, %s1856_s27 }
 0x170   :  { %v100_v28 = vpop.permute.xlu0 %99 }
 0x171   :  { %v102_v29 = vadd.f32 %v100_v28, %v39_v8 }
 0x173   :  { %1709 = vtanh.f32 %v102_v29 }
 0x179   :  { %v1710_v30 = vpop.eup %1709 }
 0x17a   :  { %106 = vrot.lane.b32.xlu1 %v1710_v30, %s1858_s13 }
 0x182   :  { %114 = vperm.xlu1 %1685, %v40_v26  }
 0x1ec   :  { %v107_v31 = vpop.permute.xlu1 %106 }
 0x1ed   :  { %v109_v33 = vmul.f32 %v107_v31, %v104_v32 }
 0x1ef   :  { %v111_v37 = vadd.f32 %v110_v35, %v109_v33 }
 0x1f4   :  { %v115_v38 = vpop.permute.xlu1 %114 }
 0x1f5   :  { %v1947_v39 = vmul.f32 %v115_v38, %v111_v37 }
 0x1f7   :  { %v125_v40 = vadd.f32 %v124_v36, %v1947_v39  ;;  %v310_v36 = vsub.f32 1.0, %v1624_v18 }
 0x1f9   :  { %145 = vrot.lane.b32.xlu2 %v125_v40, %s1858_s13 }
 0x253   :  { %v146_v41 = vpop.permute.xlu2 %145 }
 0x254   :  { %1621 = vmatmul.msk.f32.vlgmr.msra.gmra.mxu1 %vm49_vm4, %v146_v41 }
 0x2d1   :  { %v166_v43 = vpop.f32.mrf.mxu1 }
 0x2d2   :  { %v167_v44 = vadd.f32 %v1689_v42, %v166_v43 }
 0x2d4   :  { %190 = vrot.lane.b32.xlu0 %v167_v44, %s1856_s27  ;;  %v169_v46 = vadd.f32 %v1619_v45, %v167_v44 }
 0x2d6   :  { %v1622_v47 = vmul.f32 -1.442695, %v169_v46 }
 0x2d8   :  { %1711 = vpow2.f32 %v1622_v47 }
 0x2dc   :  { %210 = vperm.xlu0 %1687, %v1620_v50  }
 0x2de   :  { %v1712_v48 = vpop.eup %1711 }
 0x2df   :  { %v173_v49 = vadd.f32 1.0, %v1712_v48 }
 0x2e1   :  { %1713 = vrcp.f32 %v173_v49  ;;  %v185_v56 = vand.u32 2147483648, %v173_v49  ;;  %vm179_vm6 = vweird.f32 %v173_v49  ;;  %v183_v57 = vand.u32 2147483647, %v173_v49 }
 0x2e3   :  { %v186_v59 = vor.u32 1.1754944e-38, %v185_v56  ;;  %vm184_vm8 = vcmp.eq.f32.partialorder %v183_v57, 8.507059e+37  ;;  %v1627_v56 = vld [vmem:[%s2383_s1 + $0xc] sm:$0xf] }
 0x2e7   :  { %v1714_v51 = vpop.eup %1713 }
 0x2e8   :  { %v175_v52 = vmul.f32 %v1714_v51, %v173_v49  ;;  %vm180_vm5 = vweird.f32 %v1714_v51 }
 0x2e9   :  { %vm181_vm7 = vmor %vm179_vm6, %vm180_vm5 }
 0x2ea   :  { %v176_v53 = vsub.f32 1.0, %v175_v52  ;;  %v1691_v52 = vld [vmem:[%s2387_s5] ss:$0 sm:$0xff] }
 0x2ec   :  { %v177_v54 = vmul.f32 %v1714_v51, %v176_v53 }
 0x2ee   :  { %v178_v55 = vadd.f32 %v1714_v51, %v177_v54 }
 0x2f0   :  { %v182_v58 = vsel %vm181_vm7, %v1714_v51, %v178_v55  ;;  %v1628_v55 = vld [vmem:[%s2382_s0 + $0xc] sm:$0xf] }
 0x2f1   :  { %v187_v61 = vsel %vm184_vm8, %v186_v59, %v182_v58 }
 0x2f2   :  { %v200_v3 = vsub.f32 1.0, %v187_v61  ;;  %v206_v7 = vmul.f32 %v187_v61, %v125_v40 }
 0x346   :  { %v191_v60 = vpop.permute.xlu0 %190 }
 0x347   :  { %v193_v62 = vmul.f32 %v191_v60, %v187_v61 }
 0x349   :  { %195 = vrot.lane.b32.xlu1 %v193_v62, %s1856_s27 }
 0x34e   :  { %v211_v9 = vpop.permute.xlu0 %210 }
 0x351   :  { %217 = vperm.xlu1 %1685, %v214_v63  }
 0x3bb   :  { %v196_v0 = vpop.permute.xlu1 %195 }
 0x3bc   :  { %v198_v1 = vadd.f32 %v1619_v45, %v196_v0 }
 0x3be   :  { %1715 = vtanh.f32 %v198_v1 }
 0x3c3   :  { %v218_v8 = vpop.permute.xlu1 %217 }
 0x3c4   :  { %v1716_v2 = vpop.eup %1715  ;;  %v220_v11 = vmul.f32 %v218_v8, %v125_v40 }
 0x3c5   :  { %202 = vrot.lane.b32.xlu2 %v1716_v2, %s1858_s13 }
 0x41f   :  { %v203_v5 = vpop.permute.xlu2 %202 }
 0x420   :  { %v205_v6 = vmul.f32 %v203_v5, %v200_v3 }
 0x422   :  { %v207_v10 = vadd.f32 %v206_v7, %v205_v6 }
 0x424   :  { %v1964_v12 = vmul.f32 %v211_v9, %v207_v10  ;;  %v406_v10 = vsub.f32 1.0, %v1628_v55 }
 0x426   :  { %v221_v13 = vadd.f32 %v220_v11, %v1964_v12 }
 0x428   :  { %241 = vrot.lane.b32.xlu2 %v221_v13, %s1858_s13 }
 0x482   :  { %v242_v14 = vpop.permute.xlu2 %241 }
 0x483   :  { %1625 = vmatmul.msk.f32.vlgmr.msra.gmra.mxu2 %vm49_vm4, %v242_v14 }
 0x506   :  { %v262_v16 = vpop.f32.mrf.mxu2 }
 0x507   :  { %v263_v17 = vadd.f32 %v1690_v15, %v262_v16 }
 0x509   :  { %286 = vrot.lane.b32.xlu1 %v263_v17, %s1856_s27  ;;  %v265_v20 = vadd.f32 %v1623_v19, %v263_v17 }
 0x50b   :  { %v1626_v21 = vmul.f32 -1.442695, %v265_v20 }
 0x50d   :  { %1717 = vpow2.f32 %v1626_v21 }
 0x511   :  { %306 = vperm.xlu1 %1685, %v1624_v18  }
 0x513   :  { %v1718_v22 = vpop.eup %1717 }
 0x514   :  { %v269_v23 = vadd.f32 1.0, %v1718_v22 }
 0x516   :  { %1719 = vrcp.f32 %v269_v23  ;;  %v281_v29 = vand.u32 2147483648, %v269_v23  ;;  %vm275_vm10 = vweird.f32 %v269_v23  ;;  %v279_v30 = vand.u32 2147483647, %v269_v23 }
 0x518   :  { %v282_v32 = vor.u32 1.1754944e-38, %v281_v29  ;;  %vm280_vm12 = vcmp.eq.f32.partialorder %v279_v30, 8.507059e+37  ;;  %v1692_v30 = vld [vmem:[%s2387_s5] ss:$0 sm:$0xff] }
 0x51c   :  { %v1720_v24 = vpop.eup %1719 }
 0x51d   :  { %v271_v25 = vmul.f32 %v1720_v24, %v269_v23  ;;  %vm276_vm9 = vweird.f32 %v1720_v24 }
 0x51e   :  { %vm277_vm11 = vmor %vm275_vm10, %vm276_vm9 }
 0x51f   :  { %v272_v26 = vsub.f32 1.0, %v271_v25  ;;  %v2008_v25 = vld [vmem:[%s2386_s4 + $0x18] sm:$0xff] }
 0x520   :  { %827 = vmatpush.msra.mxu0 %v2008_v25  ;;  %918 = vmatpush.msra.mxu1 %v2008_v25 }
 0x521   :  { %v273_v27 = vmul.f32 %v1720_v24, %v272_v26  ;;  %v2013_v26 = vld [vmem:[%s2386_s4 + $0x10] sm:$0xff]  ;;  %1008 = vmatpush.msra.mxu2 %v2008_v25 }
 0x522   :  { %828 = vmatpush.msra.mxu0 %v2013_v26  ;;  %919 = vmatpush.msra.mxu1 %v2013_v26 }
 0x523   :  { %v274_v28 = vadd.f32 %v1720_v24, %v273_v27  ;;  %v2020_v27 = vld [vmem:[%s2386_s4 + $0x8] sm:$0xff]  ;;  %1009 = vmatpush.msra.mxu2 %v2013_v26 }
 0x524   :  { %829 = vmatpush.msra.mxu0 %v2020_v27  ;;  %920 = vmatpush.msra.mxu1 %v2020_v27 }
 0x525   :  { %v278_v31 = vsel %vm277_vm11, %v1720_v24, %v274_v28  ;;  %v2028_v28 = vld [vmem:[%s2386_s4] sm:$0xff]  ;;  %1010 = vmatpush.msra.mxu2 %v2020_v27 }
 0x526   :  { %v283_v34 = vsel %vm280_vm12, %v282_v32, %v278_v31  ;;  %830 = vmatpush.msra.mxu0 %v2028_v28  ;;  %921 = vmatpush.msra.mxu1 %v2028_v28 }
 0x527   :  { %v296_v41 = vsub.f32 1.0, %v283_v34  ;;  %v302_v43 = vmul.f32 %v283_v34, %v221_v13  ;;  %1011 = vmatpush.msra.mxu2 %v2028_v28 }
 0x57b   :  { %v287_v33 = vpop.permute.xlu1 %286 }
 0x57c   :  { %v289_v35 = vmul.f32 %v287_v33, %v283_v34  ;;  %v1693_v33 = vld [vmem:[%s2388_s6] ss:$0 sm:$0xff] }
 0x57e   :  { %291 = vrot.lane.b32.xlu2 %v289_v35, %s1856_s27 }
 0x583   :  { %v307_v47 = vpop.permute.xlu1 %306 }
 0x586   :  { %313 = vperm.xlu2 %1686, %v310_v36  }
 0x5d8   :  { %v292_v37 = vpop.permute.xlu2 %291 }
 0x5d9   :  { %v294_v38 = vadd.f32 %v1623_v19, %v292_v37 }
 0x5db   :  { %1721 = vtanh.f32 %v294_v38  ;;  %v1631_v38 = vld [vmem:[%s2383_s1 + $0x10] sm:$0xf] }
 0x5e0   :  { %v314_v45 = vpop.permute.xlu2 %313 }
 0x5e1   :  { %v1722_v40 = vpop.eup %1721  ;;  %v316_v48 = vmul.f32 %v314_v45, %v221_v13 }
 0x5e2   :  { %298 = vrot.lane.b32.xlu0 %v1722_v40, %s1858_s13 }
 0x654   :  { %v299_v42 = vpop.permute.xlu0 %298 }
 0x655   :  { %v301_v44 = vmul.f32 %v299_v42, %v296_v41 }
 0x657   :  { %v303_v46 = vadd.f32 %v302_v43, %v301_v44 }
 0x659   :  { %v1981_v49 = vmul.f32 %v307_v47, %v303_v46 }
 0x65b   :  { %v317_v50 = vadd.f32 %v316_v48, %v1981_v49 }
 0x65d   :  { %337 = vrot.lane.b32.xlu0 %v317_v50, %s1858_s13 }
 0x6cf   :  { %v338_v51 = vpop.permute.xlu0 %337 }
 0x6d0   :  { %1629 = vmatmul.msk.f32.vlgmr.msra.gmra.mxu3 %vm49_vm4, %v338_v51 }
 0x753   :  { %v358_v53 = vpop.f32.mrf.mxu3 }
 0x754   :  { %v359_v54 = vadd.f32 %v1691_v52, %v358_v53 }
 0x756   :  { %382 = vrot.lane.b32.xlu1 %v359_v54, %s1856_s27  ;;  %v361_v57 = vadd.f32 %v1627_v56, %v359_v54 }
 0x758   :  { %v1630_v58 = vmul.f32 -1.442695, %v361_v57 }
 0x75a   :  { %1723 = vpow2.f32 %v1630_v58 }
 0x75e   :  { %402 = vperm.xlu1 %1685, %v1628_v55  }
 0x760   :  { %v1724_v59 = vpop.eup %1723 }
 0x761   :  { %v365_v60 = vadd.f32 1.0, %v1724_v59 }
 0x763   :  { %1725 = vrcp.f32 %v365_v60  ;;  %v377_v2 = vand.u32 2147483648, %v365_v60  ;;  %vm371_vm14 = vweird.f32 %v365_v60  ;;  %v375_v3 = vand.u32 2147483647, %v365_v60 }
 0x765   :  { %v378_v6 = vor.u32 1.1754944e-38, %v377_v2  ;;  %vm376_vm0 = vcmp.eq.f32.partialorder %v375_v3, 8.507059e+37 }
 0x769   :  { %v1726_v61 = vpop.eup %1725 }
 0x76a   :  { %v367_v62 = vmul.f32 %v1726_v61, %v365_v60  ;;  %vm372_vm13 = vweird.f32 %v1726_v61 }
 0x76b   :  { %vm373_vm15 = vmor %vm371_vm14, %vm372_vm13 }
 0x76c   :  { %v368_v63 = vsub.f32 1.0, %v367_v62  ;;  %v1632_v62 = vld [vmem:[%s2382_s0 + $0x10] sm:$0xf] }
 0x76e   :  { %v369_v0 = vmul.f32 %v1726_v61, %v368_v63 }
 0x770   :  { %v370_v1 = vadd.f32 %v1726_v61, %v369_v0  ;;  %v502_v0 = vsub.f32 1.0, %v1632_v62 }
 0x772   :  { %v374_v5 = vsel %vm373_vm15, %v1726_v61, %v370_v1 }
 0x773   :  { %v379_v8 = vsel %vm376_vm0, %v378_v6, %v374_v5  ;;  %v1648_v5 = vld [vmem:[%s2382_s0 + $0x1c] sm:$0xf] }
 0x774   :  { %v392_v15 = vsub.f32 1.0, %v379_v8  ;;  %v398_v17 = vmul.f32 %v379_v8, %v317_v50 }
 0x7c8   :  { %v383_v7 = vpop.permute.xlu1 %382 }
 0x7c9   :  { %v385_v9 = vmul.f32 %v383_v7, %v379_v8  ;;  %v880_v8 = vsub.f32 1.0, %v1648_v5 }
 0x7cb   :  { %387 = vrot.lane.b32.xlu2 %v385_v9, %s1856_s27 }
 0x7d0   :  { %v403_v21 = vpop.permute.xlu1 %402 }
 0x7d3   :  { %409 = vperm.xlu2 %1686, %v406_v10  }
 0x825   :  { %v388_v11 = vpop.permute.xlu2 %387 }
 0x826   :  { %v390_v13 = vadd.f32 %v1627_v56, %v388_v11 }
 0x828   :  { %1727 = vtanh.f32 %v390_v13 }
 0x82d   :  { %v410_v19 = vpop.permute.xlu2 %409 }
 0x82e   :  { %v1728_v14 = vpop.eup %1727  ;;  %v412_v22 = vmul.f32 %v410_v19, %v317_v50 }
 0x82f   :  { %394 = vrot.lane.b32.xlu0 %v1728_v14, %s1858_s13 }
 0x8a1   :  { %v395_v16 = vpop.permute.xlu0 %394 }
 0x8a2   :  { %v397_v18 = vmul.f32 %v395_v16, %v392_v15 }
 0x8a4   :  { %v399_v20 = vadd.f32 %v398_v17, %v397_v18 }
 0x8a6   :  { %v1998_v23 = vmul.f32 %v403_v21, %v399_v20 }
 0x8a8   :  { %v2001_v24 = vadd.f32 %v412_v22, %v1998_v23 }
 0x8aa   :  { %433 = vrot.lane.b32.xlu0 %v2001_v24, %s1858_s13 }
 0x91c   :  { %v434_v29 = vpop.permute.xlu0 %433 }
 0x91d   :  { %1633 = vmatmul.msk.f32.vlgmr.msrb.gmra.mxu0 %vm49_vm4, %v434_v29 }
 0x91e   :  { %1188 = vmatpush.msrb.mxu0 %v2008_v25 }
 0x920   :  { %1189 = vmatpush.msrb.mxu0 %v2013_v26 }
 0x922   :  { %1190 = vmatpush.msrb.mxu0 %v2020_v27 }
 0x924   :  { %1191 = vmatpush.msrb.mxu0 %v2028_v28 }
 0x925   :  { %831 = vmatmul.f32.vlgmr.msra.gmra.mxu0 %v1855_v4  ;;  %v1647_v4 = vld [vmem:[%s2384_s2 + $0x1c] sm:$0xf] }
 0x99a   :  { %v454_v31 = vpop.f32.mrf.mxu0 }
 0x99b   :  { %v455_v32 = vadd.f32 %v1692_v30, %v454_v31 }
 0x99d   :  { %478 = vrot.lane.b32.xlu1 %v455_v32, %s1856_s27  ;;  %v457_v41 = vadd.f32 %v1631_v38, %v455_v32 }
 0x99f   :  { %v1634_v43 = vmul.f32 -1.442695, %v457_v41 }
 0x9a2   :  { %v832_v34 = vpop.f32.mrf.mxu0 }
 0x9a3   :  { %v833_v35 = vadd.f32 %v1693_v33, %v832_v34 }
 0x9a5   :  { %856 = vrot.lane.b32.xlu2 %v833_v35, %s1856_s27  ;;  %v835_v36 = vadd.f32 %v1647_v4, %v833_v35 }
 0x9a7   :  { %v1649_v37 = vmul.f32 -1.442695, %v835_v36 }
 0x9a9   :  { %1729 = vpow2.f32 %v1649_v37 }
 0x9af   :  { %v1730_v40 = vpop.eup %1729 }
 0x9b0   :  { %v839_v42 = vadd.f32 1.0, %v1730_v40 }
 0x9b2   :  { %1731 = vrcp.f32 %v839_v42  ;;  %vm845_vm1 = vweird.f32 %v839_v42  ;;  %v851_v51 = vand.u32 2147483648, %v839_v42  ;;  %v849_v53 = vand.u32 2147483647, %v839_v42 }
 0x9b3   :  { %1733 = vpow2.f32 %v1634_v43 }
 0x9b4   :  { %v852_v55 = vor.u32 1.1754944e-38, %v851_v51  ;;  %vm850_vm5 = vcmp.eq.f32.partialorder %v849_v53, 8.507059e+37  ;;  %v1635_v53 = vld [vmem:[%s2383_s1 + $0x14] sm:$0xf] }
 0x9b8   :  { %v1732_v44 = vpop.eup %1731 }
 0x9b9   :  { %v1734_v45 = vpop.eup %1733  ;;  %v841_v46 = vmul.f32 %v1732_v44, %v839_v42  ;;  %vm846_vm2 = vweird.f32 %v1732_v44 }
 0x9ba   :  { %v461_v47 = vadd.f32 1.0, %v1734_v45  ;;  %vm847_vm3 = vmor %vm845_vm1, %vm846_vm2 }
 0x9bb   :  { %v842_v48 = vsub.f32 1.0, %v841_v46  ;;  %v1694_v46 = vld [vmem:[%s2387_s5] ss:$0 sm:$0xff] }
 0x9bc   :  { %1735 = vrcp.f32 %v461_v47  ;;  %v473_v2 = vand.u32 2147483648, %v461_v47  ;;  %vm467_vm7 = vweird.f32 %v461_v47  ;;  %v471_v3 = vand.u32 2147483647, %v461_v47 }
 0x9bd   :  { %v843_v50 = vmul.f32 %v1732_v44, %v842_v48 }
 0x9be   :  { %v474_v7 = vor.u32 1.1754944e-38, %v473_v2  ;;  %vm472_vm9 = vcmp.eq.f32.partialorder %v471_v3, 8.507059e+37 }
 0x9bf   :  { %v844_v52 = vadd.f32 %v1732_v44, %v843_v50  ;;  %v1695_v50 = vld [vmem:[%s2388_s6] ss:$0 sm:$0xff] }
 0x9c1   :  { %v848_v56 = vsel %vm847_vm3, %v1732_v44, %v844_v52 }
 0x9c2   :  { %v1736_v54 = vpop.eup %1735  ;;  %v853_v59 = vsel %vm850_vm5, %v852_v55, %v848_v56  ;;  %v1650_v56 = vld [vmem:[%s2384_s2 + $0x18] sm:$0xf] }
 0x9c3   :  { %v463_v57 = vmul.f32 %v1736_v54, %v461_v47  ;;  %vm468_vm6 = vweird.f32 %v1736_v54  ;;  %v866_v34 = vsub.f32 1.0, %v853_v59  ;;  %v872_v36 = vmul.f32 0.0, %v853_v59 }
 0x9c4   :  { %vm469_vm8 = vmor %vm467_vm7, %vm468_vm6 }
 0x9c5   :  { %v464_v61 = vsub.f32 1.0, %v463_v57 }
 0x9c7   :  { %v465_v63 = vmul.f32 %v1736_v54, %v464_v61 }
 0x9c9   :  { %v466_v1 = vadd.f32 %v1736_v54, %v465_v63 }
 0x9cb   :  { %v470_v6 = vsel %vm469_vm8, %v1736_v54, %v466_v1 }
 0x9cc   :  { %v475_v10 = vsel %vm472_vm9, %v474_v7, %v470_v6 }
 0x9cd   :  { %v488_v19 = vsub.f32 1.0, %v475_v10  ;;  %v494_v22 = vmul.f32 %v475_v10, %v2001_v24 }
 0x9ff   :  { %v857_v58 = vpop.permute.xlu2 %856 }
 0xa00   :  { %v859_v60 = vmul.f32 %v857_v58, %v853_v59 }
 0xa02   :  { %861 = vrot.lane.b32.xlu1 %v859_v60, %s1856_s27 }
 0xa0a   :  { %505 = vperm.xlu1 %1685, %v502_v0  }
 0xa0f   :  { %v479_v9 = vpop.permute.xlu1 %478 }
 0xa10   :  { %v481_v11 = vmul.f32 %v479_v9, %v475_v10 }
 0xa12   :  { %883 = vperm.xlu1 %1685, %v880_v8   ;;  %483 = vrot.lane.b32.xlu0 %v481_v11, %s1856_s27 }
 0xa1a   :  { %498 = vperm.xlu0 %1687, %v1632_v62  }
 0xa22   :  { %876 = vperm.xlu0 %1687, %v1648_v5  }
 0xa74   :  { %v862_v15 = vpop.permute.xlu1 %861 }
 0xa75   :  { %v864_v16 = vadd.f32 %v1647_v4, %v862_v15 }
 0xa7c   :  { %v506_v20 = vpop.permute.xlu1 %505 }
 0xa7d   :  { %v508_v32 = vmul.f32 %v506_v20, %v2001_v24 }
 0xa84   :  { %v484_v13 = vpop.permute.xlu0 %483 }
 0xa85   :  { %v486_v14 = vadd.f32 %v1631_v38, %v484_v13  ;;  %v884_v38 = vpop.permute.xlu1 %883 }
 0xa86   :  { %v886_v42 = vmul.f32 0.0, %v884_v38 }
 0xa87   :  { %1737 = vtanh.f32 %v486_v14 }
 0xa88   :  { %1739 = vtanh.f32 %v864_v16 }
 0xa8c   :  { %v499_v30 = vpop.permute.xlu0 %498 }
 0xa8d   :  { %v1738_v17 = vpop.eup %1737 }
 0xa8e   :  { %490 = vrot.lane.b32.xlu2 %v1738_v17, %s1858_s13  ;;  %v1740_v18 = vpop.eup %1739 }
 0xa94   :  { %v877_v41 = vpop.permute.xlu0 %876 }
 0xa96   :  { %868 = vrot.lane.b32.xlu2 %v1740_v18, %s1858_s13 }
 0xae8   :  { %v491_v21 = vpop.permute.xlu2 %490 }
 0xae9   :  { %v493_v29 = vmul.f32 %v491_v21, %v488_v19 }
 0xaeb   :  { %v495_v31 = vadd.f32 %v494_v22, %v493_v29 }
 0xaed   :  { %v2069_v33 = vmul.f32 %v499_v30, %v495_v31  ;;  %v1636_v30 = vld [vmem:[%s2382_s0 + $0x14] sm:$0xf] }
 0xaef   :  { %v2072_v35 = vadd.f32 %v508_v32, %v2069_v33  ;;  %v598_v32 = vsub.f32 1.0, %v1636_v30 }
 0xaf0   :  { %v869_v4 = vpop.permute.xlu2 %868 }
 0xaf1   :  { %v871_v37 = vmul.f32 %v869_v4, %v866_v34  ;;  %529 = vrot.lane.b32.xlu2 %v2072_v35, %s1858_s13  ;;  %v1651_v34 = vld [vmem:[%s2382_s0 + $0x18] sm:$0xf] }
 0xaf2   :  { %v971_v4 = vsub.f32 1.0, %v1651_v34 }
 0xaf3   :  { %v873_v40 = vadd.f32 %v872_v36, %v871_v37 }
 0xaf5   :  { %v2076_v43 = vmul.f32 %v877_v41, %v873_v40 }
 0xaf7   :  { %v2079_v24 = vadd.f32 %v886_v42, %v2076_v43 }
 0xaf9   :  { %902 = vrot.lane.b32.xlu0 %v2079_v24, %s1858_s13 }
 0xb4b   :  { %v530_v44 = vpop.permute.xlu2 %529 }
 0xb4c   :  { %1637 = vmatmul.msk.f32.vlgmr.msrb.gmra.mxu1 %vm49_vm4, %v530_v44 }
 0xb4d   :  { %1278 = vmatpush.msrb.mxu1 %v2008_v25 }
 0xb4f   :  { %1279 = vmatpush.msrb.mxu1 %v2013_v26 }
 0xb51   :  { %1280 = vmatpush.msrb.mxu1 %v2020_v27 }
 0xb53   :  { %1281 = vmatpush.msrb.mxu1 %v2028_v28 }
 0xb6b   :  { %v903_v45 = vpop.permute.xlu0 %902 }
 0xb6c   :  { %1652 = vmatmul.msk.f32.vlgmr.msra.gmra.mxu1 %vm49_vm4, %v903_v45 }
 0xbc9   :  { %v550_v47 = vpop.f32.mrf.mxu1 }
 0xbca   :  { %v551_v48 = vadd.f32 %v1694_v46, %v550_v47 }
 0xbcc   :  { %574 = vrot.lane.b32.xlu1 %v551_v48, %s1856_s27  ;;  %v553_v54 = vadd.f32 %v1635_v53, %v551_v48 }
 0xbce   :  { %v1638_v55 = vmul.f32 -1.442695, %v553_v54 }
 0xbd0   :  { %1741 = vpow2.f32 %v1638_v55 }
 0xbd6   :  { %v1742_v59 = vpop.eup %1741 }
 0xbd7   :  { %v557_v60 = vadd.f32 1.0, %v1742_v59 }
 0xbd9   :  { %v569_v8 = vand.u32 2147483648, %v557_v60  ;;  %vm563_vm11 = vweird.f32 %v557_v60  ;;  %v567_v9 = vand.u32 2147483647, %v557_v60 }
 0xbdb   :  { %v570_v13 = vor.u32 1.1754944e-38, %v569_v8  ;;  %vm568_vm13 = vcmp.eq.f32.partialorder %v567_v9, 8.507059e+37  ;;  %v1639_v8 = vld [vmem:[%s2383_s1 + $0x18] sm:$0xf] }
 0xbe9   :  { %v923_v51 = vpop.f32.mrf.mxu1 }
 0xbea   :  { %v924_v52 = vadd.f32 %v1695_v50, %v923_v51 }
 0xbec   :  { %947 = vrot.lane.b32.xlu2 %v924_v52, %s1856_s27  ;;  %v926_v57 = vadd.f32 %v1650_v56, %v924_v52 }
 0xbee   :  { %v1653_v58 = vmul.f32 -1.442695, %v926_v57 }
 0xbf0   :  { %1743 = vpow2.f32 %v1653_v58 }
 0xbf1   :  { %1745 = vrcp.f32 %v557_v60 }
 0xbf6   :  { %v1744_v61 = vpop.eup %1743 }
 0xbf7   :  { %v930_v62 = vadd.f32 1.0, %v1744_v61  ;;  %v1746_v63 = vpop.eup %1745 }
 0xbf8   :  { %v559_v0 = vmul.f32 %v1746_v63, %v557_v60  ;;  %vm564_vm10 = vweird.f32 %v1746_v63 }
 0xbf9   :  { %1747 = vrcp.f32 %v930_v62  ;;  %vm565_vm12 = vmor %vm563_vm11, %vm564_vm10  ;;  %v942_v18 = vand.u32 2147483648, %v930_v62  ;;  %vm936_vm15 = vweird.f32 %v930_v62  ;;  %v940_v19 = vand.u32 2147483647, %v930_v62 }
 0xbfa   :  { %v560_v1 = vsub.f32 1.0, %v559_v0 }
 0xbfb   :  { %v943_v21 = vor.u32 1.1754944e-38, %v942_v18  ;;  %vm941_vm1 = vcmp.eq.f32.partialorder %v940_v19, 8.507059e+37 }
 0xbfc   :  { %v561_v3 = vmul.f32 %v1746_v63, %v560_v1 }
 0xbfe   :  { %v562_v6 = vadd.f32 %v1746_v63, %v561_v3 }
 0xbff   :  { %v1748_v2 = vpop.eup %1747 }
 0xc00   :  { %v932_v5 = vmul.f32 %v1748_v2, %v930_v62  ;;  %v566_v10 = vsel %vm565_vm12, %v1746_v63, %v562_v6  ;;  %vm937_vm14 = vweird.f32 %v1748_v2 }
 0xc01   :  { %v571_v15 = vsel %vm568_vm13, %v570_v13, %v566_v10  ;;  %vm938_vm0 = vmor %vm936_vm15, %vm937_vm14 }
 0xc02   :  { %v933_v7 = vsub.f32 1.0, %v932_v5  ;;  %v584_v44 = vsub.f32 1.0, %v571_v15  ;;  %v590_v47 = vmul.f32 %v571_v15, %v2072_v35  ;;  %v1697_v5 = vld [vmem:[%s2388_s6] ss:$0 sm:$0xff] }
 0xc04   :  { %v934_v11 = vmul.f32 %v1748_v2, %v933_v7 }
 0xc06   :  { %v935_v17 = vadd.f32 %v1748_v2, %v934_v11  ;;  %v1654_v11 = vld [vmem:[%s2384_s2 + $0x14] sm:$0xf] }
 0xc08   :  { %v939_v20 = vsel %vm938_vm0, %v1748_v2, %v935_v17  ;;  %v1696_v2 = vld [vmem:[%s2387_s5] ss:$0 sm:$0xff] }
 0xc09   :  { %v944_v29 = vsel %vm941_vm1, %v943_v21, %v939_v20 }
 0xc0a   :  { %v957_v54 = vsub.f32 1.0, %v944_v29  ;;  %v963_v57 = vmul.f32 %v944_v29, %v2079_v24 }
 0xc3e   :  { %v575_v14 = vpop.permute.xlu1 %574 }
 0xc3f   :  { %v577_v16 = vmul.f32 %v575_v14, %v571_v15 }
 0xc41   :  { %579 = vrot.lane.b32.xlu0 %v577_v16, %s1856_s27 }
 0xc46   :  { %v948_v22 = vpop.permute.xlu2 %947 }
 0xc47   :  { %v950_v31 = vmul.f32 %v948_v22, %v944_v29 }
 0xc49   :  { %594 = vperm.xlu0 %1687, %v1636_v30   ;;  %952 = vrot.lane.b32.xlu1 %v950_v31, %s1856_s27 }
 0xc51   :  { %967 = vperm.xlu0 %1687, %v1651_v34   ;;  %601 = vperm.xlu1 %1685, %v598_v32  }
 0xc59   :  { %974 = vperm.xlu1 %1685, %v971_v4  }
 0xcb3   :  { %v580_v36 = vpop.permute.xlu0 %579 }
 0xcb4   :  { %v582_v37 = vadd.f32 %v1635_v53, %v580_v36 }
 0xcb6   :  { %1749 = vtanh.f32 %v582_v37 }
 0xcbb   :  { %v953_v38 = vpop.permute.xlu1 %952  ;;  %v595_v50 = vpop.permute.xlu0 %594 }
 0xcbc   :  { %v1750_v40 = vpop.eup %1749  ;;  %v955_v41 = vadd.f32 %v1650_v56, %v953_v38 }
 0xcbd   :  { %586 = vrot.lane.b32.xlu2 %v1750_v40, %s1858_s13 }
 0xcbe   :  { %1751 = vtanh.f32 %v955_v41 }
 0xcc3   :  { %v602_v45 = vpop.permute.xlu1 %601  ;;  %v968_v61 = vpop.permute.xlu0 %967 }
 0xcc4   :  { %v1752_v42 = vpop.eup %1751  ;;  %v604_v52 = vmul.f32 %v602_v45, %v2072_v35 }
 0xcc5   :  { %959 = vrot.lane.b32.xlu2 %v1752_v42, %s1858_s13 }
 0xccb   :  { %v975_v59 = vpop.permute.xlu1 %974 }
 0xccc   :  { %v977_v62 = vmul.f32 %v975_v59, %v2079_v24 }
 0xd17   :  { %v587_v46 = vpop.permute.xlu2 %586 }
 0xd18   :  { %v589_v48 = vmul.f32 %v587_v46, %v584_v44 }
 0xd1a   :  { %v591_v51 = vadd.f32 %v590_v47, %v589_v48 }
 0xd1c   :  { %v2115_v53 = vmul.f32 %v595_v50, %v591_v51 }
 0xd1e   :  { %v2118_v55 = vadd.f32 %v604_v52, %v2115_v53  ;;  %v1640_v52 = vld [vmem:[%s2382_s0 + $0x18] sm:$0xf] }
 0xd1f   :  { %v960_v56 = vpop.permute.xlu2 %959 }
 0xd20   :  { %v962_v58 = vmul.f32 %v960_v56, %v957_v54  ;;  %625 = vrot.lane.b32.xlu2 %v2118_v55, %s1858_s13  ;;  %v694_v56 = vsub.f32 1.0, %v1640_v52 }
 0xd22   :  { %v964_v60 = vadd.f32 %v963_v57, %v962_v58  ;;  %v1655_v57 = vld [vmem:[%s2382_s0 + $0x14] sm:$0xf] }
 0xd23   :  { %v1061_v58 = vsub.f32 1.0, %v1655_v57 }
 0xd24   :  { %v2124_v63 = vmul.f32 %v968_v61, %v964_v60 }
 0xd26   :  { %v2127_v35 = vadd.f32 %v977_v62, %v2124_v63 }
 0xd28   :  { %992 = vrot.lane.b32.xlu0 %v2127_v35, %s1858_s13 }
 0xd7a   :  { %v626_v0 = vpop.permute.xlu2 %625 }
 0xd7b   :  { %1641 = vmatmul.msk.f32.vlgmr.msrb.gmra.mxu2 %vm49_vm4, %v626_v0 }
 0xd9a   :  { %v993_v1 = vpop.permute.xlu0 %992 }
 0xd9b   :  { %1656 = vmatmul.msk.f32.vlgmr.msra.gmra.mxu2 %vm49_vm4, %v993_v1 }
 0xdfe   :  { %v646_v3 = vpop.f32.mrf.mxu2 }
 0xdff   :  { %v647_v24 = vadd.f32 %v1696_v2, %v646_v3  ;;  %v715_v2 = vld [vmem:[%s2385_s3 + $0x18] sm:$0xff]  ;;  %v714_v3 = vld [vmem:[%s2385_s3 + $0x10] sm:$0xff] }
 0xe00   :  { %737 = vmatpush.msrb.mxu3 %v715_v2 }
 0xe01   :  { %670 = vrot.lane.b32.xlu1 %v647_v24, %s1856_s27  ;;  %v649_v9 = vadd.f32 %v1639_v8, %v647_v24  ;;  %v713_v24 = vld [vmem:[%s2385_s3 + $0x8] sm:$0xff] }
 0xe02   :  { %738 = vmatpush.msrb.mxu3 %v714_v3 }
 0xe03   :  { %v1642_v10 = vmul.f32 -1.442695, %v649_v9 }
 0xe04   :  { %739 = vmatpush.msrb.mxu3 %v713_v24 }
 0xe05   :  { %1753 = vpow2.f32 %v1642_v10 }
 0xe0b   :  { %v1754_v15 = vpop.eup %1753 }
 0xe0c   :  { %v653_v16 = vadd.f32 1.0, %v1754_v15 }
 0xe0e   :  { %v665_v34 = vand.u32 2147483648, %v653_v16  ;;  %vm659_vm3 = vweird.f32 %v653_v16  ;;  %v663_v4 = vand.u32 2147483647, %v653_v16 }
 0xe10   :  { %v666_v38 = vor.u32 1.1754944e-38, %v665_v34  ;;  %vm664_vm6 = vcmp.eq.f32.partialorder %v663_v4, 8.507059e+37  ;;  %v1659_v34 = vld [vmem:[%s2382_s0 + $0x10] sm:$0xf] }
 0xe11   :  { %v1658_v4 = vld [vmem:[%s2384_s2 + $0x10] sm:$0xf] }
 0xe1e   :  { %v1013_v6 = vpop.f32.mrf.mxu2 }
 0xe1f   :  { %v1014_v7 = vadd.f32 %v1697_v5, %v1013_v6  ;;  %v712_v5 = vld [vmem:[%s2385_s3] sm:$0xff] }
 0xe20   :  { %740 = vmatpush.msrb.mxu3 %v712_v5 }
 0xe21   :  { %1037 = vrot.lane.b32.xlu2 %v1014_v7, %s1856_s27  ;;  %v1016_v13 = vadd.f32 %v1654_v11, %v1014_v7 }
 0xe22   :  { %1098 = vmatpush.msra.mxu3 %v2008_v25 }
 0xe23   :  { %v1657_v14 = vmul.f32 -1.442695, %v1016_v13 }
 0xe24   :  { %1099 = vmatpush.msra.mxu3 %v2013_v26 }
 0xe25   :  { %1755 = vpow2.f32 %v1657_v14 }
 0xe26   :  { %1757 = vrcp.f32 %v653_v16  ;;  %1100 = vmatpush.msra.mxu3 %v2020_v27 }
 0xe28   :  { %1101 = vmatpush.msra.mxu3 %v2028_v28 }
 0xe2b   :  { %v1756_v17 = vpop.eup %1755 }
 0xe2c   :  { %v1020_v18 = vadd.f32 1.0, %v1756_v17  ;;  %v1758_v19 = vpop.eup %1757 }
 0xe2d   :  { %v655_v20 = vmul.f32 %v1758_v19, %v653_v16  ;;  %vm660_vm2 = vweird.f32 %v1758_v19 }
 0xe2e   :  { %1759 = vrcp.f32 %v1020_v18  ;;  %vm661_vm5 = vmor %vm659_vm3, %vm660_vm2  ;;  %v1032_v45 = vand.u32 2147483648, %v1020_v18  ;;  %vm1026_vm8 = vweird.f32 %v1020_v18  ;;  %v1030_v46 = vand.u32 2147483647, %v1020_v18 }
 0xe2f   :  { %v656_v21 = vsub.f32 1.0, %v655_v20 }
 0xe30   :  { %v1033_v48 = vor.u32 1.1754944e-38, %v1032_v45  ;;  %vm1031_vm10 = vcmp.eq.f32.partialorder %v1030_v46, 8.507059e+37 }
 0xe31   :  { %v657_v29 = vmul.f32 %v1758_v19, %v656_v21 }
 0xe33   :  { %v658_v31 = vadd.f32 %v1758_v19, %v657_v29 }
 0xe34   :  { %v1760_v22 = vpop.eup %1759 }
 0xe35   :  { %v1022_v30 = vmul.f32 %v1760_v22, %v1020_v18  ;;  %v662_v36 = vsel %vm661_vm5, %v1758_v19, %v658_v31  ;;  %vm1027_vm7 = vweird.f32 %v1760_v22  ;;  %v1699_v31 = vld [vmem:[%s2388_s6] ss:$0 sm:$0xff] }
 0xe36   :  { %v667_v41 = vsel %vm664_vm6, %v666_v38, %v662_v36  ;;  %vm1028_vm9 = vmor %vm1026_vm8, %vm1027_vm7 }
 0xe37   :  { %v1023_v32 = vsub.f32 1.0, %v1022_v30  ;;  %v680_v6 = vsub.f32 1.0, %v667_v41  ;;  %v686_v9 = vmul.f32 %v667_v41, %v2118_v55 }
 0xe39   :  { %v1024_v37 = vmul.f32 %v1760_v22, %v1023_v32 }
 0xe3b   :  { %v1025_v44 = vadd.f32 %v1760_v22, %v1024_v37 }
 0xe3d   :  { %v1029_v47 = vsel %vm1028_vm9, %v1760_v22, %v1025_v44 }
 0xe3e   :  { %v1034_v51 = vsel %vm1031_vm10, %v1033_v48, %v1029_v47 }
 0xe3f   :  { %v1047_v16 = vsub.f32 1.0, %v1034_v51  ;;  %v1053_v27 = vmul.f32 %v1034_v51, %v2127_v35 }
 0xe73   :  { %v671_v40 = vpop.permute.xlu1 %670 }
 0xe74   :  { %v673_v42 = vmul.f32 %v671_v40, %v667_v41 }
 0xe76   :  { %675 = vrot.lane.b32.xlu0 %v673_v42, %s1856_s27 }
 0xe7b   :  { %v1038_v50 = vpop.permute.xlu2 %1037 }
 0xe7c   :  { %v1040_v54 = vmul.f32 %v1038_v50, %v1034_v51 }
 0xe7e   :  { %690 = vperm.xlu0 %1687, %v1640_v52   ;;  %1042 = vrot.lane.b32.xlu1 %v1040_v54, %s1856_s27 }
 0xe86   :  { %1057 = vperm.xlu0 %1687, %v1655_v57   ;;  %697 = vperm.xlu1 %1685, %v694_v56   ;;  %v1151_v57 = vsub.f32 1.0, %v1659_v34 }
 0xe8e   :  { %1064 = vperm.xlu1 %1685, %v1061_v58  }
 0xee8   :  { %v676_v59 = vpop.permute.xlu0 %675 }
 0xee9   :  { %v678_v60 = vadd.f32 %v1639_v8, %v676_v59 }
 0xeeb   :  { %1761 = vtanh.f32 %v678_v60 }
 0xef0   :  { %v1043_v61 = vpop.permute.xlu1 %1042 }
 0xef1   :  { %v1762_v62 = vpop.eup %1761  ;;  %v1045_v0 = vadd.f32 %v1654_v11, %v1043_v61  ;;  %v691_v11 = vpop.permute.xlu0 %690 }
 0xef2   :  { %682 = vrot.lane.b32.xlu2 %v1762_v62, %s1858_s13 }
 0xef3   :  { %1763 = vtanh.f32 %v1045_v0 }
 0xef8   :  { %v698_v7 = vpop.permute.xlu1 %697 }
 0xef9   :  { %v1764_v1 = vpop.eup %1763  ;;  %v700_v14 = vmul.f32 %v698_v7, %v2118_v55  ;;  %v1058_v19 = vpop.permute.xlu0 %1057 }
 0xefa   :  { %1049 = vrot.lane.b32.xlu2 %v1764_v1, %s1858_s13 }
 0xf00   :  { %v1065_v28 = vpop.permute.xlu1 %1064 }
 0xf01   :  { %v1067_v20 = vmul.f32 %v1065_v28, %v2127_v35 }
 0xf4c   :  { %v683_v8 = vpop.permute.xlu2 %682 }
 0xf4d   :  { %v685_v10 = vmul.f32 %v683_v8, %v680_v6 }
 0xf4f   :  { %v687_v13 = vadd.f32 %v686_v9, %v685_v10  ;;  %v1700_v9 = vld [vmem:[%s2388_s6] ss:$0 sm:$0xff] }
 0xf51   :  { %v2175_v15 = vmul.f32 %v691_v11, %v687_v13  ;;  %v1663_v13 = vld [vmem:[%s2382_s0 + $0xc] sm:$0xf] }
 0xf53   :  { %v2178_v25 = vadd.f32 %v700_v14, %v2175_v15  ;;  %v1662_v14 = vld [vmem:[%s2384_s2 + $0xc] sm:$0xf] }
 0xf54   :  { %v1050_v26 = vpop.permute.xlu2 %1049 }
 0xf55   :  { %v1052_v17 = vmul.f32 %v1050_v26, %v1047_v16  ;;  %721 = vrot.lane.b32.xlu2 %v2178_v25, %s1858_s13 }
 0xf57   :  { %v1054_v18 = vadd.f32 %v1053_v27, %v1052_v17 }
 0xf59   :  { %v2184_v21 = vmul.f32 %v1058_v19, %v1054_v18 }
 0xf5b   :  { %v1068_v55 = vadd.f32 %v1067_v20, %v2184_v21 }
 0xf5d   :  { %1082 = vrot.lane.b32.xlu0 %v1068_v55, %s1858_s13 }
 0xfaf   :  { %v722_v22 = vpop.permute.xlu2 %721 }
 0xfb0   :  { %1645 = vmatmul.msk.f32.vlgmr.msrb.gmra.mxu3 %vm49_vm4, %v722_v22 }
 0xfcf   :  { %v1083_v29 = vpop.permute.xlu0 %1082 }
 0xfd0   :  { %1660 = vmatmul.msk.f32.vlgmr.msra.gmra.mxu3 %vm49_vm4, %v1083_v29 }
0x1033   :  { %v2190_v30 = vpop.f32.mrf.mxu3 }
0x1053   :  { %v1103_v32 = vpop.f32.mrf.mxu3 }
0x1054   :  { %v1104_v35 = vadd.f32 %v1699_v31, %v1103_v32 }
0x1056   :  { %1127 = vrot.lane.b32.xlu1 %v1104_v35, %s1856_s27  ;;  %v1106_v36 = vadd.f32 %v1658_v4, %v1104_v35 }
0x1058   :  { %v1661_v37 = vmul.f32 -1.442695, %v1106_v36  ;;  %v1241_v36 = vsub.f32 1.0, %v1663_v13 }
0x105a   :  { %1765 = vpow2.f32 %v1661_v37 }
0x105e   :  { %1147 = vperm.xlu1 %1685, %v1659_v34  }
0x1060   :  { %v1766_v38 = vpop.eup %1765 }
0x1061   :  { %v1110_v40 = vadd.f32 1.0, %v1766_v38 }
0x1063   :  { %1767 = vrcp.f32 %v1110_v40  ;;  %v1122_v47 = vand.u32 2147483648, %v1110_v40  ;;  %vm1116_vm12 = vweird.f32 %v1110_v40  ;;  %v1120_v48 = vand.u32 2147483647, %v1110_v40 }
0x1065   :  { %v1123_v51 = vor.u32 1.1754944e-38, %v1122_v47  ;;  %vm1121_vm14 = vcmp.eq.f32.partialorder %v1120_v48, 8.507059e+37 }
0x1069   :  { %v1768_v41 = vpop.eup %1767 }
0x106a   :  { %v1112_v42 = vmul.f32 %v1768_v41, %v1110_v40  ;;  %vm1117_vm11 = vweird.f32 %v1768_v41 }
0x106b   :  { %vm1118_vm13 = vmor %vm1116_vm12, %vm1117_vm11 }
0x106c   :  { %v1113_v44 = vsub.f32 1.0, %v1112_v42 }
0x106e   :  { %v1114_v45 = vmul.f32 %v1768_v41, %v1113_v44 }
0x1070   :  { %v1115_v46 = vadd.f32 %v1768_v41, %v1114_v45 }
0x1072   :  { %v1119_v50 = vsel %vm1118_vm13, %v1768_v41, %v1115_v46 }
0x1073   :  { %v1124_v54 = vsel %vm1121_vm14, %v1123_v51, %v1119_v50 }
0x1074   :  { %v1137_v61 = vsub.f32 1.0, %v1124_v54  ;;  %v1143_v0 = vmul.f32 %v1124_v54, %v1068_v55 }
0x10c8   :  { %v1128_v52 = vpop.permute.xlu1 %1127 }
0x10c9   :  { %v1130_v56 = vmul.f32 %v1128_v52, %v1124_v54 }
0x10cb   :  { %1132 = vrot.lane.b32.xlu2 %v1130_v56, %s1856_s27  ;;  %v1701_v56 = vld [vmem:[%s2388_s6] ss:$0 sm:$0xff] }
0x10d0   :  { %v1148_v24 = vpop.permute.xlu1 %1147 }
0x10d3   :  { %1154 = vperm.xlu2 %1686, %v1151_v57  }
0x1125   :  { %v1133_v58 = vpop.permute.xlu2 %1132 }
0x1126   :  { %v1135_v59 = vadd.f32 %v1658_v4, %v1133_v58 }
0x1128   :  { %1769 = vtanh.f32 %v1135_v59  ;;  %v1667_v59 = vld [vmem:[%s2382_s0 + $0x8] sm:$0xf] }
0x112d   :  { %v1155_v2 = vpop.permute.xlu2 %1154 }
0x112e   :  { %v1770_v60 = vpop.eup %1769  ;;  %v1157_v5 = vmul.f32 %v1155_v2, %v1068_v55 }
0x112f   :  { %1139 = vrot.lane.b32.xlu0 %v1770_v60, %s1858_s13  ;;  %v1666_v60 = vld [vmem:[%s2384_s2 + $0x8] sm:$0xf] }
0x11a1   :  { %v1140_v62 = vpop.permute.xlu0 %1139 }
0x11a2   :  { %v1142_v1 = vmul.f32 %v1140_v62, %v1137_v61 }
0x11a4   :  { %v1144_v3 = vadd.f32 %v1143_v0, %v1142_v1 }
0x11a6   :  { %v2204_v6 = vmul.f32 %v1148_v24, %v1144_v3 }
0x11a8   :  { %v1158_v7 = vadd.f32 %v1157_v5, %v2204_v6 }
0x11aa   :  { %1172 = vrot.lane.b32.xlu0 %v1158_v7, %s1858_s13 }
0x121c   :  { %v1173_v8 = vpop.permute.xlu0 %1172 }
0x121d   :  { %1664 = vmatmul.msk.f32.vlgmr.msrb.gmra.mxu0 %vm49_vm4, %v1173_v8 }
0x129a   :  { %v1193_v10 = vpop.f32.mrf.mxu0 }
0x129b   :  { %v1194_v11 = vadd.f32 %v1700_v9, %v1193_v10 }
0x129d   :  { %1217 = vrot.lane.b32.xlu1 %v1194_v11, %s1856_s27  ;;  %v1196_v16 = vadd.f32 %v1662_v14, %v1194_v11 }
0x129f   :  { %v1665_v26 = vmul.f32 -1.442695, %v1196_v16 }
0x12a1   :  { %1771 = vpow2.f32 %v1665_v26  ;;  %v1331_v26 = vsub.f32 1.0, %v1667_v59 }
0x12a5   :  { %1237 = vperm.xlu1 %1685, %v1663_v13  }
0x12a7   :  { %v1772_v27 = vpop.eup %1771 }
0x12a8   :  { %v1200_v17 = vadd.f32 1.0, %v1772_v27 }
0x12aa   :  { %1773 = vrcp.f32 %v1200_v17  ;;  %v1212_v22 = vand.u32 2147483648, %v1200_v17  ;;  %vm1206_vm0 = vweird.f32 %v1200_v17  ;;  %v1210_v29 = vand.u32 2147483647, %v1200_v17 }
0x12ac   :  { %v1213_v32 = vor.u32 1.1754944e-38, %v1212_v22  ;;  %vm1211_vm2 = vcmp.eq.f32.partialorder %v1210_v29, 8.507059e+37 }
0x12b0   :  { %v1774_v28 = vpop.eup %1773 }
0x12b1   :  { %v1202_v18 = vmul.f32 %v1774_v28, %v1200_v17  ;;  %vm1207_vm15 = vweird.f32 %v1774_v28 }
0x12b2   :  { %vm1208_vm1 = vmor %vm1206_vm0, %vm1207_vm15 }
0x12b3   :  { %v1203_v19 = vsub.f32 1.0, %v1202_v18  ;;  %v1346_v18 = vld [vmem:[%s2386_s4 + $0x18] sm:$0xff] }
0x12b4   :  { %1368 = vmatpush.msrb.mxu2 %v1346_v18  ;;  %1457 = vmatpush.msrb.mxu3 %v1346_v18 }
0x12b5   :  { %v1204_v20 = vmul.f32 %v1774_v28, %v1203_v19  ;;  %v1345_v19 = vld [vmem:[%s2386_s4 + $0x10] sm:$0xff] }
0x12b6   :  { %1369 = vmatpush.msrb.mxu2 %v1345_v19  ;;  %1458 = vmatpush.msrb.mxu3 %v1345_v19 }
0x12b7   :  { %v1205_v55 = vadd.f32 %v1774_v28, %v1204_v20  ;;  %v1344_v20 = vld [vmem:[%s2386_s4 + $0x8] sm:$0xff] }
0x12b8   :  { %1370 = vmatpush.msrb.mxu2 %v1344_v20  ;;  %1459 = vmatpush.msrb.mxu3 %v1344_v20 }
0x12b9   :  { %v1209_v31 = vsel %vm1208_vm1, %v1774_v28, %v1205_v55  ;;  %v1343_v55 = vld [vmem:[%s2386_s4] sm:$0xff] }
0x12ba   :  { %v1214_v34 = vsel %vm1211_vm2, %v1213_v32, %v1209_v31  ;;  %1371 = vmatpush.msrb.mxu2 %v1343_v55  ;;  %1460 = vmatpush.msrb.mxu3 %v1343_v55 }
0x12bb   :  { %v1227_v41 = vsub.f32 1.0, %v1214_v34  ;;  %v1233_v44 = vmul.f32 %v1214_v34, %v1158_v7 }
0x130f   :  { %v1218_v35 = vpop.permute.xlu1 %1217 }
0x1310   :  { %v1220_v4 = vmul.f32 %v1218_v35, %v1214_v34 }
0x1312   :  { %1222 = vrot.lane.b32.xlu2 %v1220_v4, %s1856_s27 }
0x1317   :  { %v1238_v48 = vpop.permute.xlu1 %1237 }
0x131a   :  { %1244 = vperm.xlu2 %1686, %v1241_v36  }
0x136c   :  { %v1223_v37 = vpop.permute.xlu2 %1222 }
0x136d   :  { %v1225_v38 = vadd.f32 %v1662_v14, %v1223_v37 }
0x136f   :  { %1775 = vtanh.f32 %v1225_v38 }
0x1374   :  { %v1245_v46 = vpop.permute.xlu2 %1244 }
0x1375   :  { %v1776_v40 = vpop.eup %1775  ;;  %v1247_v50 = vmul.f32 %v1245_v46, %v1158_v7  ;;  %v1698_v46 = vld [vmem:[%s2387_s5] ss:$0 sm:$0xff] }
0x1376   :  { %1229 = vrot.lane.b32.xlu0 %v1776_v40, %s1858_s13 }
0x13e8   :  { %v1230_v42 = vpop.permute.xlu0 %1229 }
0x13e9   :  { %v1232_v45 = vmul.f32 %v1230_v42, %v1227_v41  ;;  %v1702_v41 = vld [vmem:[%s2388_s6] ss:$0 sm:$0xff] }
0x13eb   :  { %v1234_v47 = vadd.f32 %v1233_v44, %v1232_v45  ;;  %v1671_v45 = vld [vmem:[%s2382_s0 + $0x4] sm:$0xf] }
0x13ed   :  { %v2221_v51 = vmul.f32 %v1238_v48, %v1234_v47  ;;  %v743_v47 = vadd.f32 %v1698_v46, %v2190_v30  ;;  %v1670_v48 = vld [vmem:[%s2384_s2 + $0x4] sm:$0xf] }
0x13ef   :  { %v1248_v52 = vadd.f32 %v1247_v50, %v2221_v51 }
0x13f1   :  { %1262 = vrot.lane.b32.xlu0 %v1248_v52, %s1858_s13 }
0x1463   :  { %v1263_v54 = vpop.permute.xlu0 %1262 }
0x1464   :  { %1668 = vmatmul.msk.f32.vlgmr.msrb.gmra.mxu1 %vm49_vm4, %v1263_v54 }
0x14e1   :  { %v1283_v57 = vpop.f32.mrf.mxu1 }
0x14e2   :  { %v1284_v58 = vadd.f32 %v1701_v56, %v1283_v57 }
0x14e4   :  { %1307 = vrot.lane.b32.xlu1 %v1284_v58, %s1856_s27  ;;  %v1286_v61 = vadd.f32 %v1666_v60, %v1284_v58 }
0x14e6   :  { %v1669_v62 = vmul.f32 -1.442695, %v1286_v61 }
0x14e8   :  { %1777 = vpow2.f32 %v1669_v62 }
0x14ec   :  { %1327 = vperm.xlu1 %1685, %v1667_v59  }
0x14ee   :  { %v1778_v0 = vpop.eup %1777 }
0x14ef   :  { %v1290_v1 = vadd.f32 1.0, %v1778_v0 }
0x14f1   :  { %1779 = vrcp.f32 %v1290_v1  ;;  %v1302_v8 = vand.u32 2147483648, %v1290_v1  ;;  %vm1296_vm5 = vweird.f32 %v1290_v1  ;;  %v1300_v9 = vand.u32 2147483647, %v1290_v1 }
0x14f3   :  { %v1303_v11 = vor.u32 1.1754944e-38, %v1302_v8  ;;  %vm1301_vm7 = vcmp.eq.f32.partialorder %v1300_v9, 8.507059e+37 }
0x14f7   :  { %v1780_v2 = vpop.eup %1779 }
0x14f8   :  { %v1292_v3 = vmul.f32 %v1780_v2, %v1290_v1  ;;  %vm1297_vm3 = vweird.f32 %v1780_v2 }
0x14f9   :  { %vm1298_vm6 = vmor %vm1296_vm5, %vm1297_vm3  ;;  %vm130_vm5 = vcmask 257024  }
0x14fa   :  { %v1293_v24 = vsub.f32 1.0, %v1292_v3 }
0x14fc   :  { %v1294_v5 = vmul.f32 %v1780_v2, %v1293_v24 }
0x14fe   :  { %v1295_v7 = vadd.f32 %v1780_v2, %v1294_v5  ;;  %v1421_v5 = vsub.f32 1.0, %v1671_v45 }
0x1500   :  { %v1299_v10 = vsel %vm1298_vm6, %v1780_v2, %v1295_v7  ;;  %vm888_vm6 = vcmask 519424  }
0x1501   :  { %v1304_v14 = vsel %vm1301_vm7, %v1303_v11, %v1299_v10  ;;  %v1643_v10 = vld [vmem:[%s2383_s1 + $0x1c] sm:$0xf] }
0x1502   :  { %v1317_v22 = vsub.f32 1.0, %v1304_v14  ;;  %v1323_v31 = vmul.f32 %v1304_v14, %v1248_v52  ;;  %v745_v11 = vadd.f32 %v1643_v10, %v743_v47 }
0x1556   :  { %v1308_v13 = vpop.permute.xlu1 %1307 }
0x1557   :  { %v1310_v16 = vmul.f32 %v1308_v13, %v1304_v14  ;;  %v1646_v13 = vmul.f32 -1.442695, %v745_v11 }
0x1559   :  { %1312 = vrot.lane.b32.xlu2 %v1310_v16, %s1856_s27 }
0x155e   :  { %v1328_v4 = vpop.permute.xlu1 %1327 }
0x1561   :  { %1334 = vperm.xlu2 %1686, %v1331_v26  }
0x15b3   :  { %v1313_v27 = vpop.permute.xlu2 %1312 }
0x15b4   :  { %v1315_v17 = vadd.f32 %v1666_v60, %v1313_v27 }
0x15b6   :  { %1781 = vtanh.f32 %v1315_v17 }
0x15bb   :  { %v1335_v35 = vpop.permute.xlu2 %1334 }
0x15bc   :  { %v1782_v28 = vpop.eup %1781  ;;  %v1337_v36 = vmul.f32 %v1335_v35, %v1248_v52 }
0x15bd   :  { %1319 = vrot.lane.b32.xlu0 %v1782_v28, %s1858_s13 }
0x162f   :  { %v1320_v29 = vpop.permute.xlu0 %1319 }
0x1630   :  { %v1322_v32 = vmul.f32 %v1320_v29, %v1317_v22 }
0x1632   :  { %v1324_v34 = vadd.f32 %v1323_v31, %v1322_v32 }
0x1634   :  { %v2250_v37 = vmul.f32 %v1328_v4, %v1324_v34 }
0x1636   :  { %v1338_v38 = vadd.f32 %v1337_v36, %v2250_v37 }
0x1638   :  { %1352 = vrot.lane.b32.xlu0 %v1338_v38, %s1858_s13 }
0x16aa   :  { %v1353_v40 = vpop.permute.xlu0 %1352 }
0x16ab   :  { %1672 = vmatmul.msk.f32.vlgmr.msrb.gmra.mxu2 %vm49_vm4, %v1353_v40 }
0x172e   :  { %v1373_v42 = vpop.f32.mrf.mxu2 }
0x172f   :  { %v1374_v44 = vadd.f32 %v1702_v41, %v1373_v42 }
0x1731   :  { %1397 = vrot.lane.b32.xlu1 %v1374_v44, %s1856_s27  ;;  %v1376_v50 = vadd.f32 %v1670_v48, %v1374_v44 }
0x1733   :  { %v1673_v52 = vmul.f32 -1.442695, %v1376_v50 }
0x1735   :  { %1783 = vpow2.f32 %v1673_v52 }
0x1739   :  { %1417 = vperm.xlu1 %1685, %v1671_v45  }
0x173b   :  { %v1784_v54 = vpop.eup %1783 }
0x173c   :  { %v1380_v56 = vadd.f32 1.0, %v1784_v54 }
0x173e   :  { %1785 = vrcp.f32 %v1380_v56  ;;  %v1392_v62 = vand.u32 2147483648, %v1380_v56  ;;  %vm1386_vm9 = vweird.f32 %v1380_v56  ;;  %v1390_v30 = vand.u32 2147483647, %v1380_v56 }
0x1740   :  { %v1393_v1 = vor.u32 1.1754944e-38, %v1392_v62  ;;  %vm1391_vm11 = vcmp.eq.f32.partialorder %v1390_v30, 8.507059e+37 }
0x1741   :  { %766 = vrot.lane.b32.xlu1 %v743_v47, %s1856_s27 }
0x1744   :  { %v1786_v57 = vpop.eup %1785 }
0x1745   :  { %v1382_v58 = vmul.f32 %v1786_v57, %v1380_v56  ;;  %vm1387_vm8 = vweird.f32 %v1786_v57 }
0x1746   :  { %vm1388_vm10 = vmor %vm1386_vm9, %vm1387_vm8 }
0x1747   :  { %v1383_v59 = vsub.f32 1.0, %v1382_v58 }
0x1749   :  { %v1384_v60 = vmul.f32 %v1786_v57, %v1383_v59  ;;  %v1430_v59 = vld [vmem:[%s2384_s2] sm:$0xf] }
0x174b   :  { %v1385_v61 = vadd.f32 %v1786_v57, %v1384_v60 }
0x174d   :  { %v1389_v0 = vsel %vm1388_vm10, %v1786_v57, %v1385_v61  ;;  %v1644_v57 = vld [vmem:[%s2382_s0 + $0x1c] sm:$0xf] }
0x174e   :  { %v1394_v3 = vsel %vm1391_vm11, %v1393_v1, %v1389_v0  ;;  %v790_v58 = vsub.f32 1.0, %v1644_v57 }
0x174f   :  { %v1407_v28 = vsub.f32 1.0, %v1394_v3  ;;  %v1413_v19 = vmul.f32 %v1394_v3, %v1338_v38 }
0x17a3   :  { %v1398_v2 = vpop.permute.xlu1 %1397 }
0x17a4   :  { %v1400_v24 = vmul.f32 %v1398_v2, %v1394_v3 }
0x17a6   :  { %1402 = vrot.lane.b32.xlu2 %v1400_v24, %s1856_s27 }
0x17ab   :  { %v1418_v55 = vpop.permute.xlu1 %1417 }
0x17ae   :  { %1424 = vperm.xlu2 %1686, %v1421_v5  }
0x17b3   :  { %v767_v44 = vpop.permute.xlu1 %766 }
0x1800   :  { %v1403_v7 = vpop.permute.xlu2 %1402 }
0x1801   :  { %v1405_v8 = vadd.f32 %v1670_v48, %v1403_v7  ;;  %v1703_v48 = vld [vmem:[%s2388_s6] ss:$0 sm:$0xff] }
0x1803   :  { %1787 = vtanh.f32 %v1405_v8 }
0x1804   :  { %1789 = vpow2.f32 %v1646_v13 }
0x1808   :  { %v1425_v22 = vpop.permute.xlu2 %1424 }
0x1809   :  { %v1788_v9 = vpop.eup %1787  ;;  %v1427_v32 = vmul.f32 %v1425_v22, %v1338_v38 }
0x180a   :  { %1409 = vrot.lane.b32.xlu0 %v1788_v9, %s1858_s13  ;;  %v1790_v14 = vpop.eup %1789 }
0x180b   :  { %v749_v16 = vadd.f32 1.0, %v1790_v14  ;;  %v1431_v14 = vld [vmem:[%s2382_s0] sm:$0xf]  ;;  %s1604_s0 = sshll.u32 %s2393_s11, 4  ;;  %s1605_s0 = int_to_ptr.hbm [resolvable:$true] %s1604_s0 }
0x180d   :  { %1791 = vrcp.f32 %v749_v16  ;;  %v761_v36 = vand.u32 2147483648, %v749_v16  ;;  %vm755_vm13 = vweird.f32 %v749_v16  ;;  %v759_v40 = vand.u32 2147483647, %v749_v16 }
0x180f   :  { %v762_v42 = vor.u32 1.1754944e-38, %v761_v36  ;;  %vm760_vm15 = vcmp.eq.f32.partialorder %v759_v40, 8.507059e+37 }
0x1813   :  { %v1792_v26 = vpop.eup %1791 }
0x1814   :  { %v751_v27 = vmul.f32 %v1792_v26, %v749_v16  ;;  %vm756_vm12 = vweird.f32 %v1792_v26  ;;  %v1510_v16 = vsub.f32 1.0, %v1431_v14 }
0x1815   :  { %vm757_vm14 = vmor %vm755_vm13, %vm756_vm12 }
0x1816   :  { %v752_v17 = vsub.f32 1.0, %v751_v27 }
0x1818   :  { %v753_v29 = vmul.f32 %v1792_v26, %v752_v17 }
0x181a   :  { %v754_v34 = vadd.f32 %v1792_v26, %v753_v29 }
0x181c   :  { %v758_v41 = vsel %vm757_vm14, %v1792_v26, %v754_v34 }
0x181d   :  { %v763_v45 = vsel %vm760_vm15, %v762_v42, %v758_v41 }
0x181e   :  { %v769_v38 = vmul.f32 %v767_v44, %v763_v45  ;;  %v1526_v44 = vld [vmem:[%s2390_s8 + $0x18] sm:$0xff] }
0x181f   :  { %1544 = vmatpush.msra.mxu0 %v1526_v44 }
0x187c   :  { %v1410_v18 = vpop.permute.xlu0 %1409 }
0x187d   :  { %v1412_v20 = vmul.f32 %v1410_v18, %v1407_v28 }
0x187f   :  { %v1414_v31 = vadd.f32 %v1413_v19, %v1412_v20  ;;  %v776_v19 = vsub.f32 1.0, %v763_v45 }
0x1881   :  { %v2275_v35 = vmul.f32 %v1418_v55, %v1414_v31  ;;  %v782_v55 = vmul.f32 %v763_v45, %v2178_v25  ;;  %v1525_v45 = vld [vmem:[%s2390_s8 + $0x10] sm:$0xff] }
0x1882   :  { %1545 = vmatpush.msra.mxu0 %v1525_v45 }
0x1883   :  { %v2278_v4 = vadd.f32 %v1427_v32, %v2275_v35 }
0x1885   :  { %1441 = vrot.lane.b32.xlu0 %v2278_v4, %s1858_s13 }
0x188d   :  { %771 = vrot.lane.b32.xlu0 %v769_v38, %s1856_s27 }
0x18f7   :  { %v1442_v46 = vpop.permute.xlu0 %1441 }
0x18f8   :  { %1674 = vmatmul.msk.f32.vlgmr.msrb.gmra.mxu3 %vm49_vm4, %v1442_v46  ;;  %v1524_v46 = vld [vmem:[%s2390_s8 + $0x8] sm:$0xff] }
0x18f9   :  { %1546 = vmatpush.msra.mxu0 %v1524_v46 }
0x18ff   :  { %v772_v47 = vpop.permute.xlu0 %771 }
0x1900   :  { %v774_v50 = vadd.f32 %v1643_v10, %v772_v47 }
0x1902   :  { %1793 = vtanh.f32 %v774_v50 }
0x1908   :  { %v1794_v56 = vpop.eup %1793 }
0x197b   :  { %v1462_v52 = vpop.f32.mrf.mxu3 }
0x197c   :  { %v1463_v54 = vadd.f32 %v1703_v48, %v1462_v52  ;;  %v1523_v52 = vld [vmem:[%s2390_s8] sm:$0xff]  ;;  %s1859_s8 = smov [#allocation2]  }
0x197d   :  { %1547 = vmatpush.msra.mxu0 %v1523_v52  ;;  %s1588_s12 = sshll.u32 %s1859_s8, 4  ;;  %s1589_s12 = int_to_ptr.vmem [resolvable:$true] %s1588_s12 }
0x197e   :  { %1486 = vrot.lane.b32.xlu2 %v1463_v54, %s1856_s27  ;;  %v1465_v60 = vadd.f32 %v1463_v54, %v1430_v59 }
0x1980   :  { %v1675_v61 = vmul.f32 -1.442695, %v1465_v60 }
0x1982   :  { %1795 = vpow2.f32 %v1675_v61 }
0x1986   :  { %778 = vrot.lane.b32.xlu2 %v1794_v56, %s1858_s13 }
0x1988   :  { %v1796_v62 = vpop.eup %1795 }
0x1989   :  { %v1469_v30 = vadd.f32 1.0, %v1796_v62 }
0x198b   :  { %1797 = vrcp.f32 %v1469_v30  ;;  %v1481_v5 = vand.u32 2147483648, %v1469_v30  ;;  %vm1475_vm1 = vweird.f32 %v1469_v30  ;;  %v1479_v7 = vand.u32 2147483647, %v1469_v30 }
0x198d   :  { %v1482_v9 = vor.u32 1.1754944e-38, %v1481_v5  ;;  %vm1480_vm3 = vcmp.eq.f32.partialorder %v1479_v7, 8.507059e+37 }
0x198e   :  { %793 = vperm.xlu2 %1686, %v790_v58  }
0x1991   :  { %v1798_v0 = vpop.eup %1797 }
0x1992   :  { %v1471_v1 = vmul.f32 %v1798_v0, %v1469_v30  ;;  %vm1476_vm0 = vweird.f32 %v1798_v0 }
0x1993   :  { %vm1477_vm2 = vmor %vm1475_vm1, %vm1476_vm0 }
0x1994   :  { %v1472_v2 = vsub.f32 1.0, %v1471_v1 }
0x1996   :  { %v1473_v3 = vmul.f32 %v1798_v0, %v1472_v2 }
0x1998   :  { %v1474_v24 = vadd.f32 %v1798_v0, %v1473_v3 }
0x199a   :  { %v1478_v8 = vsel %vm1477_vm2, %v1798_v0, %v1474_v24 }
0x199b   :  { %v1483_v11 = vsel %vm1480_vm3, %v1482_v9, %v1478_v8 }
0x199c   :  { %v1496_v40 = vsub.f32 1.0, %v1483_v11  ;;  %v1502_v42 = vmul.f32 %v1483_v11, %v2278_v4 }
0x19d8   :  { %v1487_v10 = vpop.permute.xlu2 %1486 }
0x19d9   :  { %v1489_v13 = vmul.f32 %v1487_v10, %v1483_v11 }
0x19db   :  { %1491 = vrot.lane.b32.xlu1 %v1489_v13, %s1856_s27 }
0x19e0   :  { %v779_v18 = vpop.permute.xlu2 %778 }
0x19e1   :  { %v781_v20 = vmul.f32 %v779_v18, %v776_v19 }
0x19e3   :  { %786 = vperm.xlu1 %1685, %v1644_v57  }
0x19e8   :  { %v794_v29 = vpop.permute.xlu2 %793 }
0x19e9   :  { %v796_v31 = vmul.f32 %v794_v29, %v2178_v25  ;;  %v1522_v25 = vld [vmem:[%s2389_s7 + $0x18] sm:$0xff] }
0x19ea   :  { %1569 = vmatpush.msra.mxu1 %v1522_v25 }
0x19eb   :  { %1513 = vperm.xlu1 %1685, %v1510_v16  }
0x19f3   :  { %127 = vrot.lane.b32.xlu1 %v1947_v39, %s1858_s13  ;;  %v783_v39 = vadd.f32 %v782_v55, %v781_v20 }
0x19fb   :  { %415 = vrot.lane.b32.xlu1 %v1998_v23, %s1858_s13 }
0x1a03   :  { %703 = vrot.lane.b32.xlu1 %v2175_v15, %s1858_s13 }
0x1a4d   :  { %v1492_v26 = vpop.permute.xlu1 %1491 }
0x1a4e   :  { %v1494_v27 = vadd.f32 %v1492_v26, %v1430_v59 }
0x1a50   :  { %1799 = vtanh.f32 %v1494_v27 }
0x1a55   :  { %v787_v17 = vpop.permute.xlu1 %786 }
0x1a56   :  { %v1800_v28 = vpop.eup %1799  ;;  %v789_v23 = vmul.f32 %v787_v17, %v783_v39 }
0x1a57   :  { %1498 = vrot.lane.b32.xlu0 %v1800_v28, %s1858_s13 }
0x1a58   :  { %v797_v15 = vadd.f32 %v796_v31, %v789_v23 }
0x1a5d   :  { %v1514_v22 = vpop.permute.xlu1 %1513 }
0x1a5e   :  { %v1516_v48 = vmul.f32 %v1514_v22, %v2278_v4 }
0x1a5f   :  { %1506 = vperm.xlu0 %1687, %v1431_v14  }
0x1a65   :  { %v128_v32 = vpop.permute.xlu1 %127 }
0x1a66   :  { %131 = vst.msk [vmem:[#allocation2] sm:$0xf] %vm130_vm5, %v128_v32 }
0x1a67   :  { %1553 = vrot.lane.b32.xlu0 %v797_v15, %s1858_s13 }
0x1a6d   :  { %v416_v34 = vpop.permute.xlu1 %415 }
0x1a6e   :  { %419 = vst.msk [vmem:[#allocation2 + $0xc] sm:$0xf] %vm130_vm5, %v416_v34 }
0x1a6f   :  { %1249 = vst.msk [vmem:[#allocation2 + $0xc] sm:$0xf] %vm888_vm6, %v2221_v51  ;;  %319 = vrot.lane.b32.xlu0 %v1981_v49, %s1858_s13  ;;  %v1521_v51 = vld [vmem:[%s2389_s7 + $0x10] sm:$0xff]  ;;  %v1520_v49 = vld [vmem:[%s2389_s7 + $0x8] sm:$0xff] }
0x1a70   :  { %1570 = vmatpush.msra.mxu1 %v1521_v51 }
0x1a72   :  { %1571 = vmatpush.msra.mxu1 %v1520_v49 }
0x1a75   :  { %v704_v36 = vpop.permute.xlu1 %703 }
0x1a76   :  { %707 = vst.msk [vmem:[#allocation2 + $0x18] sm:$0xf] %vm130_vm5, %v704_v36 }
0x1a77   :  { %979 = vst.msk [vmem:[#allocation2 + $0x18] sm:$0xf] %vm888_vm6, %v2124_v63  ;;  %607 = vrot.lane.b32.xlu0 %v2115_v53, %s1858_s13  ;;  %v1519_v63 = vld [vmem:[%s2389_s7] sm:$0xff] }
0x1a78   :  { %1572 = vmatpush.msra.mxu1 %v1519_v63 }
0x1ac9   :  { %v1499_v53 = vpop.permute.xlu0 %1498 }
0x1aca   :  { %v1501_v41 = vmul.f32 %v1499_v53, %v1496_v40 }
0x1acc   :  { %v1503_v38 = vadd.f32 %v1502_v42, %v1501_v41 }
0x1ad1   :  { %v1507_v47 = vpop.permute.xlu0 %1506 }
0x1ad2   :  { %v1509_v50 = vmul.f32 %v1507_v47, %v1503_v38 }
0x1ad4   :  { %v1517_v54 = vadd.f32 %v1516_v48, %v1509_v50  ;;  %1518 = vst.msk [vmem:[#allocation2] sm:$0xf] %vm888_vm6, %v1509_v50 }
0x1ad6   :  { %1528 = vrot.lane.b32.xlu2 %v1517_v54, %s1858_s13 }
0x1ad9   :  { %v1554_v56 = vpop.permute.xlu0 %1553 }
0x1ada   :  { %1677 = vmatmul.msk.f32.vlgmr.msra.gmra.mxu1 %vm49_vm4, %v1554_v56 }
0x1ade   :  { %223 = vrot.lane.b32.xlu2 %v1964_v12, %s1858_s13 }
0x1ae1   :  { %v320_v57 = vpop.permute.xlu0 %319 }
0x1ae2   :  { %323 = vst.msk [vmem:[#allocation2 + $0x8] sm:$0xf] %vm130_vm5, %v320_v57 }
0x1ae3   :  { %1339 = vst.msk [vmem:[#allocation2 + $0x8] sm:$0xf] %vm888_vm6, %v2250_v37 }
0x1ae6   :  { %511 = vrot.lane.b32.xlu2 %v2069_v33, %s1858_s13 }
0x1ae9   :  { %v608_v4 = vpop.permute.xlu0 %607 }
0x1aea   :  { %611 = vst.msk [vmem:[#allocation2 + $0x14] sm:$0xf] %vm130_vm5, %v608_v4 }
0x1aeb   :  { %1069 = vst.msk [vmem:[#allocation2 + $0x14] sm:$0xf] %vm888_vm6, %v2184_v21  ;;  %v1704_v21 = vld [vmem:[%s2391_s9] ss:$0 sm:$0xff] }
0x1aee   :  { %799 = vrot.lane.b32.xlu2 %v789_v23, %s1858_s13  ;;  %s1590_s13 = sshll.u32 %s2392_s10, 4  ;;  %s1861_s10 = smov [#allocation4]   ;;  %s1591_s13 = int_to_ptr.hbm [resolvable:$true] %s1590_s13 }
0x1aef   :  { %s1602_s17 = sshll.u32 %s1861_s10, 4  ;;  %s1603_s17 = int_to_ptr.vmem [resolvable:$true] %s1602_s17 }
0x1b30   :  { %v1529_v58 = vpop.permute.xlu2 %1528 }
0x1b31   :  { %1676 = vmatmul.msk.f32.vlgmr.msra.gmra.mxu0 %vm49_vm4, %v1529_v58 }
0x1b38   :  { %v224_v12 = vpop.permute.xlu2 %223 }
0x1b39   :  { %227 = vst.msk [vmem:[#allocation2 + $0x4] sm:$0xf] %vm130_vm5, %v224_v12 }
0x1b3a   :  { %1429 = vst.msk [vmem:[#allocation2 + $0x4] sm:$0xf] %vm888_vm6, %v2275_v35 }
0x1b40   :  { %v512_v37 = vpop.permute.xlu2 %511 }
0x1b41   :  { %515 = vst.msk [vmem:[#allocation2 + $0x10] sm:$0xf] %vm130_vm5, %v512_v37 }
0x1b42   :  { %1159 = vst.msk [vmem:[#allocation2 + $0x10] sm:$0xf] %vm888_vm6, %v2204_v6 }
0x1b48   :  { %v800_v33 = vpop.permute.xlu2 %799 }
0x1b49   :  { %803 = vst.msk [vmem:[#allocation2 + $0x1c] sm:$0xf] %vm130_vm5, %v800_v33 }
0x1b4a   :  { %889 = vst.msk [vmem:[#allocation2 + $0x1c] sm:$0xf] %vm888_vm6, %v2076_v43 }
0x1b4b   :  { %1596 = dma.vmem_to_hbm [thread:$0]  %s1589_s12, 512, %s1591_s13, [#allocation3], %s1856_s27, %s1856_s27, %s1860_s15  }
0x1b57   :  { %v1574_v6 = vpop.f32.mrf.mxu1 }
0x1bae   :  { %v1549_v35 = vpop.f32.mrf.mxu0 }
0x1baf   :  { %v1575_v59 = vadd.f32 %v1574_v6, %v1549_v35 }
0x1bb1   :  { %v1581_v60 = vadd.f32 %v1704_v21, %v1575_v59 }
0x1bb3   :  { %1801 = vtanh.f32 %v1581_v60 }
0x1bb9   :  { %v1802_v43 = vpop.eup %1801 }
0x1bba   :  { %1583 = vst.msk [vmem:[#allocation4] sm:$0xf] %vm130_vm5, %v1802_v43 }
0x1bbb   :  { %1607 = dma.vmem_to_hbm [thread:$0]  %s1603_s17, 64, %s1605_s0, [#allocation5]  }
0x1bbc   :  { %1851 = dma.done.wait [#allocation3], 512  }
0x1bbd   :  { %1852 = vsyncadd [#allocation3], 4294966784 }
0x1bbe   :  { %1853 = dma.done.wait [#allocation5], 64  }
0x1bbf   :  { %1854 = vsyncadd [#allocation5], 4294967232 }
0x1bc0   :  { %1616 = vsyncpa [#allocation3], 1 }
0x1bc1   :  { %1617 = vsyncpa [#allocation5], 1 }

</bundles_post_ra>
